<compile_context>
chip_gen: v7x
topology: tpu7x:2x2x1
jax: 0.10.0
libtpu: 0.0.40
codegen_flags: <defaults>
</compile_context>

<pallas_src>
import jax
import jax.numpy as jnp
import numpy as np
from jax.experimental import pallas as pl
from jax.experimental.pallas import tpu as pltpu

HIDDEN_DIM = 128   # nn.GRU default; == one full lane slab per gate
OUTPUT_DIM = 2
N_LAYERS = 2
NUM_WORDS = 50
BATCH = 2          # NOTE: B=2 underfills sublanes; inherent to the workload
SEQ = 8
FC_PAD = 128       # padded FC output width (unmasked lane store)


# ----------------------------------------------------------------------------
# Fused kernel: one-hot embedding gather -> wavefront 2-layer GRU -> ReLU -> FC
# ----------------------------------------------------------------------------
def gru_fused_kernel(tok_ref, emb_ref,
                     w_ih0_ref, w_hh0_ref, b_ih0_ref, b_hh0_ref,
                     w_ih1_ref, w_hh1_ref, b_ih1_ref, b_hh1_ref,
                     fc_w_ref, fc_b_ref,
                     out_ref):
    H = w_hh0_ref.shape[0]
    B = out_ref.shape[0]
    TB = tok_ref.shape[0]
    T = TB // B
    Vp = emb_ref.shape[0]

    # ---- embedding gather as a one-hot MXU matmul (time-major (T*B, H)) -----
    tok = tok_ref[...]                                           # (TB, 1) int32
    lane_ids = jax.lax.broadcasted_iota(jnp.int32, (TB, Vp), 1)  # (TB, Vp)
    onehot = (tok == lane_ids).astype(jnp.bfloat16)
    x = jnp.dot(onehot, emb_ref[...],
                preferred_element_type=jnp.float32)              # (TB, H) f32

    def gru_step(gi_t, h, w_hh_ref, b_hh_ref):
        # PyTorch gate order [r, z, n]; b_hh folded into gh so that r
        # multiplies (h @ W_hn + b_hn), exactly as torch does.
        gh = jnp.dot(h.astype(jnp.bfloat16), w_hh_ref[...],
                     preferred_element_type=jnp.float32) + b_hh_ref[...]
        r = jax.nn.sigmoid(gi_t[:, :H] + gh[:, :H])
        z = jax.nn.sigmoid(gi_t[:, H:2 * H] + gh[:, H:2 * H])
        n = jnp.tanh(gi_t[:, 2 * H:] + r * gh[:, 2 * H:])
        return (1.0 - z) * n + z * h

    # Hoisted layer-0 input projection for every timestep at once (one matmul).
    gi0 = jnp.dot(x.astype(jnp.bfloat16), w_ih0_ref[...],
                  preferred_element_type=jnp.float32) + b_ih0_ref[...]

    def gi1_of(h0):
        return jnp.dot(h0.astype(jnp.bfloat16), w_ih1_ref[...],
                       preferred_element_type=jnp.float32) + b_ih1_ref[...]

    h0 = jnp.zeros((B, H), jnp.float32)
    h1 = jnp.zeros((B, H), jnp.float32)

    # ---- wavefront: wave s = {layer-0 step s, layer-1 step s-1} --------------
    h0 = gru_step(gi0[0:B, :], h0, w_hh0_ref, b_hh0_ref)          # wave 0
    for s in range(1, T):
        h0_prev = h0
        # The two updates below only depend on (h0_prev, h1): independent chains.
        h0 = gru_step(gi0[s * B:(s + 1) * B, :], h0_prev, w_hh0_ref, b_hh0_ref)
        h1 = gru_step(gi1_of(h0_prev), h1, w_hh1_ref, b_hh1_ref)
    h1 = gru_step(gi1_of(h0), h1, w_hh1_ref, b_hh1_ref)           # final wave

    # ---- fused head: out = ReLU(h_T) @ W_fc + b_fc (full-lane store) --------
    x_fc = jnp.maximum(h1, 0.0)
    out_ref[...] = (jnp.dot(x_fc.astype(jnp.bfloat16), fc_w_ref[...],
                            preferred_element_type=jnp.float32)
                    + fc_b_ref[...]).astype(out_ref.dtype)


# ----------------------------------------------------------------------------
# Wrapper: one pallas_call for the whole forward pass.
# ----------------------------------------------------------------------------
@jax.jit
def gru_model_forward(tokens, params):
    B, T = tokens.shape
    vocab, H = params["embedding"].shape
    O = params["fc_w"].shape[1]
    Vp = ((vocab + 63) // 64) * 64          # pad table rows (50 -> 64)

    # Time-major token ids, shape (T*B, 1): row t*B + b holds tokens[b, t].
    tok_tm = tokens.T.reshape(T * B, 1).astype(jnp.int32)

    # bf16 MXU operands; biases stay f32 (gate math stays f32 in-kernel).
    emb_p = jnp.zeros((Vp, H), jnp.bfloat16).at[:vocab].set(
        params["embedding"].astype(jnp.bfloat16))
    fc_w_p = jnp.pad(params["fc_w"], ((0, 0), (0, FC_PAD - O))).astype(jnp.bfloat16)
    fc_b_p = jnp.pad(params["fc_b"], ((0, 0), (0, FC_PAD - O)))

    def bf16(name):
        return params[name].astype(jnp.bfloat16)

    vmem = pl.BlockSpec(memory_space=pltpu.MemorySpace.VMEM)

    out_padded = pl.pallas_call(
        gru_fused_kernel,
        out_shape=jax.ShapeDtypeStruct((B, FC_PAD), jnp.float32),
        in_specs=[vmem] * 12,
        out_specs=vmem,
    )(tok_tm, emb_p,
      bf16("w_ih_l0"), bf16("w_hh_l0"), params["b_ih_l0"], params["b_hh_l0"],
      bf16("w_ih_l1"), bf16("w_hh_l1"), params["b_ih_l1"], params["b_hh_l1"],
      fc_w_p, fc_b_p)

    return out_padded[:, :O]


# ----------------------------------------------------------------------------
# Parameter init (deterministic synthetic weights; (H_in, 3H) pre-transposed,
# gate order [r | z | n] along the 3H axis, matching PyTorch).
# ----------------------------------------------------------------------------
def init_params(key, hidden=HIDDEN_DIM, out_dim=OUTPUT_DIM,
                n_layers=N_LAYERS, vocab=NUM_WORDS):
    keys = jax.random.split(key, 1 + 4 * n_layers + 2)
    scale = 1.0 / jnp.sqrt(hidden)
    params = {"embedding": jax.random.normal(keys[0], (vocab, hidden), jnp.float32)}
    ki = 1
    for l in range(n_layers):
        params[f"w_ih_l{l}"] = jax.random.uniform(
            keys[ki], (hidden, 3 * hidden), jnp.float32, -scale, scale); ki += 1
        params[f"w_hh_l{l}"] = jax.random.uniform(
            keys[ki], (hidden, 3 * hidden), jnp.float32, -scale, scale); ki += 1
        params[f"b_ih_l{l}"] = jax.random.uniform(
            keys[ki], (1, 3 * hidden), jnp.float32, -scale, scale); ki += 1
        params[f"b_hh_l{l}"] = jax.random.uniform(
            keys[ki], (1, 3 * hidden), jnp.float32, -scale, scale); ki += 1
    params["fc_w"] = jax.random.uniform(
        keys[ki], (hidden, out_dim), jnp.float32, -scale, scale); ki += 1
    params["fc_b"] = jax.random.uniform(
        keys[ki], (1, out_dim), jnp.float32, -scale, scale)
    return params


# ----------------------------------------------------------------------------
# Pure-JAX f32 reference (correctness check only).
# ----------------------------------------------------------------------------
def gru_reference(tokens, params, n_layers=N_LAYERS):
    emb = params["embedding"][tokens]              # (B, T, H)
    x = jnp.transpose(emb, (1, 0, 2))              # (T, B, H)
    for l in range(n_layers):
        w_ih = params[f"w_ih_l{l}"]; w_hh = params[f"w_hh_l{l}"]
        b_ih = params[f"b_ih_l{l}"]; b_hh = params[f"b_hh_l{l}"]
        H = w_hh.shape[0]

        def step(h, x_t, w_ih=w_ih, w_hh=w_hh, b_ih=b_ih, b_hh=b_hh, H=H):
            gi = x_t @ w_ih + b_ih
            gh = h @ w_hh + b_hh
            r = jax.nn.sigmoid(gi[:, :H] + gh[:, :H])
            z = jax.nn.sigmoid(gi[:, H:2 * H] + gh[:, H:2 * H])
            n = jnp.tanh(gi[:, 2 * H:] + r * gh[:, 2 * H:])
            h_new = (1.0 - z) * n + z * h
            return h_new, h_new

        h0 = jnp.zeros((x.shape[1], H), jnp.float32)
        _, x = jax.lax.scan(step, h0, x)
    last = x[-1]
    return jnp.maximum(last, 0.0) @ params["fc_w"] + params["fc_b"]


if __name__ == "__main__":
    key = jax.random.PRNGKey(0)
    k_tok, k_par = jax.random.split(key)
    tokens = jax.random.randint(k_tok, (BATCH, SEQ), 0, NUM_WORDS, dtype=jnp.int32)
    params = init_params(k_par)

    out = gru_model_forward(tokens, params)
    jax.block_until_ready(out)
    assert out.shape == (BATCH, OUTPUT_DIM)
    assert bool(jnp.all(jnp.isfinite(out)))

    ref = gru_reference(tokens, params)
    assert np.allclose(np.asarray(out), np.asarray(ref), atol=5e-2, rtol=5e-2), (
        "max abs diff vs reference: "
        + str(np.max(np.abs(np.asarray(out) - np.asarray(ref)))))
    print("KERNEL_OK")
</pallas_src>

<mosaic_0001>
module attributes {stable_mosaic.version = 11 : i64} {
  func.func @gru_fused_kernel(%arg0: memref<16x1xi32, #tpu.memory_space<vmem>>, %arg1: memref<64x128xbf16, #tpu.memory_space<vmem>>, %arg2: memref<128x384xbf16, #tpu.memory_space<vmem>>, %arg3: memref<128x384xbf16, #tpu.memory_space<vmem>>, %arg4: memref<1x384xf32, #tpu.memory_space<vmem>>, %arg5: memref<1x384xf32, #tpu.memory_space<vmem>>, %arg6: memref<128x384xbf16, #tpu.memory_space<vmem>>, %arg7: memref<128x384xbf16, #tpu.memory_space<vmem>>, %arg8: memref<1x384xf32, #tpu.memory_space<vmem>>, %arg9: memref<1x384xf32, #tpu.memory_space<vmem>>, %arg10: memref<128x128xbf16, #tpu.memory_space<vmem>>, %arg11: memref<1x128xf32, #tpu.memory_space<vmem>>, %arg12: memref<2x128xf32, #tpu.memory_space<vmem>>) attributes {dimension_semantics = [], scalar_prefetch = 0 : i64, scratch_operands = 0 : i64, tpu.core_type = #tpu.core_type<tc>} {
    %c0 = arith.constant 0 : index
    %c0_0 = arith.constant 0 : index
    %0 = vector.load %arg0[%c0, %c0_0] : memref<16x1xi32, #tpu.memory_space<vmem>>, vector<16x1xi32>
    %1 = tpu.iota {dimensions = array<i32: 1>} : vector<16x64xi32>
    %2 = vector.broadcast %0 : vector<16x1xi32> to vector<16x64xi32>
    %3 = arith.cmpi eq, %2, %1 : vector<16x64xi32>
    %4 = arith.extui %3 : vector<16x64xi1> to vector<16x64xi32>
    %5 = arith.sitofp %4 : vector<16x64xi32> to vector<16x64xf32>
    %6 = arith.truncf %5 : vector<16x64xf32> to vector<16x64xbf16>
    %c0_1 = arith.constant 0 : index
    %c0_2 = arith.constant 0 : index
    %7 = vector.load %arg1[%c0_1, %c0_2] : memref<64x128xbf16, #tpu.memory_space<vmem>>, vector<64x128xbf16>
    %cst = arith.constant dense<0.000000e+00> : vector<16x128xf32>
    %8 = tpu.matmul %6, %7, %cst {dimension_numbers = #tpu.dot_dimension_numbers<[1], [0], [0], [1], [0, 0, 1, 1], [], []>} : vector<16x64xbf16>, vector<64x128xbf16>, vector<16x128xf32> -> vector<16x128xf32>
    %9 = arith.truncf %8 : vector<16x128xf32> to vector<16x128xbf16>
    %c0_3 = arith.constant 0 : index
    %c0_4 = arith.constant 0 : index
    %10 = vector.load %arg2[%c0_3, %c0_4] : memref<128x384xbf16, #tpu.memory_space<vmem>>, vector<128x384xbf16>
    %cst_5 = arith.constant dense<0.000000e+00> : vector<16x384xf32>
    %11 = tpu.matmul %9, %10, %cst_5 {dimension_numbers = #tpu.dot_dimension_numbers<[1], [0], [0], [1], [0, 0, 1, 1], [], []>} : vector<16x128xbf16>, vector<128x384xbf16>, vector<16x384xf32> -> vector<16x384xf32>
    %c0_6 = arith.constant 0 : index
    %c0_7 = arith.constant 0 : index
    %12 = vector.load %arg4[%c0_6, %c0_7] : memref<1x384xf32, #tpu.memory_space<vmem>>, vector<1x384xf32>
    %13 = vector.broadcast %12 : vector<1x384xf32> to vector<16x384xf32>
    %14 = arith.addf %11, %13 : vector<16x384xf32>
    %cst_8 = arith.constant 0.000000e+00 : f32
    %15 = vector.broadcast %cst_8 : f32 to vector<2x128xf32>
    %cst_9 = arith.constant 0.000000e+00 : f32
    %16 = vector.broadcast %cst_9 : f32 to vector<2x128xf32>
    %17 = vector.extract_strided_slice %14 {offsets = [0, 0], sizes = [2, 384], strides = [1, 1]} : vector<16x384xf32> to vector<2x384xf32>
    %18 = arith.truncf %15 : vector<2x128xf32> to vector<2x128xbf16>
    %c0_10 = arith.constant 0 : index
    %c0_11 = arith.constant 0 : index
    %19 = vector.load %arg3[%c0_10, %c0_11] : memref<128x384xbf16, #tpu.memory_space<vmem>>, vector<128x384xbf16>
    %cst_12 = arith.constant dense<0.000000e+00> : vector<2x384xf32>
    %20 = tpu.matmul %18, %19, %cst_12 {dimension_numbers = #tpu.dot_dimension_numbers<[1], [0], [0], [1], [0, 0, 1, 1], [], []>} : vector<2x128xbf16>, vector<128x384xbf16>, vector<2x384xf32> -> vector<2x384xf32>
    %c0_13 = arith.constant 0 : index
    %c0_14 = arith.constant 0 : index
    %21 = vector.load %arg5[%c0_13, %c0_14] : memref<1x384xf32, #tpu.memory_space<vmem>>, vector<1x384xf32>
    %22 = vector.broadcast %21 : vector<1x384xf32> to vector<2x384xf32>
    %23 = arith.addf %20, %22 : vector<2x384xf32>
    %24 = vector.extract_strided_slice %17 {offsets = [0, 0], sizes = [2, 128], strides = [1, 1]} : vector<2x384xf32> to vector<2x128xf32>
    %25 = vector.extract_strided_slice %23 {offsets = [0, 0], sizes = [2, 128], strides = [1, 1]} : vector<2x384xf32> to vector<2x128xf32>
    %26 = arith.addf %24, %25 : vector<2x128xf32>
    %27 = arith.negf %26 : vector<2x128xf32>
    %28 = math.exp %27 : vector<2x128xf32>
    %cst_15 = arith.constant 1.000000e+00 : f32
    %29 = vector.broadcast %cst_15 : f32 to vector<2x128xf32>
    %30 = arith.addf %29, %28 : vector<2x128xf32>
    %31 = arith.divf %29, %30 : vector<2x128xf32>
    %32 = vector.extract_strided_slice %17 {offsets = [0, 128], sizes = [2, 128], strides = [1, 1]} : vector<2x384xf32> to vector<2x128xf32>
    %33 = vector.extract_strided_slice %23 {offsets = [0, 128], sizes = [2, 128], strides = [1, 1]} : vector<2x384xf32> to vector<2x128xf32>
    %34 = arith.addf %32, %33 : vector<2x128xf32>
    %35 = arith.negf %34 : vector<2x128xf32>
    %36 = math.exp %35 : vector<2x128xf32>
    %cst_16 = arith.constant 1.000000e+00 : f32
    %37 = vector.broadcast %cst_16 : f32 to vector<2x128xf32>
    %38 = arith.addf %37, %36 : vector<2x128xf32>
    %39 = arith.divf %37, %38 : vector<2x128xf32>
    %40 = vector.extract_strided_slice %17 {offsets = [0, 256], sizes = [2, 128], strides = [1, 1]} : vector<2x384xf32> to vector<2x128xf32>
    %41 = vector.extract_strided_slice %23 {offsets = [0, 256], sizes = [2, 128], strides = [1, 1]} : vector<2x384xf32> to vector<2x128xf32>
    %42 = arith.mulf %31, %41 : vector<2x128xf32>
    %43 = arith.addf %40, %42 : vector<2x128xf32>
    %44 = math.tanh %43 : vector<2x128xf32>
    %cst_17 = arith.constant 1.000000e+00 : f32
    %45 = vector.broadcast %cst_17 : f32 to vector<2x128xf32>
    %46 = arith.subf %45, %39 : vector<2x128xf32>
    %47 = arith.mulf %46, %44 : vector<2x128xf32>
    %48 = arith.mulf %39, %15 : vector<2x128xf32>
    %49 = arith.addf %47, %48 : vector<2x128xf32>
    %50 = vector.extract_strided_slice %14 {offsets = [2, 0], sizes = [2, 384], strides = [1, 1]} : vector<16x384xf32> to vector<2x384xf32>
    %51 = arith.truncf %49 : vector<2x128xf32> to vector<2x128xbf16>
    %c0_18 = arith.constant 0 : index
    %c0_19 = arith.constant 0 : index
    %52 = vector.load %arg3[%c0_18, %c0_19] : memref<128x384xbf16, #tpu.memory_space<vmem>>, vector<128x384xbf16>
    %cst_20 = arith.constant dense<0.000000e+00> : vector<2x384xf32>
    %53 = tpu.matmul %51, %52, %cst_20 {dimension_numbers = #tpu.dot_dimension_numbers<[1], [0], [0], [1], [0, 0, 1, 1], [], []>} : vector<2x128xbf16>, vector<128x384xbf16>, vector<2x384xf32> -> vector<2x384xf32>
    %c0_21 = arith.constant 0 : index
    %c0_22 = arith.constant 0 : index
    %54 = vector.load %arg5[%c0_21, %c0_22] : memref<1x384xf32, #tpu.memory_space<vmem>>, vector<1x384xf32>
    %55 = vector.broadcast %54 : vector<1x384xf32> to vector<2x384xf32>
    %56 = arith.addf %53, %55 : vector<2x384xf32>
    %57 = vector.extract_strided_slice %50 {offsets = [0, 0], sizes = [2, 128], strides = [1, 1]} : vector<2x384xf32> to vector<2x128xf32>
    %58 = vector.extract_strided_slice %56 {offsets = [0, 0], sizes = [2, 128], strides = [1, 1]} : vector<2x384xf32> to vector<2x128xf32>
    %59 = arith.addf %57, %58 : vector<2x128xf32>
    %60 = arith.negf %59 : vector<2x128xf32>
    %61 = math.exp %60 : vector<2x128xf32>
    %cst_23 = arith.constant 1.000000e+00 : f32
    %62 = vector.broadcast %cst_23 : f32 to vector<2x128xf32>
    %63 = arith.addf %62, %61 : vector<2x128xf32>
    %64 = arith.divf %62, %63 : vector<2x128xf32>
    %65 = vector.extract_strided_slice %50 {offsets = [0, 128], sizes = [2, 128], strides = [1, 1]} : vector<2x384xf32> to vector<2x128xf32>
    %66 = vector.extract_strided_slice %56 {offsets = [0, 128], sizes = [2, 128], strides = [1, 1]} : vector<2x384xf32> to vector<2x128xf32>
    %67 = arith.addf %65, %66 : vector<2x128xf32>
    %68 = arith.negf %67 : vector<2x128xf32>
    %69 = math.exp %68 : vector<2x128xf32>
    %cst_24 = arith.constant 1.000000e+00 : f32
    %70 = vector.broadcast %cst_24 : f32 to vector<2x128xf32>
    %71 = arith.addf %70, %69 : vector<2x128xf32>
    %72 = arith.divf %70, %71 : vector<2x128xf32>
    %73 = vector.extract_strided_slice %50 {offsets = [0, 256], sizes = [2, 128], strides = [1, 1]} : vector<2x384xf32> to vector<2x128xf32>
    %74 = vector.extract_strided_slice %56 {offsets = [0, 256], sizes = [2, 128], strides = [1, 1]} : vector<2x384xf32> to vector<2x128xf32>
    %75 = arith.mulf %64, %74 : vector<2x128xf32>
    %76 = arith.addf %73, %75 : vector<2x128xf32>
    %77 = math.tanh %76 : vector<2x128xf32>
    %cst_25 = arith.constant 1.000000e+00 : f32
    %78 = vector.broadcast %cst_25 : f32 to vector<2x128xf32>
    %79 = arith.subf %78, %72 : vector<2x128xf32>
    %80 = arith.mulf %79, %77 : vector<2x128xf32>
    %81 = arith.mulf %72, %49 : vector<2x128xf32>
    %82 = arith.addf %80, %81 : vector<2x128xf32>
    %83 = arith.truncf %49 : vector<2x128xf32> to vector<2x128xbf16>
    %c0_26 = arith.constant 0 : index
    %c0_27 = arith.constant 0 : index
    %84 = vector.load %arg6[%c0_26, %c0_27] : memref<128x384xbf16, #tpu.memory_space<vmem>>, vector<128x384xbf16>
    %cst_28 = arith.constant dense<0.000000e+00> : vector<2x384xf32>
    %85 = tpu.matmul %83, %84, %cst_28 {dimension_numbers = #tpu.dot_dimension_numbers<[1], [0], [0], [1], [0, 0, 1, 1], [], []>} : vector<2x128xbf16>, vector<128x384xbf16>, vector<2x384xf32> -> vector<2x384xf32>
    %c0_29 = arith.constant 0 : index
    %c0_30 = arith.constant 0 : index
    %86 = vector.load %arg8[%c0_29, %c0_30] : memref<1x384xf32, #tpu.memory_space<vmem>>, vector<1x384xf32>
    %87 = vector.broadcast %86 : vector<1x384xf32> to vector<2x384xf32>
    %88 = arith.addf %85, %87 : vector<2x384xf32>
    %89 = arith.truncf %16 : vector<2x128xf32> to vector<2x128xbf16>
    %c0_31 = arith.constant 0 : index
    %c0_32 = arith.constant 0 : index
    %90 = vector.load %arg7[%c0_31, %c0_32] : memref<128x384xbf16, #tpu.memory_space<vmem>>, vector<128x384xbf16>
    %cst_33 = arith.constant dense<0.000000e+00> : vector<2x384xf32>
    %91 = tpu.matmul %89, %90, %cst_33 {dimension_numbers = #tpu.dot_dimension_numbers<[1], [0], [0], [1], [0, 0, 1, 1], [], []>} : vector<2x128xbf16>, vector<128x384xbf16>, vector<2x384xf32> -> vector<2x384xf32>
    %c0_34 = arith.constant 0 : index
    %c0_35 = arith.constant 0 : index
    %92 = vector.load %arg9[%c0_34, %c0_35] : memref<1x384xf32, #tpu.memory_space<vmem>>, vector<1x384xf32>
    %93 = vector.broadcast %92 : vector<1x384xf32> to vector<2x384xf32>
    %94 = arith.addf %91, %93 : vector<2x384xf32>
    %95 = vector.extract_strided_slice %88 {offsets = [0, 0], sizes = [2, 128], strides = [1, 1]} : vector<2x384xf32> to vector<2x128xf32>
    %96 = vector.extract_strided_slice %94 {offsets = [0, 0], sizes = [2, 128], strides = [1, 1]} : vector<2x384xf32> to vector<2x128xf32>
    %97 = arith.addf %95, %96 : vector<2x128xf32>
    %98 = arith.negf %97 : vector<2x128xf32>
    %99 = math.exp %98 : vector<2x128xf32>
    %cst_36 = arith.constant 1.000000e+00 : f32
    %100 = vector.broadcast %cst_36 : f32 to vector<2x128xf32>
    %101 = arith.addf %100, %99 : vector<2x128xf32>
    %102 = arith.divf %100, %101 : vector<2x128xf32>
    %103 = vector.extract_strided_slice %88 {offsets = [0, 128], sizes = [2, 128], strides = [1, 1]} : vector<2x384xf32> to vector<2x128xf32>
    %104 = vector.extract_strided_slice %94 {offsets = [0, 128], sizes = [2, 128], strides = [1, 1]} : vector<2x384xf32> to vector<2x128xf32>
    %105 = arith.addf %103, %104 : vector<2x128xf32>
    %106 = arith.negf %105 : vector<2x128xf32>
    %107 = math.exp %106 : vector<2x128xf32>
    %cst_37 = arith.constant 1.000000e+00 : f32
    %108 = vector.broadcast %cst_37 : f32 to vector<2x128xf32>
    %109 = arith.addf %108, %107 : vector<2x128xf32>
    %110 = arith.divf %108, %109 : vector<2x128xf32>
    %111 = vector.extract_strided_slice %88 {offsets = [0, 256], sizes = [2, 128], strides = [1, 1]} : vector<2x384xf32> to vector<2x128xf32>
    %112 = vector.extract_strided_slice %94 {offsets = [0, 256], sizes = [2, 128], strides = [1, 1]} : vector<2x384xf32> to vector<2x128xf32>
    %113 = arith.mulf %102, %112 : vector<2x128xf32>
    %114 = arith.addf %111, %113 : vector<2x128xf32>
    %115 = math.tanh %114 : vector<2x128xf32>
    %cst_38 = arith.constant 1.000000e+00 : f32
    %116 = vector.broadcast %cst_38 : f32 to vector<2x128xf32>
    %117 = arith.subf %116, %110 : vector<2x128xf32>
    %118 = arith.mulf %117, %115 : vector<2x128xf32>
    %119 = arith.mulf %110, %16 : vector<2x128xf32>
    %120 = arith.addf %118, %119 : vector<2x128xf32>
    %121 = vector.extract_strided_slice %14 {offsets = [4, 0], sizes = [2, 384], strides = [1, 1]} : vector<16x384xf32> to vector<2x384xf32>
    %122 = arith.truncf %82 : vector<2x128xf32> to vector<2x128xbf16>
    %c0_39 = arith.constant 0 : index
    %c0_40 = arith.constant 0 : index
    %123 = vector.load %arg3[%c0_39, %c0_40] : memref<128x384xbf16, #tpu.memory_space<vmem>>, vector<128x384xbf16>
    %cst_41 = arith.constant dense<0.000000e+00> : vector<2x384xf32>
    %124 = tpu.matmul %122, %123, %cst_41 {dimension_numbers = #tpu.dot_dimension_numbers<[1], [0], [0], [1], [0, 0, 1, 1], [], []>} : vector<2x128xbf16>, vector<128x384xbf16>, vector<2x384xf32> -> vector<2x384xf32>
    %c0_42 = arith.constant 0 : index
    %c0_43 = arith.constant 0 : index
    %125 = vector.load %arg5[%c0_42, %c0_43] : memref<1x384xf32, #tpu.memory_space<vmem>>, vector<1x384xf32>
    %126 = vector.broadcast %125 : vector<1x384xf32> to vector<2x384xf32>
    %127 = arith.addf %124, %126 : vector<2x384xf32>
    %128 = vector.extract_strided_slice %121 {offsets = [0, 0], sizes = [2, 128], strides = [1, 1]} : vector<2x384xf32> to vector<2x128xf32>
    %129 = vector.extract_strided_slice %127 {offsets = [0, 0], sizes = [2, 128], strides = [1, 1]} : vector<2x384xf32> to vector<2x128xf32>
    %130 = arith.addf %128, %129 : vector<2x128xf32>
    %131 = arith.negf %130 : vector<2x128xf32>
    %132 = math.exp %131 : vector<2x128xf32>
    %cst_44 = arith.constant 1.000000e+00 : f32
    %133 = vector.broadcast %cst_44 : f32 to vector<2x128xf32>
    %134 = arith.addf %133, %132 : vector<2x128xf32>
    %135 = arith.divf %133, %134 : vector<2x128xf32>
    %136 = vector.extract_strided_slice %121 {offsets = [0, 128], sizes = [2, 128], strides = [1, 1]} : vector<2x384xf32> to vector<2x128xf32>
    %137 = vector.extract_strided_slice %127 {offsets = [0, 128], sizes = [2, 128], strides = [1, 1]} : vector<2x384xf32> to vector<2x128xf32>
    %138 = arith.addf %136, %137 : vector<2x128xf32>
    %139 = arith.negf %138 : vector<2x128xf32>
    %140 = math.exp %139 : vector<2x128xf32>
    %cst_45 = arith.constant 1.000000e+00 : f32
    %141 = vector.broadcast %cst_45 : f32 to vector<2x128xf32>
    %142 = arith.addf %141, %140 : vector<2x128xf32>
    %143 = arith.divf %141, %142 : vector<2x128xf32>
    %144 = vector.extract_strided_slice %121 {offsets = [0, 256], sizes = [2, 128], strides = [1, 1]} : vector<2x384xf32> to vector<2x128xf32>
    %145 = vector.extract_strided_slice %127 {offsets = [0, 256], sizes = [2, 128], strides = [1, 1]} : vector<2x384xf32> to vector<2x128xf32>
    %146 = arith.mulf %135, %145 : vector<2x128xf32>
    %147 = arith.addf %144, %146 : vector<2x128xf32>
    %148 = math.tanh %147 : vector<2x128xf32>
    %cst_46 = arith.constant 1.000000e+00 : f32
    %149 = vector.broadcast %cst_46 : f32 to vector<2x128xf32>
    %150 = arith.subf %149, %143 : vector<2x128xf32>
    %151 = arith.mulf %150, %148 : vector<2x128xf32>
    %152 = arith.mulf %143, %82 : vector<2x128xf32>
    %153 = arith.addf %151, %152 : vector<2x128xf32>
    %154 = arith.truncf %82 : vector<2x128xf32> to vector<2x128xbf16>
    %c0_47 = arith.constant 0 : index
    %c0_48 = arith.constant 0 : index
    %155 = vector.load %arg6[%c0_47, %c0_48] : memref<128x384xbf16, #tpu.memory_space<vmem>>, vector<128x384xbf16>
    %cst_49 = arith.constant dense<0.000000e+00> : vector<2x384xf32>
    %156 = tpu.matmul %154, %155, %cst_49 {dimension_numbers = #tpu.dot_dimension_numbers<[1], [0], [0], [1], [0, 0, 1, 1], [], []>} : vector<2x128xbf16>, vector<128x384xbf16>, vector<2x384xf32> -> vector<2x384xf32>
    %c0_50 = arith.constant 0 : index
    %c0_51 = arith.constant 0 : index
    %157 = vector.load %arg8[%c0_50, %c0_51] : memref<1x384xf32, #tpu.memory_space<vmem>>, vector<1x384xf32>
    %158 = vector.broadcast %157 : vector<1x384xf32> to vector<2x384xf32>
    %159 = arith.addf %156, %158 : vector<2x384xf32>
    %160 = arith.truncf %120 : vector<2x128xf32> to vector<2x128xbf16>
    %c0_52 = arith.constant 0 : index
    %c0_53 = arith.constant 0 : index
    %161 = vector.load %arg7[%c0_52, %c0_53] : memref<128x384xbf16, #tpu.memory_space<vmem>>, vector<128x384xbf16>
    %cst_54 = arith.constant dense<0.000000e+00> : vector<2x384xf32>
    %162 = tpu.matmul %160, %161, %cst_54 {dimension_numbers = #tpu.dot_dimension_numbers<[1], [0], [0], [1], [0, 0, 1, 1], [], []>} : vector<2x128xbf16>, vector<128x384xbf16>, vector<2x384xf32> -> vector<2x384xf32>
    %c0_55 = arith.constant 0 : index
    %c0_56 = arith.constant 0 : index
    %163 = vector.load %arg9[%c0_55, %c0_56] : memref<1x384xf32, #tpu.memory_space<vmem>>, vector<1x384xf32>
    %164 = vector.broadcast %163 : vector<1x384xf32> to vector<2x384xf32>
    %165 = arith.addf %162, %164 : vector<2x384xf32>
    %166 = vector.extract_strided_slice %159 {offsets = [0, 0], sizes = [2, 128], strides = [1, 1]} : vector<2x384xf32> to vector<2x128xf32>
    %167 = vector.extract_strided_slice %165 {offsets = [0, 0], sizes = [2, 128], strides = [1, 1]} : vector<2x384xf32> to vector<2x128xf32>
    %168 = arith.addf %166, %167 : vector<2x128xf32>
    %169 = arith.negf %168 : vector<2x128xf32>
    %170 = math.exp %169 : vector<2x128xf32>
    %cst_57 = arith.constant 1.000000e+00 : f32
    %171 = vector.broadcast %cst_57 : f32 to vector<2x128xf32>
    %172 = arith.addf %171, %170 : vector<2x128xf32>
    %173 = arith.divf %171, %172 : vector<2x128xf32>
    %174 = vector.extract_strided_slice %159 {offsets = [0, 128], sizes = [2, 128], strides = [1, 1]} : vector<2x384xf32> to vector<2x128xf32>
    %175 = vector.extract_strided_slice %165 {offsets = [0, 128], sizes = [2, 128], strides = [1, 1]} : vector<2x384xf32> to vector<2x128xf32>
    %176 = arith.addf %174, %175 : vector<2x128xf32>
    %177 = arith.negf %176 : vector<2x128xf32>
    %178 = math.exp %177 : vector<2x128xf32>
    %cst_58 = arith.constant 1.000000e+00 : f32
    %179 = vector.broadcast %cst_58 : f32 to vector<2x128xf32>
    %180 = arith.addf %179, %178 : vector<2x128xf32>
    %181 = arith.divf %179, %180 : vector<2x128xf32>
    %182 = vector.extract_strided_slice %159 {offsets = [0, 256], sizes = [2, 128], strides = [1, 1]} : vector<2x384xf32> to vector<2x128xf32>
    %183 = vector.extract_strided_slice %165 {offsets = [0, 256], sizes = [2, 128], strides = [1, 1]} : vector<2x384xf32> to vector<2x128xf32>
    %184 = arith.mulf %173, %183 : vector<2x128xf32>
    %185 = arith.addf %182, %184 : vector<2x128xf32>
    %186 = math.tanh %185 : vector<2x128xf32>
    %cst_59 = arith.constant 1.000000e+00 : f32
    %187 = vector.broadcast %cst_59 : f32 to vector<2x128xf32>
    %188 = arith.subf %187, %181 : vector<2x128xf32>
    %189 = arith.mulf %188, %186 : vector<2x128xf32>
    %190 = arith.mulf %181, %120 : vector<2x128xf32>
    %191 = arith.addf %189, %190 : vector<2x128xf32>
    %192 = vector.extract_strided_slice %14 {offsets = [6, 0], sizes = [2, 384], strides = [1, 1]} : vector<16x384xf32> to vector<2x384xf32>
    %193 = arith.truncf %153 : vector<2x128xf32> to vector<2x128xbf16>
    %c0_60 = arith.constant 0 : index
    %c0_61 = arith.constant 0 : index
    %194 = vector.load %arg3[%c0_60, %c0_61] : memref<128x384xbf16, #tpu.memory_space<vmem>>, vector<128x384xbf16>
    %cst_62 = arith.constant dense<0.000000e+00> : vector<2x384xf32>
    %195 = tpu.matmul %193, %194, %cst_62 {dimension_numbers = #tpu.dot_dimension_numbers<[1], [0], [0], [1], [0, 0, 1, 1], [], []>} : vector<2x128xbf16>, vector<128x384xbf16>, vector<2x384xf32> -> vector<2x384xf32>
    %c0_63 = arith.constant 0 : index
    %c0_64 = arith.constant 0 : index
    %196 = vector.load %arg5[%c0_63, %c0_64] : memref<1x384xf32, #tpu.memory_space<vmem>>, vector<1x384xf32>
    %197 = vector.broadcast %196 : vector<1x384xf32> to vector<2x384xf32>
    %198 = arith.addf %195, %197 : vector<2x384xf32>
    %199 = vector.extract_strided_slice %192 {offsets = [0, 0], sizes = [2, 128], strides = [1, 1]} : vector<2x384xf32> to vector<2x128xf32>
    %200 = vector.extract_strided_slice %198 {offsets = [0, 0], sizes = [2, 128], strides = [1, 1]} : vector<2x384xf32> to vector<2x128xf32>
    %201 = arith.addf %199, %200 : vector<2x128xf32>
    %202 = arith.negf %201 : vector<2x128xf32>
    %203 = math.exp %202 : vector<2x128xf32>
    %cst_65 = arith.constant 1.000000e+00 : f32
    %204 = vector.broadcast %cst_65 : f32 to vector<2x128xf32>
    %205 = arith.addf %204, %203 : vector<2x128xf32>
    %206 = arith.divf %204, %205 : vector<2x128xf32>
    %207 = vector.extract_strided_slice %192 {offsets = [0, 128], sizes = [2, 128], strides = [1, 1]} : vector<2x384xf32> to vector<2x128xf32>
    %208 = vector.extract_strided_slice %198 {offsets = [0, 128], sizes = [2, 128], strides = [1, 1]} : vector<2x384xf32> to vector<2x128xf32>
    %209 = arith.addf %207, %208 : vector<2x128xf32>
    %210 = arith.negf %209 : vector<2x128xf32>
    %211 = math.exp %210 : vector<2x128xf32>
    %cst_66 = arith.constant 1.000000e+00 : f32
    %212 = vector.broadcast %cst_66 : f32 to vector<2x128xf32>
    %213 = arith.addf %212, %211 : vector<2x128xf32>
    %214 = arith.divf %212, %213 : vector<2x128xf32>
    %215 = vector.extract_strided_slice %192 {offsets = [0, 256], sizes = [2, 128], strides = [1, 1]} : vector<2x384xf32> to vector<2x128xf32>
    %216 = vector.extract_strided_slice %198 {offsets = [0, 256], sizes = [2, 128], strides = [1, 1]} : vector<2x384xf32> to vector<2x128xf32>
    %217 = arith.mulf %206, %216 : vector<2x128xf32>
    %218 = arith.addf %215, %217 : vector<2x128xf32>
    %219 = math.tanh %218 : vector<2x128xf32>
    %cst_67 = arith.constant 1.000000e+00 : f32
    %220 = vector.broadcast %cst_67 : f32 to vector<2x128xf32>
    %221 = arith.subf %220, %214 : vector<2x128xf32>
    %222 = arith.mulf %221, %219 : vector<2x128xf32>
    %223 = arith.mulf %214, %153 : vector<2x128xf32>
    %224 = arith.addf %222, %223 : vector<2x128xf32>
    %225 = arith.truncf %153 : vector<2x128xf32> to vector<2x128xbf16>
    %c0_68 = arith.constant 0 : index
    %c0_69 = arith.constant 0 : index
    %226 = vector.load %arg6[%c0_68, %c0_69] : memref<128x384xbf16, #tpu.memory_space<vmem>>, vector<128x384xbf16>
    %cst_70 = arith.constant dense<0.000000e+00> : vector<2x384xf32>
    %227 = tpu.matmul %225, %226, %cst_70 {dimension_numbers = #tpu.dot_dimension_numbers<[1], [0], [0], [1], [0, 0, 1, 1], [], []>} : vector<2x128xbf16>, vector<128x384xbf16>, vector<2x384xf32> -> vector<2x384xf32>
    %c0_71 = arith.constant 0 : index
    %c0_72 = arith.constant 0 : index
    %228 = vector.load %arg8[%c0_71, %c0_72] : memref<1x384xf32, #tpu.memory_space<vmem>>, vector<1x384xf32>
    %229 = vector.broadcast %228 : vector<1x384xf32> to vector<2x384xf32>
    %230 = arith.addf %227, %229 : vector<2x384xf32>
    %231 = arith.truncf %191 : vector<2x128xf32> to vector<2x128xbf16>
    %c0_73 = arith.constant 0 : index
    %c0_74 = arith.constant 0 : index
    %232 = vector.load %arg7[%c0_73, %c0_74] : memref<128x384xbf16, #tpu.memory_space<vmem>>, vector<128x384xbf16>
    %cst_75 = arith.constant dense<0.000000e+00> : vector<2x384xf32>
    %233 = tpu.matmul %231, %232, %cst_75 {dimension_numbers = #tpu.dot_dimension_numbers<[1], [0], [0], [1], [0, 0, 1, 1], [], []>} : vector<2x128xbf16>, vector<128x384xbf16>, vector<2x384xf32> -> vector<2x384xf32>
    %c0_76 = arith.constant 0 : index
    %c0_77 = arith.constant 0 : index
    %234 = vector.load %arg9[%c0_76, %c0_77] : memref<1x384xf32, #tpu.memory_space<vmem>>, vector<1x384xf32>
    %235 = vector.broadcast %234 : vector<1x384xf32> to vector<2x384xf32>
    %236 = arith.addf %233, %235 : vector<2x384xf32>
    %237 = vector.extract_strided_slice %230 {offsets = [0, 0], sizes = [2, 128], strides = [1, 1]} : vector<2x384xf32> to vector<2x128xf32>
    %238 = vector.extract_strided_slice %236 {offsets = [0, 0], sizes = [2, 128], strides = [1, 1]} : vector<2x384xf32> to vector<2x128xf32>
    %239 = arith.addf %237, %238 : vector<2x128xf32>
    %240 = arith.negf %239 : vector<2x128xf32>
    %241 = math.exp %240 : vector<2x128xf32>
    %cst_78 = arith.constant 1.000000e+00 : f32
    %242 = vector.broadcast %cst_78 : f32 to vector<2x128xf32>
    %243 = arith.addf %242, %241 : vector<2x128xf32>
    %244 = arith.divf %242, %243 : vector<2x128xf32>
    %245 = vector.extract_strided_slice %230 {offsets = [0, 128], sizes = [2, 128], strides = [1, 1]} : vector<2x384xf32> to vector<2x128xf32>
    %246 = vector.extract_strided_slice %236 {offsets = [0, 128], sizes = [2, 128], strides = [1, 1]} : vector<2x384xf32> to vector<2x128xf32>
    %247 = arith.addf %245, %246 : vector<2x128xf32>
    %248 = arith.negf %247 : vector<2x128xf32>
    %249 = math.exp %248 : vector<2x128xf32>
    %cst_79 = arith.constant 1.000000e+00 : f32
    %250 = vector.broadcast %cst_79 : f32 to vector<2x128xf32>
    %251 = arith.addf %250, %249 : vector<2x128xf32>
    %252 = arith.divf %250, %251 : vector<2x128xf32>
    %253 = vector.extract_strided_slice %230 {offsets = [0, 256], sizes = [2, 128], strides = [1, 1]} : vector<2x384xf32> to vector<2x128xf32>
    %254 = vector.extract_strided_slice %236 {offsets = [0, 256], sizes = [2, 128], strides = [1, 1]} : vector<2x384xf32> to vector<2x128xf32>
    %255 = arith.mulf %244, %254 : vector<2x128xf32>
    %256 = arith.addf %253, %255 : vector<2x128xf32>
    %257 = math.tanh %256 : vector<2x128xf32>
    %cst_80 = arith.constant 1.000000e+00 : f32
    %258 = vector.broadcast %cst_80 : f32 to vector<2x128xf32>
    %259 = arith.subf %258, %252 : vector<2x128xf32>
    %260 = arith.mulf %259, %257 : vector<2x128xf32>
    %261 = arith.mulf %252, %191 : vector<2x128xf32>
    %262 = arith.addf %260, %261 : vector<2x128xf32>
    %263 = vector.extract_strided_slice %14 {offsets = [8, 0], sizes = [2, 384], strides = [1, 1]} : vector<16x384xf32> to vector<2x384xf32>
    %264 = arith.truncf %224 : vector<2x128xf32> to vector<2x128xbf16>
    %c0_81 = arith.constant 0 : index
    %c0_82 = arith.constant 0 : index
    %265 = vector.load %arg3[%c0_81, %c0_82] : memref<128x384xbf16, #tpu.memory_space<vmem>>, vector<128x384xbf16>
    %cst_83 = arith.constant dense<0.000000e+00> : vector<2x384xf32>
    %266 = tpu.matmul %264, %265, %cst_83 {dimension_numbers = #tpu.dot_dimension_numbers<[1], [0], [0], [1], [0, 0, 1, 1], [], []>} : vector<2x128xbf16>, vector<128x384xbf16>, vector<2x384xf32> -> vector<2x384xf32>
    %c0_84 = arith.constant 0 : index
    %c0_85 = arith.constant 0 : index
    %267 = vector.load %arg5[%c0_84, %c0_85] : memref<1x384xf32, #tpu.memory_space<vmem>>, vector<1x384xf32>
    %268 = vector.broadcast %267 : vector<1x384xf32> to vector<2x384xf32>
    %269 = arith.addf %266, %268 : vector<2x384xf32>
    %270 = vector.extract_strided_slice %263 {offsets = [0, 0], sizes = [2, 128], strides = [1, 1]} : vector<2x384xf32> to vector<2x128xf32>
    %271 = vector.extract_strided_slice %269 {offsets = [0, 0], sizes = [2, 128], strides = [1, 1]} : vector<2x384xf32> to vector<2x128xf32>
    %272 = arith.addf %270, %271 : vector<2x128xf32>
    %273 = arith.negf %272 : vector<2x128xf32>
    %274 = math.exp %273 : vector<2x128xf32>
    %cst_86 = arith.constant 1.000000e+00 : f32
    %275 = vector.broadcast %cst_86 : f32 to vector<2x128xf32>
    %276 = arith.addf %275, %274 : vector<2x128xf32>
    %277 = arith.divf %275, %276 : vector<2x128xf32>
    %278 = vector.extract_strided_slice %263 {offsets = [0, 128], sizes = [2, 128], strides = [1, 1]} : vector<2x384xf32> to vector<2x128xf32>
    %279 = vector.extract_strided_slice %269 {offsets = [0, 128], sizes = [2, 128], strides = [1, 1]} : vector<2x384xf32> to vector<2x128xf32>
    %280 = arith.addf %278, %279 : vector<2x128xf32>
    %281 = arith.negf %280 : vector<2x128xf32>
    %282 = math.exp %281 : vector<2x128xf32>
    %cst_87 = arith.constant 1.000000e+00 : f32
    %283 = vector.broadcast %cst_87 : f32 to vector<2x128xf32>
    %284 = arith.addf %283, %282 : vector<2x128xf32>
    %285 = arith.divf %283, %284 : vector<2x128xf32>
    %286 = vector.extract_strided_slice %263 {offsets = [0, 256], sizes = [2, 128], strides = [1, 1]} : vector<2x384xf32> to vector<2x128xf32>
    %287 = vector.extract_strided_slice %269 {offsets = [0, 256], sizes = [2, 128], strides = [1, 1]} : vector<2x384xf32> to vector<2x128xf32>
    %288 = arith.mulf %277, %287 : vector<2x128xf32>
    %289 = arith.addf %286, %288 : vector<2x128xf32>
    %290 = math.tanh %289 : vector<2x128xf32>
    %cst_88 = arith.constant 1.000000e+00 : f32
    %291 = vector.broadcast %cst_88 : f32 to vector<2x128xf32>
    %292 = arith.subf %291, %285 : vector<2x128xf32>
    %293 = arith.mulf %292, %290 : vector<2x128xf32>
    %294 = arith.mulf %285, %224 : vector<2x128xf32>
    %295 = arith.addf %293, %294 : vector<2x128xf32>
    %296 = arith.truncf %224 : vector<2x128xf32> to vector<2x128xbf16>
    %c0_89 = arith.constant 0 : index
    %c0_90 = arith.constant 0 : index
    %297 = vector.load %arg6[%c0_89, %c0_90] : memref<128x384xbf16, #tpu.memory_space<vmem>>, vector<128x384xbf16>
    %cst_91 = arith.constant dense<0.000000e+00> : vector<2x384xf32>
    %298 = tpu.matmul %296, %297, %cst_91 {dimension_numbers = #tpu.dot_dimension_numbers<[1], [0], [0], [1], [0, 0, 1, 1], [], []>} : vector<2x128xbf16>, vector<128x384xbf16>, vector<2x384xf32> -> vector<2x384xf32>
    %c0_92 = arith.constant 0 : index
    %c0_93 = arith.constant 0 : index
    %299 = vector.load %arg8[%c0_92, %c0_93] : memref<1x384xf32, #tpu.memory_space<vmem>>, vector<1x384xf32>
    %300 = vector.broadcast %299 : vector<1x384xf32> to vector<2x384xf32>
    %301 = arith.addf %298, %300 : vector<2x384xf32>
    %302 = arith.truncf %262 : vector<2x128xf32> to vector<2x128xbf16>
    %c0_94 = arith.constant 0 : index
    %c0_95 = arith.constant 0 : index
    %303 = vector.load %arg7[%c0_94, %c0_95] : memref<128x384xbf16, #tpu.memory_space<vmem>>, vector<128x384xbf16>
    %cst_96 = arith.constant dense<0.000000e+00> : vector<2x384xf32>
    %304 = tpu.matmul %302, %303, %cst_96 {dimension_numbers = #tpu.dot_dimension_numbers<[1], [0], [0], [1], [0, 0, 1, 1], [], []>} : vector<2x128xbf16>, vector<128x384xbf16>, vector<2x384xf32> -> vector<2x384xf32>
    %c0_97 = arith.constant 0 : index
    %c0_98 = arith.constant 0 : index
    %305 = vector.load %arg9[%c0_97, %c0_98] : memref<1x384xf32, #tpu.memory_space<vmem>>, vector<1x384xf32>
    %306 = vector.broadcast %305 : vector<1x384xf32> to vector<2x384xf32>
    %307 = arith.addf %304, %306 : vector<2x384xf32>
    %308 = vector.extract_strided_slice %301 {offsets = [0, 0], sizes = [2, 128], strides = [1, 1]} : vector<2x384xf32> to vector<2x128xf32>
    %309 = vector.extract_strided_slice %307 {offsets = [0, 0], sizes = [2, 128], strides = [1, 1]} : vector<2x384xf32> to vector<2x128xf32>
    %310 = arith.addf %308, %309 : vector<2x128xf32>
    %311 = arith.negf %310 : vector<2x128xf32>
    %312 = math.exp %311 : vector<2x128xf32>
    %cst_99 = arith.constant 1.000000e+00 : f32
    %313 = vector.broadcast %cst_99 : f32 to vector<2x128xf32>
    %314 = arith.addf %313, %312 : vector<2x128xf32>
    %315 = arith.divf %313, %314 : vector<2x128xf32>
    %316 = vector.extract_strided_slice %301 {offsets = [0, 128], sizes = [2, 128], strides = [1, 1]} : vector<2x384xf32> to vector<2x128xf32>
    %317 = vector.extract_strided_slice %307 {offsets = [0, 128], sizes = [2, 128], strides = [1, 1]} : vector<2x384xf32> to vector<2x128xf32>
    %318 = arith.addf %316, %317 : vector<2x128xf32>
    %319 = arith.negf %318 : vector<2x128xf32>
    %320 = math.exp %319 : vector<2x128xf32>
    %cst_100 = arith.constant 1.000000e+00 : f32
    %321 = vector.broadcast %cst_100 : f32 to vector<2x128xf32>
    %322 = arith.addf %321, %320 : vector<2x128xf32>
    %323 = arith.divf %321, %322 : vector<2x128xf32>
    %324 = vector.extract_strided_slice %301 {offsets = [0, 256], sizes = [2, 128], strides = [1, 1]} : vector<2x384xf32> to vector<2x128xf32>
    %325 = vector.extract_strided_slice %307 {offsets = [0, 256], sizes = [2, 128], strides = [1, 1]} : vector<2x384xf32> to vector<2x128xf32>
    %326 = arith.mulf %315, %325 : vector<2x128xf32>
    %327 = arith.addf %324, %326 : vector<2x128xf32>
    %328 = math.tanh %327 : vector<2x128xf32>
    %cst_101 = arith.constant 1.000000e+00 : f32
    %329 = vector.broadcast %cst_101 : f32 to vector<2x128xf32>
    %330 = arith.subf %329, %323 : vector<2x128xf32>
    %331 = arith.mulf %330, %328 : vector<2x128xf32>
    %332 = arith.mulf %323, %262 : vector<2x128xf32>
    %333 = arith.addf %331, %332 : vector<2x128xf32>
    %334 = vector.extract_strided_slice %14 {offsets = [10, 0], sizes = [2, 384], strides = [1, 1]} : vector<16x384xf32> to vector<2x384xf32>
    %335 = arith.truncf %295 : vector<2x128xf32> to vector<2x128xbf16>
    %c0_102 = arith.constant 0 : index
    %c0_103 = arith.constant 0 : index
    %336 = vector.load %arg3[%c0_102, %c0_103] : memref<128x384xbf16, #tpu.memory_space<vmem>>, vector<128x384xbf16>
    %cst_104 = arith.constant dense<0.000000e+00> : vector<2x384xf32>
    %337 = tpu.matmul %335, %336, %cst_104 {dimension_numbers = #tpu.dot_dimension_numbers<[1], [0], [0], [1], [0, 0, 1, 1], [], []>} : vector<2x128xbf16>, vector<128x384xbf16>, vector<2x384xf32> -> vector<2x384xf32>
    %c0_105 = arith.constant 0 : index
    %c0_106 = arith.constant 0 : index
    %338 = vector.load %arg5[%c0_105, %c0_106] : memref<1x384xf32, #tpu.memory_space<vmem>>, vector<1x384xf32>
    %339 = vector.broadcast %338 : vector<1x384xf32> to vector<2x384xf32>
    %340 = arith.addf %337, %339 : vector<2x384xf32>
    %341 = vector.extract_strided_slice %334 {offsets = [0, 0], sizes = [2, 128], strides = [1, 1]} : vector<2x384xf32> to vector<2x128xf32>
    %342 = vector.extract_strided_slice %340 {offsets = [0, 0], sizes = [2, 128], strides = [1, 1]} : vector<2x384xf32> to vector<2x128xf32>
    %343 = arith.addf %341, %342 : vector<2x128xf32>
    %344 = arith.negf %343 : vector<2x128xf32>
    %345 = math.exp %344 : vector<2x128xf32>
    %cst_107 = arith.constant 1.000000e+00 : f32
    %346 = vector.broadcast %cst_107 : f32 to vector<2x128xf32>
    %347 = arith.addf %346, %345 : vector<2x128xf32>
    %348 = arith.divf %346, %347 : vector<2x128xf32>
    %349 = vector.extract_strided_slice %334 {offsets = [0, 128], sizes = [2, 128], strides = [1, 1]} : vector<2x384xf32> to vector<2x128xf32>
    %350 = vector.extract_strided_slice %340 {offsets = [0, 128], sizes = [2, 128], strides = [1, 1]} : vector<2x384xf32> to vector<2x128xf32>
    %351 = arith.addf %349, %350 : vector<2x128xf32>
    %352 = arith.negf %351 : vector<2x128xf32>
    %353 = math.exp %352 : vector<2x128xf32>
    %cst_108 = arith.constant 1.000000e+00 : f32
    %354 = vector.broadcast %cst_108 : f32 to vector<2x128xf32>
    %355 = arith.addf %354, %353 : vector<2x128xf32>
    %356 = arith.divf %354, %355 : vector<2x128xf32>
    %357 = vector.extract_strided_slice %334 {offsets = [0, 256], sizes = [2, 128], strides = [1, 1]} : vector<2x384xf32> to vector<2x128xf32>
    %358 = vector.extract_strided_slice %340 {offsets = [0, 256], sizes = [2, 128], strides = [1, 1]} : vector<2x384xf32> to vector<2x128xf32>
    %359 = arith.mulf %348, %358 : vector<2x128xf32>
    %360 = arith.addf %357, %359 : vector<2x128xf32>
    %361 = math.tanh %360 : vector<2x128xf32>
    %cst_109 = arith.constant 1.000000e+00 : f32
    %362 = vector.broadcast %cst_109 : f32 to vector<2x128xf32>
    %363 = arith.subf %362, %356 : vector<2x128xf32>
    %364 = arith.mulf %363, %361 : vector<2x128xf32>
    %365 = arith.mulf %356, %295 : vector<2x128xf32>
    %366 = arith.addf %364, %365 : vector<2x128xf32>
    %367 = arith.truncf %295 : vector<2x128xf32> to vector<2x128xbf16>
    %c0_110 = arith.constant 0 : index
    %c0_111 = arith.constant 0 : index
    %368 = vector.load %arg6[%c0_110, %c0_111] : memref<128x384xbf16, #tpu.memory_space<vmem>>, vector<128x384xbf16>
    %cst_112 = arith.constant dense<0.000000e+00> : vector<2x384xf32>
    %369 = tpu.matmul %367, %368, %cst_112 {dimension_numbers = #tpu.dot_dimension_numbers<[1], [0], [0], [1], [0, 0, 1, 1], [], []>} : vector<2x128xbf16>, vector<128x384xbf16>, vector<2x384xf32> -> vector<2x384xf32>
    %c0_113 = arith.constant 0 : index
    %c0_114 = arith.constant 0 : index
    %370 = vector.load %arg8[%c0_113, %c0_114] : memref<1x384xf32, #tpu.memory_space<vmem>>, vector<1x384xf32>
    %371 = vector.broadcast %370 : vector<1x384xf32> to vector<2x384xf32>
    %372 = arith.addf %369, %371 : vector<2x384xf32>
    %373 = arith.truncf %333 : vector<2x128xf32> to vector<2x128xbf16>
    %c0_115 = arith.constant 0 : index
    %c0_116 = arith.constant 0 : index
    %374 = vector.load %arg7[%c0_115, %c0_116] : memref<128x384xbf16, #tpu.memory_space<vmem>>, vector<128x384xbf16>
    %cst_117 = arith.constant dense<0.000000e+00> : vector<2x384xf32>
    %375 = tpu.matmul %373, %374, %cst_117 {dimension_numbers = #tpu.dot_dimension_numbers<[1], [0], [0], [1], [0, 0, 1, 1], [], []>} : vector<2x128xbf16>, vector<128x384xbf16>, vector<2x384xf32> -> vector<2x384xf32>
    %c0_118 = arith.constant 0 : index
    %c0_119 = arith.constant 0 : index
    %376 = vector.load %arg9[%c0_118, %c0_119] : memref<1x384xf32, #tpu.memory_space<vmem>>, vector<1x384xf32>
    %377 = vector.broadcast %376 : vector<1x384xf32> to vector<2x384xf32>
    %378 = arith.addf %375, %377 : vector<2x384xf32>
    %379 = vector.extract_strided_slice %372 {offsets = [0, 0], sizes = [2, 128], strides = [1, 1]} : vector<2x384xf32> to vector<2x128xf32>
    %380 = vector.extract_strided_slice %378 {offsets = [0, 0], sizes = [2, 128], strides = [1, 1]} : vector<2x384xf32> to vector<2x128xf32>
    %381 = arith.addf %379, %380 : vector<2x128xf32>
    %382 = arith.negf %381 : vector<2x128xf32>
    %383 = math.exp %382 : vector<2x128xf32>
    %cst_120 = arith.constant 1.000000e+00 : f32
    %384 = vector.broadcast %cst_120 : f32 to vector<2x128xf32>
    %385 = arith.addf %384, %383 : vector<2x128xf32>
    %386 = arith.divf %384, %385 : vector<2x128xf32>
    %387 = vector.extract_strided_slice %372 {offsets = [0, 128], sizes = [2, 128], strides = [1, 1]} : vector<2x384xf32> to vector<2x128xf32>
    %388 = vector.extract_strided_slice %378 {offsets = [0, 128], sizes = [2, 128], strides = [1, 1]} : vector<2x384xf32> to vector<2x128xf32>
    %389 = arith.addf %387, %388 : vector<2x128xf32>
    %390 = arith.negf %389 : vector<2x128xf32>
    %391 = math.exp %390 : vector<2x128xf32>
    %cst_121 = arith.constant 1.000000e+00 : f32
    %392 = vector.broadcast %cst_121 : f32 to vector<2x128xf32>
    %393 = arith.addf %392, %391 : vector<2x128xf32>
    %394 = arith.divf %392, %393 : vector<2x128xf32>
    %395 = vector.extract_strided_slice %372 {offsets = [0, 256], sizes = [2, 128], strides = [1, 1]} : vector<2x384xf32> to vector<2x128xf32>
    %396 = vector.extract_strided_slice %378 {offsets = [0, 256], sizes = [2, 128], strides = [1, 1]} : vector<2x384xf32> to vector<2x128xf32>
    %397 = arith.mulf %386, %396 : vector<2x128xf32>
    %398 = arith.addf %395, %397 : vector<2x128xf32>
    %399 = math.tanh %398 : vector<2x128xf32>
    %cst_122 = arith.constant 1.000000e+00 : f32
    %400 = vector.broadcast %cst_122 : f32 to vector<2x128xf32>
    %401 = arith.subf %400, %394 : vector<2x128xf32>
    %402 = arith.mulf %401, %399 : vector<2x128xf32>
    %403 = arith.mulf %394, %333 : vector<2x128xf32>
    %404 = arith.addf %402, %403 : vector<2x128xf32>
    %405 = vector.extract_strided_slice %14 {offsets = [12, 0], sizes = [2, 384], strides = [1, 1]} : vector<16x384xf32> to vector<2x384xf32>
    %406 = arith.truncf %366 : vector<2x128xf32> to vector<2x128xbf16>
    %c0_123 = arith.constant 0 : index
    %c0_124 = arith.constant 0 : index
    %407 = vector.load %arg3[%c0_123, %c0_124] : memref<128x384xbf16, #tpu.memory_space<vmem>>, vector<128x384xbf16>
    %cst_125 = arith.constant dense<0.000000e+00> : vector<2x384xf32>
    %408 = tpu.matmul %406, %407, %cst_125 {dimension_numbers = #tpu.dot_dimension_numbers<[1], [0], [0], [1], [0, 0, 1, 1], [], []>} : vector<2x128xbf16>, vector<128x384xbf16>, vector<2x384xf32> -> vector<2x384xf32>
    %c0_126 = arith.constant 0 : index
    %c0_127 = arith.constant 0 : index
    %409 = vector.load %arg5[%c0_126, %c0_127] : memref<1x384xf32, #tpu.memory_space<vmem>>, vector<1x384xf32>
    %410 = vector.broadcast %409 : vector<1x384xf32> to vector<2x384xf32>
    %411 = arith.addf %408, %410 : vector<2x384xf32>
    %412 = vector.extract_strided_slice %405 {offsets = [0, 0], sizes = [2, 128], strides = [1, 1]} : vector<2x384xf32> to vector<2x128xf32>
    %413 = vector.extract_strided_slice %411 {offsets = [0, 0], sizes = [2, 128], strides = [1, 1]} : vector<2x384xf32> to vector<2x128xf32>
    %414 = arith.addf %412, %413 : vector<2x128xf32>
    %415 = arith.negf %414 : vector<2x128xf32>
    %416 = math.exp %415 : vector<2x128xf32>
    %cst_128 = arith.constant 1.000000e+00 : f32
    %417 = vector.broadcast %cst_128 : f32 to vector<2x128xf32>
    %418 = arith.addf %417, %416 : vector<2x128xf32>
    %419 = arith.divf %417, %418 : vector<2x128xf32>
    %420 = vector.extract_strided_slice %405 {offsets = [0, 128], sizes = [2, 128], strides = [1, 1]} : vector<2x384xf32> to vector<2x128xf32>
    %421 = vector.extract_strided_slice %411 {offsets = [0, 128], sizes = [2, 128], strides = [1, 1]} : vector<2x384xf32> to vector<2x128xf32>
    %422 = arith.addf %420, %421 : vector<2x128xf32>
    %423 = arith.negf %422 : vector<2x128xf32>
    %424 = math.exp %423 : vector<2x128xf32>
    %cst_129 = arith.constant 1.000000e+00 : f32
    %425 = vector.broadcast %cst_129 : f32 to vector<2x128xf32>
    %426 = arith.addf %425, %424 : vector<2x128xf32>
    %427 = arith.divf %425, %426 : vector<2x128xf32>
    %428 = vector.extract_strided_slice %405 {offsets = [0, 256], sizes = [2, 128], strides = [1, 1]} : vector<2x384xf32> to vector<2x128xf32>
    %429 = vector.extract_strided_slice %411 {offsets = [0, 256], sizes = [2, 128], strides = [1, 1]} : vector<2x384xf32> to vector<2x128xf32>
    %430 = arith.mulf %419, %429 : vector<2x128xf32>
    %431 = arith.addf %428, %430 : vector<2x128xf32>
    %432 = math.tanh %431 : vector<2x128xf32>
    %cst_130 = arith.constant 1.000000e+00 : f32
    %433 = vector.broadcast %cst_130 : f32 to vector<2x128xf32>
    %434 = arith.subf %433, %427 : vector<2x128xf32>
    %435 = arith.mulf %434, %432 : vector<2x128xf32>
    %436 = arith.mulf %427, %366 : vector<2x128xf32>
    %437 = arith.addf %435, %436 : vector<2x128xf32>
    %438 = arith.truncf %366 : vector<2x128xf32> to vector<2x128xbf16>
    %c0_131 = arith.constant 0 : index
    %c0_132 = arith.constant 0 : index
    %439 = vector.load %arg6[%c0_131, %c0_132] : memref<128x384xbf16, #tpu.memory_space<vmem>>, vector<128x384xbf16>
    %cst_133 = arith.constant dense<0.000000e+00> : vector<2x384xf32>
    %440 = tpu.matmul %438, %439, %cst_133 {dimension_numbers = #tpu.dot_dimension_numbers<[1], [0], [0], [1], [0, 0, 1, 1], [], []>} : vector<2x128xbf16>, vector<128x384xbf16>, vector<2x384xf32> -> vector<2x384xf32>
    %c0_134 = arith.constant 0 : index
    %c0_135 = arith.constant 0 : index
    %441 = vector.load %arg8[%c0_134, %c0_135] : memref<1x384xf32, #tpu.memory_space<vmem>>, vector<1x384xf32>
    %442 = vector.broadcast %441 : vector<1x384xf32> to vector<2x384xf32>
    %443 = arith.addf %440, %442 : vector<2x384xf32>
    %444 = arith.truncf %404 : vector<2x128xf32> to vector<2x128xbf16>
    %c0_136 = arith.constant 0 : index
    %c0_137 = arith.constant 0 : index
    %445 = vector.load %arg7[%c0_136, %c0_137] : memref<128x384xbf16, #tpu.memory_space<vmem>>, vector<128x384xbf16>
    %cst_138 = arith.constant dense<0.000000e+00> : vector<2x384xf32>
    %446 = tpu.matmul %444, %445, %cst_138 {dimension_numbers = #tpu.dot_dimension_numbers<[1], [0], [0], [1], [0, 0, 1, 1], [], []>} : vector<2x128xbf16>, vector<128x384xbf16>, vector<2x384xf32> -> vector<2x384xf32>
    %c0_139 = arith.constant 0 : index
    %c0_140 = arith.constant 0 : index
    %447 = vector.load %arg9[%c0_139, %c0_140] : memref<1x384xf32, #tpu.memory_space<vmem>>, vector<1x384xf32>
    %448 = vector.broadcast %447 : vector<1x384xf32> to vector<2x384xf32>
    %449 = arith.addf %446, %448 : vector<2x384xf32>
    %450 = vector.extract_strided_slice %443 {offsets = [0, 0], sizes = [2, 128], strides = [1, 1]} : vector<2x384xf32> to vector<2x128xf32>
    %451 = vector.extract_strided_slice %449 {offsets = [0, 0], sizes = [2, 128], strides = [1, 1]} : vector<2x384xf32> to vector<2x128xf32>
    %452 = arith.addf %450, %451 : vector<2x128xf32>
    %453 = arith.negf %452 : vector<2x128xf32>
    %454 = math.exp %453 : vector<2x128xf32>
    %cst_141 = arith.constant 1.000000e+00 : f32
    %455 = vector.broadcast %cst_141 : f32 to vector<2x128xf32>
    %456 = arith.addf %455, %454 : vector<2x128xf32>
    %457 = arith.divf %455, %456 : vector<2x128xf32>
    %458 = vector.extract_strided_slice %443 {offsets = [0, 128], sizes = [2, 128], strides = [1, 1]} : vector<2x384xf32> to vector<2x128xf32>
    %459 = vector.extract_strided_slice %449 {offsets = [0, 128], sizes = [2, 128], strides = [1, 1]} : vector<2x384xf32> to vector<2x128xf32>
    %460 = arith.addf %458, %459 : vector<2x128xf32>
    %461 = arith.negf %460 : vector<2x128xf32>
    %462 = math.exp %461 : vector<2x128xf32>
    %cst_142 = arith.constant 1.000000e+00 : f32
    %463 = vector.broadcast %cst_142 : f32 to vector<2x128xf32>
    %464 = arith.addf %463, %462 : vector<2x128xf32>
    %465 = arith.divf %463, %464 : vector<2x128xf32>
    %466 = vector.extract_strided_slice %443 {offsets = [0, 256], sizes = [2, 128], strides = [1, 1]} : vector<2x384xf32> to vector<2x128xf32>
    %467 = vector.extract_strided_slice %449 {offsets = [0, 256], sizes = [2, 128], strides = [1, 1]} : vector<2x384xf32> to vector<2x128xf32>
    %468 = arith.mulf %457, %467 : vector<2x128xf32>
    %469 = arith.addf %466, %468 : vector<2x128xf32>
    %470 = math.tanh %469 : vector<2x128xf32>
    %cst_143 = arith.constant 1.000000e+00 : f32
    %471 = vector.broadcast %cst_143 : f32 to vector<2x128xf32>
    %472 = arith.subf %471, %465 : vector<2x128xf32>
    %473 = arith.mulf %472, %470 : vector<2x128xf32>
    %474 = arith.mulf %465, %404 : vector<2x128xf32>
    %475 = arith.addf %473, %474 : vector<2x128xf32>
    %476 = vector.extract_strided_slice %14 {offsets = [14, 0], sizes = [2, 384], strides = [1, 1]} : vector<16x384xf32> to vector<2x384xf32>
    %477 = arith.truncf %437 : vector<2x128xf32> to vector<2x128xbf16>
    %c0_144 = arith.constant 0 : index
    %c0_145 = arith.constant 0 : index
    %478 = vector.load %arg3[%c0_144, %c0_145] : memref<128x384xbf16, #tpu.memory_space<vmem>>, vector<128x384xbf16>
    %cst_146 = arith.constant dense<0.000000e+00> : vector<2x384xf32>
    %479 = tpu.matmul %477, %478, %cst_146 {dimension_numbers = #tpu.dot_dimension_numbers<[1], [0], [0], [1], [0, 0, 1, 1], [], []>} : vector<2x128xbf16>, vector<128x384xbf16>, vector<2x384xf32> -> vector<2x384xf32>
    %c0_147 = arith.constant 0 : index
    %c0_148 = arith.constant 0 : index
    %480 = vector.load %arg5[%c0_147, %c0_148] : memref<1x384xf32, #tpu.memory_space<vmem>>, vector<1x384xf32>
    %481 = vector.broadcast %480 : vector<1x384xf32> to vector<2x384xf32>
    %482 = arith.addf %479, %481 : vector<2x384xf32>
    %483 = vector.extract_strided_slice %476 {offsets = [0, 0], sizes = [2, 128], strides = [1, 1]} : vector<2x384xf32> to vector<2x128xf32>
    %484 = vector.extract_strided_slice %482 {offsets = [0, 0], sizes = [2, 128], strides = [1, 1]} : vector<2x384xf32> to vector<2x128xf32>
    %485 = arith.addf %483, %484 : vector<2x128xf32>
    %486 = arith.negf %485 : vector<2x128xf32>
    %487 = math.exp %486 : vector<2x128xf32>
    %cst_149 = arith.constant 1.000000e+00 : f32
    %488 = vector.broadcast %cst_149 : f32 to vector<2x128xf32>
    %489 = arith.addf %488, %487 : vector<2x128xf32>
    %490 = arith.divf %488, %489 : vector<2x128xf32>
    %491 = vector.extract_strided_slice %476 {offsets = [0, 128], sizes = [2, 128], strides = [1, 1]} : vector<2x384xf32> to vector<2x128xf32>
    %492 = vector.extract_strided_slice %482 {offsets = [0, 128], sizes = [2, 128], strides = [1, 1]} : vector<2x384xf32> to vector<2x128xf32>
    %493 = arith.addf %491, %492 : vector<2x128xf32>
    %494 = arith.negf %493 : vector<2x128xf32>
    %495 = math.exp %494 : vector<2x128xf32>
    %cst_150 = arith.constant 1.000000e+00 : f32
    %496 = vector.broadcast %cst_150 : f32 to vector<2x128xf32>
    %497 = arith.addf %496, %495 : vector<2x128xf32>
    %498 = arith.divf %496, %497 : vector<2x128xf32>
    %499 = vector.extract_strided_slice %476 {offsets = [0, 256], sizes = [2, 128], strides = [1, 1]} : vector<2x384xf32> to vector<2x128xf32>
    %500 = vector.extract_strided_slice %482 {offsets = [0, 256], sizes = [2, 128], strides = [1, 1]} : vector<2x384xf32> to vector<2x128xf32>
    %501 = arith.mulf %490, %500 : vector<2x128xf32>
    %502 = arith.addf %499, %501 : vector<2x128xf32>
    %503 = math.tanh %502 : vector<2x128xf32>
    %cst_151 = arith.constant 1.000000e+00 : f32
    %504 = vector.broadcast %cst_151 : f32 to vector<2x128xf32>
    %505 = arith.subf %504, %498 : vector<2x128xf32>
    %506 = arith.mulf %505, %503 : vector<2x128xf32>
    %507 = arith.mulf %498, %437 : vector<2x128xf32>
    %508 = arith.addf %506, %507 : vector<2x128xf32>
    %509 = arith.truncf %437 : vector<2x128xf32> to vector<2x128xbf16>
    %c0_152 = arith.constant 0 : index
    %c0_153 = arith.constant 0 : index
    %510 = vector.load %arg6[%c0_152, %c0_153] : memref<128x384xbf16, #tpu.memory_space<vmem>>, vector<128x384xbf16>
    %cst_154 = arith.constant dense<0.000000e+00> : vector<2x384xf32>
    %511 = tpu.matmul %509, %510, %cst_154 {dimension_numbers = #tpu.dot_dimension_numbers<[1], [0], [0], [1], [0, 0, 1, 1], [], []>} : vector<2x128xbf16>, vector<128x384xbf16>, vector<2x384xf32> -> vector<2x384xf32>
    %c0_155 = arith.constant 0 : index
    %c0_156 = arith.constant 0 : index
    %512 = vector.load %arg8[%c0_155, %c0_156] : memref<1x384xf32, #tpu.memory_space<vmem>>, vector<1x384xf32>
    %513 = vector.broadcast %512 : vector<1x384xf32> to vector<2x384xf32>
    %514 = arith.addf %511, %513 : vector<2x384xf32>
    %515 = arith.truncf %475 : vector<2x128xf32> to vector<2x128xbf16>
    %c0_157 = arith.constant 0 : index
    %c0_158 = arith.constant 0 : index
    %516 = vector.load %arg7[%c0_157, %c0_158] : memref<128x384xbf16, #tpu.memory_space<vmem>>, vector<128x384xbf16>
    %cst_159 = arith.constant dense<0.000000e+00> : vector<2x384xf32>
    %517 = tpu.matmul %515, %516, %cst_159 {dimension_numbers = #tpu.dot_dimension_numbers<[1], [0], [0], [1], [0, 0, 1, 1], [], []>} : vector<2x128xbf16>, vector<128x384xbf16>, vector<2x384xf32> -> vector<2x384xf32>
    %c0_160 = arith.constant 0 : index
    %c0_161 = arith.constant 0 : index
    %518 = vector.load %arg9[%c0_160, %c0_161] : memref<1x384xf32, #tpu.memory_space<vmem>>, vector<1x384xf32>
    %519 = vector.broadcast %518 : vector<1x384xf32> to vector<2x384xf32>
    %520 = arith.addf %517, %519 : vector<2x384xf32>
    %521 = vector.extract_strided_slice %514 {offsets = [0, 0], sizes = [2, 128], strides = [1, 1]} : vector<2x384xf32> to vector<2x128xf32>
    %522 = vector.extract_strided_slice %520 {offsets = [0, 0], sizes = [2, 128], strides = [1, 1]} : vector<2x384xf32> to vector<2x128xf32>
    %523 = arith.addf %521, %522 : vector<2x128xf32>
    %524 = arith.negf %523 : vector<2x128xf32>
    %525 = math.exp %524 : vector<2x128xf32>
    %cst_162 = arith.constant 1.000000e+00 : f32
    %526 = vector.broadcast %cst_162 : f32 to vector<2x128xf32>
    %527 = arith.addf %526, %525 : vector<2x128xf32>
    %528 = arith.divf %526, %527 : vector<2x128xf32>
    %529 = vector.extract_strided_slice %514 {offsets = [0, 128], sizes = [2, 128], strides = [1, 1]} : vector<2x384xf32> to vector<2x128xf32>
    %530 = vector.extract_strided_slice %520 {offsets = [0, 128], sizes = [2, 128], strides = [1, 1]} : vector<2x384xf32> to vector<2x128xf32>
    %531 = arith.addf %529, %530 : vector<2x128xf32>
    %532 = arith.negf %531 : vector<2x128xf32>
    %533 = math.exp %532 : vector<2x128xf32>
    %cst_163 = arith.constant 1.000000e+00 : f32
    %534 = vector.broadcast %cst_163 : f32 to vector<2x128xf32>
    %535 = arith.addf %534, %533 : vector<2x128xf32>
    %536 = arith.divf %534, %535 : vector<2x128xf32>
    %537 = vector.extract_strided_slice %514 {offsets = [0, 256], sizes = [2, 128], strides = [1, 1]} : vector<2x384xf32> to vector<2x128xf32>
    %538 = vector.extract_strided_slice %520 {offsets = [0, 256], sizes = [2, 128], strides = [1, 1]} : vector<2x384xf32> to vector<2x128xf32>
    %539 = arith.mulf %528, %538 : vector<2x128xf32>
    %540 = arith.addf %537, %539 : vector<2x128xf32>
    %541 = math.tanh %540 : vector<2x128xf32>
    %cst_164 = arith.constant 1.000000e+00 : f32
    %542 = vector.broadcast %cst_164 : f32 to vector<2x128xf32>
    %543 = arith.subf %542, %536 : vector<2x128xf32>
    %544 = arith.mulf %543, %541 : vector<2x128xf32>
    %545 = arith.mulf %536, %475 : vector<2x128xf32>
    %546 = arith.addf %544, %545 : vector<2x128xf32>
    %547 = arith.truncf %508 : vector<2x128xf32> to vector<2x128xbf16>
    %c0_165 = arith.constant 0 : index
    %c0_166 = arith.constant 0 : index
    %548 = vector.load %arg6[%c0_165, %c0_166] : memref<128x384xbf16, #tpu.memory_space<vmem>>, vector<128x384xbf16>
    %cst_167 = arith.constant dense<0.000000e+00> : vector<2x384xf32>
    %549 = tpu.matmul %547, %548, %cst_167 {dimension_numbers = #tpu.dot_dimension_numbers<[1], [0], [0], [1], [0, 0, 1, 1], [], []>} : vector<2x128xbf16>, vector<128x384xbf16>, vector<2x384xf32> -> vector<2x384xf32>
    %c0_168 = arith.constant 0 : index
    %c0_169 = arith.constant 0 : index
    %550 = vector.load %arg8[%c0_168, %c0_169] : memref<1x384xf32, #tpu.memory_space<vmem>>, vector<1x384xf32>
    %551 = vector.broadcast %550 : vector<1x384xf32> to vector<2x384xf32>
    %552 = arith.addf %549, %551 : vector<2x384xf32>
    %553 = arith.truncf %546 : vector<2x128xf32> to vector<2x128xbf16>
    %c0_170 = arith.constant 0 : index
    %c0_171 = arith.constant 0 : index
    %554 = vector.load %arg7[%c0_170, %c0_171] : memref<128x384xbf16, #tpu.memory_space<vmem>>, vector<128x384xbf16>
    %cst_172 = arith.constant dense<0.000000e+00> : vector<2x384xf32>
    %555 = tpu.matmul %553, %554, %cst_172 {dimension_numbers = #tpu.dot_dimension_numbers<[1], [0], [0], [1], [0, 0, 1, 1], [], []>} : vector<2x128xbf16>, vector<128x384xbf16>, vector<2x384xf32> -> vector<2x384xf32>
    %c0_173 = arith.constant 0 : index
    %c0_174 = arith.constant 0 : index
    %556 = vector.load %arg9[%c0_173, %c0_174] : memref<1x384xf32, #tpu.memory_space<vmem>>, vector<1x384xf32>
    %557 = vector.broadcast %556 : vector<1x384xf32> to vector<2x384xf32>
    %558 = arith.addf %555, %557 : vector<2x384xf32>
    %559 = vector.extract_strided_slice %552 {offsets = [0, 0], sizes = [2, 128], strides = [1, 1]} : vector<2x384xf32> to vector<2x128xf32>
    %560 = vector.extract_strided_slice %558 {offsets = [0, 0], sizes = [2, 128], strides = [1, 1]} : vector<2x384xf32> to vector<2x128xf32>
    %561 = arith.addf %559, %560 : vector<2x128xf32>
    %562 = arith.negf %561 : vector<2x128xf32>
    %563 = math.exp %562 : vector<2x128xf32>
    %cst_175 = arith.constant 1.000000e+00 : f32
    %564 = vector.broadcast %cst_175 : f32 to vector<2x128xf32>
    %565 = arith.addf %564, %563 : vector<2x128xf32>
    %566 = arith.divf %564, %565 : vector<2x128xf32>
    %567 = vector.extract_strided_slice %552 {offsets = [0, 128], sizes = [2, 128], strides = [1, 1]} : vector<2x384xf32> to vector<2x128xf32>
    %568 = vector.extract_strided_slice %558 {offsets = [0, 128], sizes = [2, 128], strides = [1, 1]} : vector<2x384xf32> to vector<2x128xf32>
    %569 = arith.addf %567, %568 : vector<2x128xf32>
    %570 = arith.negf %569 : vector<2x128xf32>
    %571 = math.exp %570 : vector<2x128xf32>
    %cst_176 = arith.constant 1.000000e+00 : f32
    %572 = vector.broadcast %cst_176 : f32 to vector<2x128xf32>
    %573 = arith.addf %572, %571 : vector<2x128xf32>
    %574 = arith.divf %572, %573 : vector<2x128xf32>
    %575 = vector.extract_strided_slice %552 {offsets = [0, 256], sizes = [2, 128], strides = [1, 1]} : vector<2x384xf32> to vector<2x128xf32>
    %576 = vector.extract_strided_slice %558 {offsets = [0, 256], sizes = [2, 128], strides = [1, 1]} : vector<2x384xf32> to vector<2x128xf32>
    %577 = arith.mulf %566, %576 : vector<2x128xf32>
    %578 = arith.addf %575, %577 : vector<2x128xf32>
    %579 = math.tanh %578 : vector<2x128xf32>
    %cst_177 = arith.constant 1.000000e+00 : f32
    %580 = vector.broadcast %cst_177 : f32 to vector<2x128xf32>
    %581 = arith.subf %580, %574 : vector<2x128xf32>
    %582 = arith.mulf %581, %579 : vector<2x128xf32>
    %583 = arith.mulf %574, %546 : vector<2x128xf32>
    %584 = arith.addf %582, %583 : vector<2x128xf32>
    %cst_178 = arith.constant 0.000000e+00 : f32
    %585 = vector.broadcast %cst_178 : f32 to vector<2x128xf32>
    %586 = arith.maximumf %584, %585 : vector<2x128xf32>
    %587 = arith.truncf %586 : vector<2x128xf32> to vector<2x128xbf16>
    %c0_179 = arith.constant 0 : index
    %c0_180 = arith.constant 0 : index
    %588 = vector.load %arg10[%c0_179, %c0_180] : memref<128x128xbf16, #tpu.memory_space<vmem>>, vector<128x128xbf16>
    %cst_181 = arith.constant dense<0.000000e+00> : vector<2x128xf32>
    %589 = tpu.matmul %587, %588, %cst_181 {dimension_numbers = #tpu.dot_dimension_numbers<[1], [0], [0], [1], [0, 0, 1, 1], [], []>} : vector<2x128xbf16>, vector<128x128xbf16>, vector<2x128xf32> -> vector<2x128xf32>
    %c0_182 = arith.constant 0 : index
    %c0_183 = arith.constant 0 : index
    %590 = vector.load %arg11[%c0_182, %c0_183] : memref<1x128xf32, #tpu.memory_space<vmem>>, vector<1x128xf32>
    %591 = vector.broadcast %590 : vector<1x128xf32> to vector<2x128xf32>
    %592 = arith.addf %589, %591 : vector<2x128xf32>
    %c0_184 = arith.constant 0 : index
    %c0_185 = arith.constant 0 : index
    %593 = vector.load %arg12[%c0_184, %c0_185] : memref<2x128xf32, #tpu.memory_space<vmem>>, vector<2x128xf32>
    tpu.vector_store %arg12[%c0_184, %c0_185], %592 {strides = array<i32>} : memref<2x128xf32, #tpu.memory_space<vmem>>, vector<2x128xf32>,
    return
  }
}

</mosaic_0001>

<bundles_post_ra>
// kernel: gru_model_forward.1
= control target key start
LH: loop header
LB: loop body
LE: loop exit
PB: predicated region body
PF: predicated region fallthrough
CT: control target
= control target key end

     0   :  { %v7244_v1 = vmov 0   ;;  %v7248_v2 = vmov 0.0   ;;  %vm4900_vm0 = vmmov 0   ;;  %s7231_s0 = inlined_call_operand.vmem [shape: s32[16,1], index: 0, kind: input, shape index: {}]   ;;  %s7232_s1 = inlined_call_operand.vmem [shape: bf16[64,128], index: 1, kind: input, shape index: {}]   ;;  %s7233_s2 = inlined_call_operand.vmem [shape: bf16[128,384], index: 2, kind: input, shape index: {}]   ;;  %s7234_s3 = inlined_call_operand.vmem [shape: bf16[128,384], index: 3, kind: input, shape index: {}]   ;;  %s7235_s4 = inlined_call_operand.vmem [shape: f32[1,384], index: 4, kind: input, shape index: {}]   ;;  %s7236_s5 = inlined_call_operand.vmem [shape: f32[1,384], index: 5, kind: input, shape index: {}]   ;;  %s7237_s6 = inlined_call_operand.vmem [shape: bf16[128,384], index: 6, kind: input, shape index: {}]   ;;  %s7238_s7 = inlined_call_operand.vmem [shape: bf16[128,384], index: 7, kind: input, shape index: {}]   ;;  %s7239_s8 = inlined_call_operand.vmem [shape: f32[1,384], index: 8, kind: input, shape index: {}]   ;;  %s7240_s9 = inlined_call_operand.vmem [shape: f32[1,384], index: 9, kind: input, shape index: {}]   ;;  %s7241_s10 = inlined_call_operand.vmem [shape: bf16[128,128], index: 10, kind: input, shape index: {}]   ;;  %s7242_s11 = inlined_call_operand.vmem [shape: f32[1,128], index: 11, kind: input, shape index: {}]   ;;  %s7243_s12 = inlined_call_operand.hbm [shape: f32[2,128], index: 12, kind: output, shape index: {}]  }
   0x1   :  { %v43_v0 = vld [vmem:[%s7231_s0] sm:$0xff]  ;;  %4429 = vset.pattern.permute.xlu0 %v7244_v1  ;;  %3829 = vmatprep.subr.bf16.mxu0 %v7248_v2  ;;  %v44_v4 = vld [vmem:[%s7231_s0 + $0x8] sm:$0xff]  ;;  %v4432_v6 = vld [vmem:[%s7232_s1 + $0x10] sm:$0xff]  }
   0x2   :  { %v4430_v3 = vld [vmem:[%s7232_s1] sm:$0xff]   ;;  %48 = vperm.xlu0 %4429, %v43_v0   ;;  %v4431_v5 = vld [vmem:[%s7232_s1 + $0x8] sm:$0xff]   ;;  %347 = vmatprep.mubr.bf16.mxu1 %v7244_v1  ;;  %v4433_v9 = vld [vmem:[%s7232_s1 + $0x18] sm:$0xff]  }
   0x3   :  { %3830 = vmatpush3.bf16.msra.mxu0 %v4430_v3  ;;  %3837 = vmatprep.mubr.msk.bf16.mxu0 %vm4900_vm0, %v7248_v2  ;;  %v4434_v7 = vld [vmem:[%s7233_s2 + $0x4] ss:$12 sps:$4 sm:$0xff]   ;;  %v4436_v8 = vld [vmem:[%s7233_s2] ss:$12 sps:$4 sm:$0xff]   ;;  %v4438_v10 = vld [vmem:[%s7233_s2 + $0x1c] ss:$12 sps:$4 sm:$0xff]  }
   0x4   :  { %3831 = vmatprep.subr.bf16.mxu0 %v7248_v2  ;;  %315 = vmatprep.subr.bf16.mxu1 %v4434_v7  ;;  %v4440_v11 = vld [vmem:[%s7233_s2 + $0x18] ss:$12 sps:$4 sm:$0xff]   ;;  %v4442_v12 = vld [vmem:[%s7233_s2 + $0x34] ss:$12 sps:$4 sm:$0xff]   ;;  %v4444_v13 = vld [vmem:[%s7233_s2 + $0x30] ss:$12 sps:$4 sm:$0xff]  }
   0x5   :  { %316 = vmatpush1.bf16.msra.mxu1 %v4436_v8  ;;  %v4446_v14 = vld [vmem:[%s7233_s2 + $0x4c] ss:$12 sps:$4 sm:$0xff]   ;;  %v4448_v15 = vld [vmem:[%s7233_s2 + $0x48] ss:$12 sps:$4 sm:$0xff]   ;;  %v4450_v16 = vld [vmem:[%s7233_s2 + $0x64] ss:$12 sps:$4 sm:$0xff]  }
   0x6   :  { %51 = vperm.xlu0 %4429, %v44_v4   ;;  %317 = vmatprep.subr.bf16.mxu1 %v4438_v10  ;;  %v4452_v17 = vld [vmem:[%s7233_s2 + $0x60] ss:$12 sps:$4 sm:$0xff]   ;;  %v4454_v18 = vld [vmem:[%s7233_s2 + $0x7c] ss:$12 sps:$4 sm:$0xff]   ;;  %v4456_v19 = vld [vmem:[%s7233_s2 + $0x78] ss:$12 sps:$4 sm:$0xff]  }
   0x7   :  { %3832 = vmatpush3.bf16.msra.mxu0 %v4431_v5  ;;  %v4458_v20 = vld [vmem:[%s7233_s2 + $0x94] ss:$12 sps:$4 sm:$0xff]   ;;  %v4460_v21 = vld [vmem:[%s7233_s2 + $0x90] ss:$12 sps:$4 sm:$0xff]  }
   0x8   :  { %3833 = vmatprep.subr.bf16.mxu0 %v7248_v2 }
   0x9   :  { %318 = vmatpush1.bf16.msra.mxu1 %v4440_v11 }
   0xa   :  { %319 = vmatprep.subr.bf16.mxu1 %v4442_v12 }
   0xb   :  { %3834 = vmatpush3.bf16.msra.mxu0 %v4432_v6 }
   0xc   :  { %3835 = vmatprep.subr.bf16.mxu0 %v7248_v2 }
   0xd   :  { %320 = vmatpush1.bf16.msra.mxu1 %v4444_v13 }
   0xe   :  { %321 = vmatprep.subr.bf16.mxu1 %v4446_v14 }
   0xf   :  { %3836 = vmatpush3.bf16.msra.mxu0 %v4433_v9 }
  0x10   :  { %3841 = vmatprep.subr.bf16.mxu0 %v7248_v2 }
  0x11   :  { %322 = vmatpush1.bf16.msra.mxu1 %v4448_v15 }
  0x12   :  { %323 = vmatprep.subr.bf16.mxu1 %v4450_v16 }
  0x15   :  { %324 = vmatpush1.bf16.msra.mxu1 %v4452_v17 }
  0x16   :  { %325 = vmatprep.subr.bf16.mxu1 %v4454_v18 }
  0x19   :  { %326 = vmatpush1.bf16.msra.mxu1 %v4456_v19 }
  0x1a   :  { %327 = vmatprep.subr.bf16.mxu1 %v4458_v20 }
  0x1d   :  { %328 = vmatpush1.bf16.msra.mxu1 %v4460_v21 }
  0x1e   :  { %17 = vsyncpa [#allocation3], 0  ;;  %v45_v22 = vlaneseq  ;;  %vm92_vm3 = vcmask 523264   ;;  %v4437_v28 = vld [vmem:[%s7233_s2 + $0x8] ss:$12 sps:$4 sm:$0xff]   ;;  %s4901_s13 = smov [#allocation2]  }
  0x1f   :  { %v4441_v30 = vld [vmem:[%s7233_s2 + $0x20] ss:$12 sps:$4 sm:$0xff]   ;;  %v4445_v31 = vld [vmem:[%s7233_s2 + $0x38] ss:$12 sps:$4 sm:$0xff]   ;;  %v4449_v32 = vld [vmem:[%s7233_s2 + $0x50] ss:$12 sps:$4 sm:$0xff]  }
  0x20   :  { %v46_v23 = vand.u32 127, %v45_v22  ;;  %v4453_v33 = vld [vmem:[%s7233_s2 + $0x68] ss:$12 sps:$4 sm:$0xff]   ;;  %v4457_v34 = vld [vmem:[%s7233_s2 + $0x80] ss:$12 sps:$4 sm:$0xff]   ;;  %v173_v7 = vshrl.u32 %v45_v22, 7 }
  0x21   :  { %v4461_v35 = vld [vmem:[%s7233_s2 + $0x98] ss:$12 sps:$4 sm:$0xff]   ;;  %v4464_v37 = vld [vmem:[%s7233_s2 + $0xa8] ss:$12 sps:$4 sm:$0xff]   ;;  %v4465_v38 = vld [vmem:[%s7233_s2 + $0xb0] ss:$12 sps:$4 sm:$0xff]  }
  0x22   :  { %v4462_v36 = vld [vmem:[%s7233_s2 + $0xac] ss:$12 sps:$4 sm:$0xff]   ;;  %v5081_v39 = vld [vmem:[%s7234_s3 + $0x4] ss:$12 sps:$4 sm:$0xff]   ;;  %v5093_v44 = vld [vmem:[%s7234_s3 + $0x8] ss:$12 sps:$4 sm:$0xff]  }
  0x23   :  { %329 = vmatprep.subr.bf16.mxu1 %v4462_v36  ;;  %v5088_v43 = vld [vmem:[%s7234_s3] ss:$12 sps:$4 sm:$0xff]   ;;  %v5098_v47 = vld [vmem:[%s7234_s3 + $0x1c] ss:$12 sps:$4 sm:$0xff]   ;;  %v5104_v48 = vld [vmem:[%s7234_s3 + $0x18] ss:$12 sps:$4 sm:$0xff]  }
  0x24   :  { %330 = vmatpush1.bf16.msra.mxu1 %v4464_v37  ;;  %v5110_v49 = vld [vmem:[%s7234_s3 + $0x20] ss:$12 sps:$4 sm:$0xff]   ;;  %v5126_v51 = vld [vmem:[%s7234_s3 + $0x30] ss:$12 sps:$4 sm:$0xff]   ;;  %v5132_v52 = vld [vmem:[%s7234_s3 + $0x38] ss:$12 sps:$4 sm:$0xff]  }
  0x25   :  { %576 = vmatprep.subr.bf16.mxu1 %v5081_v39  ;;  %v5116_v50 = vld [vmem:[%s7234_s3 + $0x34] ss:$12 sps:$4 sm:$0xff]   ;;  %7381 = vst [vmem:[#allocation5_spill] sm:$0xff] %v5132_v52  ;;  %v5138_v53 = vld [vmem:[%s7234_s3 + $0x4c] ss:$12 sps:$4 sm:$0xff]   ;;  %v5278_v8 = vsub.s32 2, %v173_v7 }
  0x26   :  { %7382 = vst [vmem:[#allocation6_spill] sm:$0xff] %v5138_v53  ;;  %v5145_v54 = vld [vmem:[%s7234_s3 + $0x48] ss:$12 sps:$4 sm:$0xff]   ;;  %v5151_v55 = vld [vmem:[%s7234_s3 + $0x50] ss:$12 sps:$4 sm:$0xff]   ;;  %v5283_v10 = vsub.s32 1, %v173_v7 }
  0x27   :  { %7383 = vst [vmem:[#allocation7_spill] sm:$0xff] %v5145_v54  ;;  %7384 = vst [vmem:[#allocation8_spill] sm:$0xff] %v5151_v55  ;;  %v5157_v56 = vld [vmem:[%s7234_s3 + $0x64] ss:$12 sps:$4 sm:$0xff]   ;;  %v5164_v57 = vld [vmem:[%s7234_s3 + $0x60] ss:$12 sps:$4 sm:$0xff]  }
  0x28   :  { %7385 = vst [vmem:[#allocation9_spill] sm:$0xff] %v5157_v56  ;;  %7386 = vst [vmem:[#allocation10_spill] sm:$0xff] %v5164_v57  ;;  %v5170_v58 = vld [vmem:[%s7234_s3 + $0x68] ss:$12 sps:$4 sm:$0xff]   ;;  %v5183_v60 = vld [vmem:[%s7234_s3 + $0x78] ss:$12 sps:$4 sm:$0xff]  }
  0x29   :  { %7387 = vst [vmem:[#allocation11_spill] sm:$0xff] %v5170_v58  ;;  %v5176_v59 = vld [vmem:[%s7234_s3 + $0x7c] ss:$12 sps:$4 sm:$0xff]   ;;  %7389 = vst [vmem:[#allocation13_spill] sm:$0xff] %v5183_v60  ;;  %v5189_v61 = vld [vmem:[%s7234_s3 + $0x80] ss:$12 sps:$4 sm:$0xff]  }
  0x2a   :  { %7388 = vst [vmem:[#allocation12_spill] sm:$0xff] %v5176_v59  ;;  %7390 = vst [vmem:[#allocation14_spill] sm:$0xff] %v5189_v61  ;;  %v5195_v62 = vld [vmem:[%s7234_s3 + $0x94] ss:$12 sps:$4 sm:$0xff]   ;;  %v5202_v63 = vld [vmem:[%s7234_s3 + $0x90] ss:$12 sps:$4 sm:$0xff]  }
  0x2b   :  { %7391 = vst [vmem:[#allocation15_spill] sm:$0xff] %v5195_v62  ;;  %7392 = vst [vmem:[#allocation16_spill] sm:$0xff] %v5202_v63  ;;  %v5208_v0 = vld [vmem:[%s7234_s3 + $0x98] ss:$12 sps:$4 sm:$0xff]   ;;  %v5221_v4 = vld [vmem:[%s7234_s3 + $0xa8] ss:$12 sps:$4 sm:$0xff]  }
  0x2c   :  { %7393 = vst [vmem:[#allocation17_spill] sm:$0xff] %v5208_v0  ;;  %v5214_v3 = vld [vmem:[%s7234_s3 + $0xac] ss:$12 sps:$4 sm:$0xff]   ;;  %7395 = vst [vmem:[#allocation19_spill] sm:$0xff] %v5221_v4  ;;  %v5227_v5 = vld [vmem:[%s7234_s3 + $0xb0] ss:$12 sps:$4 sm:$0xff]  }
  0x2d   :  { %7394 = vst [vmem:[#allocation18_spill] sm:$0xff] %v5214_v3  ;;  %7396 = vst [vmem:[#allocation20_spill] sm:$0xff] %v5227_v5  ;;  %v5274_v6 = vld [vmem:[%s7237_s6 + $0x4] ss:$12 sps:$4 sm:$0xff]   ;;  %v170_v9 = vld [vmem:[%s7235_s4] sm:$0x7] }
  0x2e   :  { %7397 = vst [vmem:[#allocation21_spill] sm:$0xff] %v5274_v6  ;;  %v5285_v11 = vsub.s32 0, %v173_v7  ;;  %v183_v12 = vrot.slane %v170_v9, %v5278_v8  ;;  %v179_v13 = vrot.slane %v170_v9, %v5283_v10  ;;  %s3438_s14 = sshll.u32 %s4901_s13, 4  ;;  %s3439_s14 = int_to_ptr.vmem [resolvable:$true] %s3438_s14 }
  0x2f   :  { %s4874_s15 = scalar_lea.vmem %s3439_s14, 32  ;;  %p4879_p1 = scmp.lt.s32.totalorder %s3439_s14, %s3439_s14 }
  0x30   :  { %v175_v16 = vrot.slane %v170_v9, %v5285_v11  ;;  %p4875_p0 = scmp.ne.s32.totalorder %s3439_s14, %s4874_s15  ;;  %p4880_p2 = scmp.lt.s32.totalorder %s4874_s15, %s4874_s15 }
  0x32   :  { %p4881_p3 = por %p4880_p2, %p4879_p1 }
  0x34   :  { %p4882_p4 = pnand %p4881_p3, %p4875_p0 }
  0x81   :  { %v49_v24 = vpop.permute.xlu0 %48 }
  0x82   :  { %vm53_vm1 = vcmp.eq.s32.totalorder %v49_v24, %v46_v23 }
  0x83   :  { %v3446_v26 = vsel %vm53_vm1, 1.0, %v7248_v2 }
  0x85   :  { %v52_v25 = vpop.permute.xlu0 %51 }
  0x86   :  { %vm54_vm2 = vcmp.eq.s32.totalorder %v52_v25, %v46_v23 }
  0x87   :  { %v3447_v27 = vsel %vm54_vm2, 1.0, %v7248_v2 }
  0x88   :  { %v59_v29 = vpack.c.bf16 %v3447_v27, %v3446_v26 }
  0x8a   :  { %3838 = vmatmul.mubr.msk.bf16.vlgmr.msra.gmra.mrb[0].mxu0 %vm92_vm3, %v59_v29 }
  0x8b   :  { %3842 = vmatpush3.bf16.msra.mxu0 %v4437_v28  ;;  %3857 = vmatprep.mubr.msk.bf16.mxu0 %vm4900_vm0, %v7248_v2  ;;  %v431_v28 = vld [vmem:[%s7236_s5] sm:$0x7] }
  0x8c   :  { %3843 = vmatprep.subr.bf16.mxu0 %v7248_v2  ;;  %v5304_v29 = vrot.slane %v431_v28, %v5285_v11 }
  0x8e   :  { %7401 = vst [vmem:[#allocation25_spill] sm:$0xff] %v5304_v29 }
  0x8f   :  { %3844 = vmatpush3.bf16.msra.mxu0 %v4441_v30  ;;  %v5307_v30 = vrot.slane %v431_v28, %v5283_v10 }
  0x90   :  { %3845 = vmatprep.subr.bf16.mxu0 %v7248_v2 }
  0x93   :  { %3846 = vmatpush3.bf16.msra.mxu0 %v4445_v31 }
  0x94   :  { %3847 = vmatprep.subr.bf16.mxu0 %v7248_v2 }
  0x97   :  { %3848 = vmatpush3.bf16.msra.mxu0 %v4449_v32 }
  0x98   :  { %3849 = vmatprep.subr.bf16.mxu0 %v7248_v2 }
  0x9b   :  { %3850 = vmatpush3.bf16.msra.mxu0 %v4453_v33 }
  0x9c   :  { %3851 = vmatprep.subr.bf16.mxu0 %v7248_v2 }
  0x9f   :  { %3852 = vmatpush3.bf16.msra.mxu0 %v4457_v34 }
  0xa0   :  { %3853 = vmatprep.subr.bf16.mxu0 %v7248_v2 }
  0xa3   :  { %3854 = vmatpush3.bf16.msra.mxu0 %v4461_v35 }
  0xa4   :  { %3855 = vmatprep.subr.bf16.mxu0 %v7248_v2 }
  0xa7   :  { %3856 = vmatpush3.bf16.msra.mxu0 %v4465_v38 }
  0xa8   :  { %3861 = vmatprep.subr.bf16.mxu0 %v7248_v2 }
 0x15d   :  { %v130_v40 = vpop.f32.mrb[0].mxu0 }
 0x15e   :  { %v3839_v41 = vpop.f32.mrb[1].mxu0 }
 0x15f   :  { %v133_v42 = vpop.f32.mrb[2].mxu0 }
 0x160   :  { %v137_v45 = vpack.c.bf16 %v133_v42, %v130_v40  ;;  %v3840_v46 = vpop.f32.mrb[3].mxu0 }
 0x162   :  { %348 = vmatmul.mubr.bf16.vlgmr.msra.gmra.mrb[0].mxu1 %v137_v45  ;;  %3858 = vmatmul.mubr.bf16.vlgmr.msra.gmra.mrb[4].mxu0 %v137_v45 }
 0x163   :  { %577 = vmatpush1.bf16.msra.mxu1 %v5088_v43  ;;  %3862 = vmatpush3.bf16.msra.mxu0 %v5093_v44 }
 0x164   :  { %578 = vmatprep.subr.bf16.mxu1 %v5098_v47  ;;  %3863 = vmatprep.subr.bf16.mxu0 %v7248_v2 }
 0x165   :  { %608 = vmatprep.mubr.bf16.mxu1 %v7244_v1  ;;  %3877 = vmatprep.mubr.msk.bf16.mxu0 %vm4900_vm0, %v7248_v2 }
 0x167   :  { %579 = vmatpush1.bf16.msra.mxu1 %v5104_v48  ;;  %3864 = vmatpush3.bf16.msra.mxu0 %v5110_v49 }
 0x168   :  { %580 = vmatprep.subr.bf16.mxu1 %v5116_v50  ;;  %3865 = vmatprep.subr.bf16.mxu0 %v7248_v2 }
 0x16b   :  { %581 = vmatpush1.bf16.msra.mxu1 %v5126_v51  ;;  %3866 = vmatpush3.bf16.msra.mxu0 %v5132_v52 }
 0x16c   :  { %582 = vmatprep.subr.bf16.mxu1 %v5138_v53  ;;  %3867 = vmatprep.subr.bf16.mxu0 %v7248_v2 }
 0x16f   :  { %583 = vmatpush1.bf16.msra.mxu1 %v5145_v54  ;;  %3868 = vmatpush3.bf16.msra.mxu0 %v5151_v55 }
 0x170   :  { %584 = vmatprep.subr.bf16.mxu1 %v5157_v56  ;;  %3869 = vmatprep.subr.bf16.mxu0 %v7248_v2 }
 0x173   :  { %585 = vmatpush1.bf16.msra.mxu1 %v5164_v57  ;;  %3870 = vmatpush3.bf16.msra.mxu0 %v5170_v58 }
 0x174   :  { %586 = vmatprep.subr.bf16.mxu1 %v5176_v59  ;;  %3871 = vmatprep.subr.bf16.mxu0 %v7248_v2 }
 0x177   :  { %587 = vmatpush1.bf16.msra.mxu1 %v5183_v60  ;;  %3872 = vmatpush3.bf16.msra.mxu0 %v5189_v61 }
 0x178   :  { %588 = vmatprep.subr.bf16.mxu1 %v5195_v62  ;;  %3873 = vmatprep.subr.bf16.mxu0 %v7248_v2 }
 0x17b   :  { %589 = vmatpush1.bf16.msra.mxu1 %v5202_v63  ;;  %3874 = vmatpush3.bf16.msra.mxu0 %v5208_v0 }
 0x17c   :  { %590 = vmatprep.subr.bf16.mxu1 %v5214_v3  ;;  %3875 = vmatprep.subr.bf16.mxu0 %v7248_v2 }
 0x17f   :  { %591 = vmatpush1.bf16.msra.mxu1 %v5221_v4  ;;  %3876 = vmatpush3.bf16.msra.mxu0 %v5227_v5 }
 0x180   :  { %679 = vmatprep.subr.bf16.mxu1 %v5081_v39  ;;  %3881 = vmatprep.subr.bf16.mxu0 %v7248_v2 }
 0x182   :  { %609 = vmatmul.mubr.bf16.vlgmr.msra.gmra.mrb[4].mxu1 %v7244_v1  ;;  %3878 = vmatmul.mubr.bf16.vlgmr.msra.gmra.mrb[8].mxu0 %v7244_v1 }
 0x183   :  { %680 = vmatpush1.bf16.msra.mxu1 %v5088_v43  ;;  %3882 = vmatpush3.bf16.msra.mxu0 %v5093_v44 }
 0x184   :  { %681 = vmatprep.subr.bf16.mxu1 %v5098_v47  ;;  %3883 = vmatprep.subr.bf16.mxu0 %v7248_v2 }
 0x185   :  { %711 = vmatprep.mubr.bf16.mxu1 %v7244_v1  ;;  %3897 = vmatprep.mubr.msk.bf16.mxu0 %vm4900_vm0, %v7248_v2 }
 0x187   :  { %682 = vmatpush1.bf16.msra.mxu1 %v5104_v48  ;;  %3884 = vmatpush3.bf16.msra.mxu0 %v5110_v49 }
 0x188   :  { %683 = vmatprep.subr.bf16.mxu1 %v5116_v50  ;;  %3885 = vmatprep.subr.bf16.mxu0 %v7248_v2 }
 0x18b   :  { %684 = vmatpush1.bf16.msra.mxu1 %v5126_v51  ;;  %3886 = vmatpush3.bf16.msra.mxu0 %v5132_v52 }
 0x18c   :  { %685 = vmatprep.subr.bf16.mxu1 %v5138_v53  ;;  %3887 = vmatprep.subr.bf16.mxu0 %v7248_v2 }
 0x18f   :  { %686 = vmatpush1.bf16.msra.mxu1 %v5145_v54  ;;  %3888 = vmatpush3.bf16.msra.mxu0 %v5151_v55 }
 0x190   :  { %687 = vmatprep.subr.bf16.mxu1 %v5157_v56  ;;  %3889 = vmatprep.subr.bf16.mxu0 %v7248_v2 }
 0x193   :  { %688 = vmatpush1.bf16.msra.mxu1 %v5164_v57  ;;  %3890 = vmatpush3.bf16.msra.mxu0 %v5170_v58 }
 0x194   :  { %689 = vmatprep.subr.bf16.mxu1 %v5176_v59  ;;  %3891 = vmatprep.subr.bf16.mxu0 %v7248_v2 }
 0x197   :  { %690 = vmatpush1.bf16.msra.mxu1 %v5183_v60  ;;  %3892 = vmatpush3.bf16.msra.mxu0 %v5189_v61 }
 0x198   :  { %691 = vmatprep.subr.bf16.mxu1 %v5195_v62  ;;  %3893 = vmatprep.subr.bf16.mxu0 %v7248_v2 }
 0x19b   :  { %692 = vmatpush1.bf16.msra.mxu1 %v5202_v63  ;;  %3894 = vmatpush3.bf16.msra.mxu0 %v5208_v0 }
 0x19c   :  { %693 = vmatprep.subr.bf16.mxu1 %v5214_v3  ;;  %3895 = vmatprep.subr.bf16.mxu0 %v7248_v2 }
 0x19f   :  { %694 = vmatpush1.bf16.msra.mxu1 %v5221_v4  ;;  %3896 = vmatpush3.bf16.msra.mxu0 %v5227_v5 }
 0x1a0   :  { %3901 = vmatprep.subr.bf16.mxu0 %v7248_v2  ;;  %970 = vmatprep.subr.bf16.mxu1 %v5274_v6 }
 0x235   :  { %v349_v14 = vpop.f32.mrb[0].mxu1  ;;  %v392_v15 = vpop.f32.mrb[4].mxu0 }
 0x236   :  { %v5290_v17 = vadd.f32 %v392_v15, %v183_v12  ;;  %v351_v18 = vpop.f32.mrb[1].mxu1  ;;  %v3859_v19 = vpop.f32.mrb[5].mxu0  ;;  %v5309_v33 = vadd.f32 %v349_v14, %v175_v16  ;;  %v5316_v14 = vrot.slane %v431_v28, %v5278_v8  ;;  %v5325_v28 = vld [vmem:[%s7237_s6] ss:$12 sps:$4 sm:$0xff]  }
 0x237   :  { %v5292_v20 = vadd.f32 %v351_v18, %v179_v13  ;;  %v353_v21 = vpop.f32.mrb[2].mxu1  ;;  %v395_v22 = vpop.f32.mrb[6].mxu0 }
 0x238   :  { %v5294_v23 = vadd.f32 %v353_v21, %v175_v16  ;;  %v5296_v24 = vadd.f32 %v395_v22, %v183_v12  ;;  %v355_v25 = vpop.f32.mrb[3].mxu1  ;;  %v3860_v26 = vpop.f32.mrb[7].mxu0 }
 0x239   :  { %v5298_v27 = vadd.f32 %v355_v25, %v179_v13 }
 0x23a   :  { %7398 = vst [vmem:[#allocation22_spill] sm:$0xff] %v5294_v23  ;;  %7399 = vst [vmem:[#allocation23_spill] sm:$0xff] %v5296_v24  ;;  %v5480_v24 = vld [vmem:[%s7238_s7] ss:$12 sps:$4 sm:$0xff]   ;;  %v7408_v23 = vmov 0.0  }
 0x23b   :  { %7400 = vst [vmem:[#allocation24_spill] sm:$0xff] %v5298_v27  ;;  %7405 = vst [vmem:[#allocation29_spill] sm:$0xff] %v5480_v24  ;;  %v5485_v27 = vld [vmem:[%s7238_s7 + $0x8] ss:$12 sps:$4 sm:$0xff]  }
 0x23c   :  { %7406 = vst [vmem:[#allocation30_spill] sm:$0xff] %v5485_v27 }
 0x255   :  { %v610_v31 = vpop.f32.mrb[4].mxu1  ;;  %v651_v32 = vpop.f32.mrb[8].mxu0 }
 0x256   :  { %v611_v34 = vadd.f32 %v610_v31, %v5304_v29  ;;  %v612_v35 = vpop.f32.mrb[5].mxu1  ;;  %v3879_v36 = vpop.f32.mrb[9].mxu0  ;;  %v652_v18 = vadd.f32 %v651_v32, %v5316_v14  ;;  %v5330_v32 = vld [vmem:[%s7237_s6 + $0x8] ss:$12 sps:$4 sm:$0xff]  }
 0x257   :  { %v613_v37 = vadd.f32 %v612_v35, %v5307_v30  ;;  %v614_v38 = vpop.f32.mrb[6].mxu1  ;;  %v654_v40 = vpop.f32.mrb[10].mxu0 }
 0x258   :  { %v657_v41 = vadd.f32 %v611_v34, %v5309_v33  ;;  %v615_v42 = vpop.f32.mrb[7].mxu1  ;;  %v3880_v45 = vpop.f32.mrb[11].mxu0  ;;  %v5337_v38 = vld [vmem:[%s7237_s6 + $0x1c] ss:$12 sps:$4 sm:$0xff]   ;;  %v5344_v40 = vld [vmem:[%s7237_s6 + $0x18] ss:$12 sps:$4 sm:$0xff]  }
 0x259   :  { %v664_v7 = vadd.f32 %v613_v37, %v5292_v20  ;;  %v5356_v42 = vld [vmem:[%s7237_s6 + $0x34] ss:$12 sps:$4 sm:$0xff]   ;;  %v5366_v45 = vld [vmem:[%s7237_s6 + $0x30] ss:$12 sps:$4 sm:$0xff]  }
 0x25a   :  { %v3501_v46 = vmul.f32 -1.442695, %v657_v41  ;;  %v5349_v41 = vld [vmem:[%s7237_s6 + $0x20] ss:$12 sps:$4 sm:$0xff]  }
 0x25b   :  { %v3502_v9 = vmul.f32 -1.442695, %v664_v7  ;;  %v5378_v7 = vld [vmem:[%s7237_s6 + $0x4c] ss:$12 sps:$4 sm:$0xff]  }
 0x25c   :  { %4570 = vpow2.f32 %v3501_v46  ;;  %v5371_v46 = vld [vmem:[%s7237_s6 + $0x38] ss:$12 sps:$4 sm:$0xff]  }
 0x25d   :  { %4572 = vpow2.f32 %v3502_v9  ;;  %v5385_v9 = vld [vmem:[%s7237_s6 + $0x48] ss:$12 sps:$4 sm:$0xff]  }
 0x266   :  { %v4571_v12 = vpop.eup %4570 }
 0x267   :  { %v661_v13 = vadd.f32 1.0, %v4571_v12  ;;  %v4573_v15 = vpop.eup %4572  ;;  %v5390_v12 = vld [vmem:[%s7237_s6 + $0x50] ss:$12 sps:$4 sm:$0xff]  }
 0x268   :  { %v668_v16 = vadd.f32 1.0, %v4573_v15  ;;  %v5404_v15 = vld [vmem:[%s7237_s6 + $0x60] ss:$12 sps:$4 sm:$0xff]  }
 0x269   :  { %4574 = vrcp.f32 %v661_v13  ;;  %v5397_v13 = vld [vmem:[%s7237_s6 + $0x64] ss:$12 sps:$4 sm:$0xff]  }
 0x26a   :  { %4576 = vrcp.f32 %v668_v16  ;;  %v5409_v16 = vld [vmem:[%s7237_s6 + $0x68] ss:$12 sps:$4 sm:$0xff]  }
 0x273   :  { %v4575_v19 = vpop.eup %4574 }
 0x274   :  { %v671_v21 = vmul.f32 %v4575_v19, %v652_v18  ;;  %v4577_v25 = vpop.eup %4576  ;;  %v5416_v18 = vld [vmem:[%s7237_s6 + $0x7c] ss:$12 sps:$4 sm:$0xff]   ;;  %v5423_v19 = vld [vmem:[%s7237_s6 + $0x78] ss:$12 sps:$4 sm:$0xff]  }
 0x275   :  { %v674_v26 = vsub.f32 1.0, %v4577_v25  ;;  %v676_v35 = vmul.f32 0.0, %v4577_v25  ;;  %v5442_v25 = vld [vmem:[%s7237_s6 + $0x90] ss:$12 sps:$4 sm:$0xff]  }
 0x276   :  { %v672_v22 = vadd.f32 %v671_v21, %v5290_v17  ;;  %v5428_v21 = vld [vmem:[%s7237_s6 + $0x80] ss:$12 sps:$4 sm:$0xff]  }
 0x278   :  { %4578 = vtanh.f32 %v672_v22  ;;  %v5435_v22 = vld [vmem:[%s7237_s6 + $0x94] ss:$12 sps:$4 sm:$0xff]  }
 0x282   :  { %v4579_v31 = vpop.eup %4578 }
 0x283   :  { %v675_v34 = vmul.f32 %v4579_v31, %v674_v26  ;;  %v5447_v26 = vld [vmem:[%s7237_s6 + $0x98] ss:$12 sps:$4 sm:$0xff]  }
 0x284   :  { %v5454_v31 = vld [vmem:[%s7237_s6 + $0xac] ss:$12 sps:$4 sm:$0xff]  }
 0x285   :  { %v5320_v36 = vadd.f32 %v676_v35, %v675_v34  ;;  %v5461_v34 = vld [vmem:[%s7237_s6 + $0xa8] ss:$12 sps:$4 sm:$0xff]   ;;  %v5466_v35 = vld [vmem:[%s7237_s6 + $0xb0] ss:$12 sps:$4 sm:$0xff]  }
 0x286   :  { %7402 = vst [vmem:[#allocation26_spill] sm:$0xff] %v5461_v34  ;;  %7403 = vst [vmem:[#allocation27_spill] sm:$0xff] %v5466_v35 }
 0x287   :  { %v678_v37 = vpack.c.bf16 %v5320_v36, %v5320_v36 }
 0x289   :  { %712 = vmatmul.mubr.bf16.vlgmr.msra.gmra.mrb[8].mxu1 %v678_v37  ;;  %3898 = vmatmul.mubr.bf16.vlgmr.msra.gmra.mrb[12].mxu0 %v678_v37 }
 0x28a   :  { %971 = vmatpush1.bf16.msra.mxu1 %v5325_v28  ;;  %3902 = vmatpush3.bf16.msra.mxu0 %v5330_v32 }
 0x28b   :  { %972 = vmatprep.subr.bf16.mxu1 %v5337_v38  ;;  %3903 = vmatprep.subr.bf16.mxu0 %v7248_v2 }
 0x28c   :  { %1002 = vmatprep.mubr.bf16.mxu1 %v7244_v1  ;;  %3917 = vmatprep.mubr.msk.bf16.mxu0 %vm4900_vm0, %v7248_v2  ;;  %v5473_v1 = vld [vmem:[%s7238_s7 + $0x4] ss:$12 sps:$4 sm:$0xff]  }
 0x28d   :  { %7404 = vst [vmem:[#allocation28_spill] sm:$0xff] %v5473_v1 }
 0x28e   :  { %973 = vmatpush1.bf16.msra.mxu1 %v5344_v40  ;;  %3904 = vmatpush3.bf16.msra.mxu0 %v5349_v41 }
 0x28f   :  { %974 = vmatprep.subr.bf16.mxu1 %v5356_v42  ;;  %3905 = vmatprep.subr.bf16.mxu0 %v7248_v2 }
 0x292   :  { %975 = vmatpush1.bf16.msra.mxu1 %v5366_v45  ;;  %3906 = vmatpush3.bf16.msra.mxu0 %v5371_v46 }
 0x293   :  { %976 = vmatprep.subr.bf16.mxu1 %v5378_v7  ;;  %3907 = vmatprep.subr.bf16.mxu0 %v7248_v2 }
 0x296   :  { %977 = vmatpush1.bf16.msra.mxu1 %v5385_v9  ;;  %3908 = vmatpush3.bf16.msra.mxu0 %v5390_v12 }
 0x297   :  { %978 = vmatprep.subr.bf16.mxu1 %v5397_v13  ;;  %3909 = vmatprep.subr.bf16.mxu0 %v7248_v2 }
 0x29a   :  { %979 = vmatpush1.bf16.msra.mxu1 %v5404_v15  ;;  %3910 = vmatpush3.bf16.msra.mxu0 %v5409_v16 }
 0x29b   :  { %980 = vmatprep.subr.bf16.mxu1 %v5416_v18  ;;  %3911 = vmatprep.subr.bf16.mxu0 %v7248_v2 }
 0x29e   :  { %981 = vmatpush1.bf16.msra.mxu1 %v5423_v19  ;;  %3912 = vmatpush3.bf16.msra.mxu0 %v5428_v21 }
 0x29f   :  { %982 = vmatprep.subr.bf16.mxu1 %v5435_v22  ;;  %3913 = vmatprep.subr.bf16.mxu0 %v7248_v2 }
 0x2a2   :  { %983 = vmatpush1.bf16.msra.mxu1 %v5442_v25  ;;  %3914 = vmatpush3.bf16.msra.mxu0 %v5447_v26 }
 0x2a3   :  { %984 = vmatprep.subr.bf16.mxu1 %v5454_v31  ;;  %3915 = vmatprep.subr.bf16.mxu0 %v7248_v2  ;;  %v5491_v2 = vld [vmem:[%s7238_s7 + $0x1c] ss:$12 sps:$4 sm:$0xff]  }
 0x2a4   :  { %7407 = vst [vmem:[#allocation31_spill] sm:$0xff] %v5491_v2 }
 0x2a6   :  { %985 = vmatpush1.bf16.msra.mxu1 %v5461_v34  ;;  %3916 = vmatpush3.bf16.msra.mxu0 %v5466_v35  ;;  %v5498_v35 = vld [vmem:[%s7238_s7 + $0x18] ss:$12 sps:$4 sm:$0xff]  }
 0x2a7   :  { %1228 = vmatprep.subr.bf16.mxu1 %v5473_v1  ;;  %3921 = vmatprep.subr.bf16.mxu0 %v7408_v23  ;;  %7409 = vst [vmem:[#allocation32_spill] sm:$0xff] %v5498_v35  ;;  %v5504_v1 = vld [vmem:[%s7238_s7 + $0x20] ss:$12 sps:$4 sm:$0xff]  }
 0x2a8   :  { %7410 = vst [vmem:[#allocation33_spill] sm:$0xff] %v5504_v1  ;;  %v5532_v34 = vld [vmem:[%s7238_s7 + $0x4c] ss:$12 sps:$4 sm:$0xff]  }
 0x2a9   :  { %1003 = vmatmul.mubr.bf16.vlgmr.msra.gmra.mrb[12].mxu1 %v678_v37  ;;  %3918 = vmatmul.mubr.bf16.vlgmr.msra.gmra.mrb[16].mxu0 %v678_v37  ;;  %v5510_v37 = vld [vmem:[%s7238_s7 + $0x34] ss:$12 sps:$4 sm:$0xff]   ;;  %7415 = vst [vmem:[#allocation37_spill] sm:$0xff] %v5532_v34 }
 0x2aa   :  { %1229 = vmatpush1.bf16.msra.mxu1 %v5480_v24  ;;  %3922 = vmatpush3.bf16.msra.mxu0 %v5485_v27  ;;  %7411 = vst [vmem:[#allocation34_spill] sm:$0xff] %v5510_v37  ;;  %v7412_v24 = vmov 0   ;;  %v5520_v27 = vld [vmem:[%s7238_s7 + $0x30] ss:$12 sps:$4 sm:$0xff]  }
 0x2ab   :  { %1230 = vmatprep.subr.bf16.mxu1 %v5491_v2  ;;  %3923 = vmatprep.subr.bf16.mxu0 %v7408_v23  ;;  %7413 = vst [vmem:[#allocation35_spill] sm:$0xff] %v5520_v27  ;;  %v5526_v2 = vld [vmem:[%s7238_s7 + $0x38] ss:$12 sps:$4 sm:$0xff]  }
 0x2ac   :  { %1260 = vmatprep.mubr.bf16.mxu1 %v7412_v24  ;;  %3937 = vmatprep.mubr.msk.bf16.mxu0 %vm4900_vm0, %v7408_v23  ;;  %7414 = vst [vmem:[#allocation36_spill] sm:$0xff] %v5526_v2 }
 0x2ae   :  { %1231 = vmatpush1.bf16.msra.mxu1 %v5498_v35  ;;  %3924 = vmatpush3.bf16.msra.mxu0 %v5504_v1  ;;  %v5539_v1 = vld [vmem:[%s7238_s7 + $0x48] ss:$12 sps:$4 sm:$0xff]   ;;  %v5551_v35 = vld [vmem:[%s7238_s7 + $0x64] ss:$12 sps:$4 sm:$0xff]  }
 0x2af   :  { %1232 = vmatprep.subr.bf16.mxu1 %v5510_v37  ;;  %3925 = vmatprep.subr.bf16.mxu0 %v7408_v23  ;;  %7416 = vst [vmem:[#allocation38_spill] sm:$0xff] %v5539_v1  ;;  %v5545_v37 = vld [vmem:[%s7238_s7 + $0x50] ss:$12 sps:$4 sm:$0xff]   ;;  %7418 = vst [vmem:[#allocation40_spill] sm:$0xff] %v5551_v35 }
 0x2b0   :  { %7417 = vst [vmem:[#allocation39_spill] sm:$0xff] %v5545_v37 }
 0x2b2   :  { %1233 = vmatpush1.bf16.msra.mxu1 %v5520_v27  ;;  %3926 = vmatpush3.bf16.msra.mxu0 %v5526_v2  ;;  %v5558_v2 = vld [vmem:[%s7238_s7 + $0x60] ss:$12 sps:$4 sm:$0xff]   ;;  %v5570_v27 = vld [vmem:[%s7238_s7 + $0x7c] ss:$12 sps:$4 sm:$0xff]  }
 0x2b3   :  { %1234 = vmatprep.subr.bf16.mxu1 %v5532_v34  ;;  %3927 = vmatprep.subr.bf16.mxu0 %v7408_v23  ;;  %7419 = vst [vmem:[#allocation41_spill] sm:$0xff] %v5558_v2  ;;  %v5564_v34 = vld [vmem:[%s7238_s7 + $0x68] ss:$12 sps:$4 sm:$0xff]   ;;  %7421 = vst [vmem:[#allocation43_spill] sm:$0xff] %v5570_v27 }
 0x2b4   :  { %7420 = vst [vmem:[#allocation42_spill] sm:$0xff] %v5564_v34 }
 0x2b6   :  { %1235 = vmatpush1.bf16.msra.mxu1 %v5539_v1  ;;  %3928 = vmatpush3.bf16.msra.mxu0 %v5545_v37  ;;  %v5577_v37 = vld [vmem:[%s7238_s7 + $0x78] ss:$12 sps:$4 sm:$0xff]   ;;  %v5589_v1 = vld [vmem:[%s7238_s7 + $0x94] ss:$12 sps:$4 sm:$0xff]  }
 0x2b7   :  { %1236 = vmatprep.subr.bf16.mxu1 %v5551_v35  ;;  %3929 = vmatprep.subr.bf16.mxu0 %v7408_v23  ;;  %v5583_v35 = vld [vmem:[%s7238_s7 + $0x80] ss:$12 sps:$4 sm:$0xff]   ;;  %7423 = vst [vmem:[#allocation45_spill] sm:$0xff] %v5589_v1 }
 0x2b8   :  { %7422 = vst [vmem:[#allocation44_spill] sm:$0xff] %v5583_v35 }
 0x2ba   :  { %1237 = vmatpush1.bf16.msra.mxu1 %v5558_v2  ;;  %3930 = vmatpush3.bf16.msra.mxu0 %v5564_v34  ;;  %v5596_v34 = vld [vmem:[%s7238_s7 + $0x90] ss:$12 sps:$4 sm:$0xff]   ;;  %v5608_v2 = vld [vmem:[%s7238_s7 + $0xac] ss:$12 sps:$4 sm:$0xff]  }
 0x2bb   :  { %1238 = vmatprep.subr.bf16.mxu1 %v5570_v27  ;;  %3931 = vmatprep.subr.bf16.mxu0 %v7408_v23  ;;  %7424 = vst [vmem:[#allocation46_spill] sm:$0xff] %v5596_v34  ;;  %v5602_v27 = vld [vmem:[%s7238_s7 + $0x98] ss:$12 sps:$4 sm:$0xff]   ;;  %7426 = vst [vmem:[#allocation48_spill] sm:$0xff] %v5608_v2 }
 0x2bc   :  { %7425 = vst [vmem:[#allocation47_spill] sm:$0xff] %v5602_v27 }
 0x2be   :  { %1239 = vmatpush1.bf16.msra.mxu1 %v5577_v37  ;;  %3932 = vmatpush3.bf16.msra.mxu0 %v5583_v35  ;;  %v5615_v35 = vld [vmem:[%s7238_s7 + $0xa8] ss:$12 sps:$4 sm:$0xff]  }
 0x2bf   :  { %1240 = vmatprep.subr.bf16.mxu1 %v5589_v1  ;;  %3933 = vmatprep.subr.bf16.mxu0 %v7408_v23  ;;  %7427 = vst [vmem:[#allocation49_spill] sm:$0xff] %v5615_v35  ;;  %v5621_v1 = vld [vmem:[%s7238_s7 + $0xb0] ss:$12 sps:$4 sm:$0xff]  }
 0x2c0   :  { %7428 = vst [vmem:[#allocation50_spill] sm:$0xff] %v5621_v1 }
 0x2c2   :  { %1241 = vmatpush1.bf16.msra.mxu1 %v5596_v34  ;;  %3934 = vmatpush3.bf16.msra.mxu0 %v5602_v27 }
 0x2c3   :  { %1242 = vmatprep.subr.bf16.mxu1 %v5608_v2  ;;  %3935 = vmatprep.subr.bf16.mxu0 %v7408_v23 }
 0x2c6   :  { %1243 = vmatpush1.bf16.msra.mxu1 %v5615_v35  ;;  %3936 = vmatpush3.bf16.msra.mxu0 %v5621_v1 }
 0x2c7   :  { %1334 = vmatprep.subr.bf16.mxu1 %v5081_v39  ;;  %3941 = vmatprep.subr.bf16.mxu0 %v7408_v23 }
 0x2c9   :  { %1261 = vmatmul.mubr.bf16.vlgmr.msra.gmra.mrb[12].mxu1 %v7412_v24  ;;  %3938 = vmatmul.mubr.bf16.vlgmr.msra.gmra.mrb[20].mxu0 %v7412_v24 }
 0x2ca   :  { %1335 = vmatpush1.bf16.msra.mxu1 %v5088_v43  ;;  %3942 = vmatpush3.bf16.msra.mxu0 %v5093_v44 }
 0x2cb   :  { %1336 = vmatprep.subr.bf16.mxu1 %v5098_v47  ;;  %3943 = vmatprep.subr.bf16.mxu0 %v7408_v23 }
 0x2cc   :  { %1366 = vmatprep.mubr.bf16.mxu1 %v7412_v24  ;;  %3957 = vmatprep.mubr.msk.bf16.mxu0 %vm4900_vm0, %v7408_v23 }
 0x2ce   :  { %1337 = vmatpush1.bf16.msra.mxu1 %v5104_v48  ;;  %3944 = vmatpush3.bf16.msra.mxu0 %v5110_v49 }
 0x2cf   :  { %1338 = vmatprep.subr.bf16.mxu1 %v5116_v50  ;;  %3945 = vmatprep.subr.bf16.mxu0 %v7408_v23 }
 0x2d2   :  { %1339 = vmatpush1.bf16.msra.mxu1 %v5126_v51  ;;  %3946 = vmatpush3.bf16.msra.mxu0 %v5132_v52 }
 0x2d3   :  { %1340 = vmatprep.subr.bf16.mxu1 %v5138_v53  ;;  %3947 = vmatprep.subr.bf16.mxu0 %v7408_v23 }
 0x2d6   :  { %1341 = vmatpush1.bf16.msra.mxu1 %v5145_v54  ;;  %3948 = vmatpush3.bf16.msra.mxu0 %v5151_v55 }
 0x2d7   :  { %1342 = vmatprep.subr.bf16.mxu1 %v5157_v56  ;;  %3949 = vmatprep.subr.bf16.mxu0 %v7408_v23 }
 0x2da   :  { %1343 = vmatpush1.bf16.msra.mxu1 %v5164_v57  ;;  %3950 = vmatpush3.bf16.msra.mxu0 %v5170_v58 }
 0x2db   :  { %1344 = vmatprep.subr.bf16.mxu1 %v5176_v59  ;;  %3951 = vmatprep.subr.bf16.mxu0 %v7408_v23 }
 0x2de   :  { %1345 = vmatpush1.bf16.msra.mxu1 %v5183_v60  ;;  %3952 = vmatpush3.bf16.msra.mxu0 %v5189_v61 }
 0x2df   :  { %1346 = vmatprep.subr.bf16.mxu1 %v5195_v62  ;;  %3953 = vmatprep.subr.bf16.mxu0 %v7408_v23 }
 0x2e2   :  { %1347 = vmatpush1.bf16.msra.mxu1 %v5202_v63  ;;  %3954 = vmatpush3.bf16.msra.mxu0 %v5208_v0 }
 0x2e3   :  { %1348 = vmatprep.subr.bf16.mxu1 %v5214_v3  ;;  %3955 = vmatprep.subr.bf16.mxu0 %v7408_v23 }
 0x2e6   :  { %1349 = vmatpush1.bf16.msra.mxu1 %v5221_v4  ;;  %3956 = vmatpush3.bf16.msra.mxu0 %v5227_v5 }
 0x2e7   :  { %1448 = vmatprep.subr.bf16.mxu1 %v5274_v6  ;;  %3961 = vmatprep.subr.bf16.mxu0 %v7408_v23 }
 0x35c   :  { %v713_v61 = vpop.f32.mrb[8].mxu1  ;;  %v754_v62 = vpop.f32.mrb[12].mxu0 }
 0x35d   :  { %v714_v60 = vadd.f32 %v713_v61, %v5304_v29  ;;  %v715_v59 = vpop.f32.mrb[9].mxu1  ;;  %v3899_v63 = vpop.f32.mrb[13].mxu0 }
 0x35e   :  { %v716_v0 = vadd.f32 %v715_v59, %v5307_v30  ;;  %v717_v58 = vpop.f32.mrb[10].mxu1  ;;  %v757_v3 = vpop.f32.mrb[14].mxu0 }
 0x35f   :  { %v761_v57 = vrot.slane %v714_v60, 6  ;;  %v718_v56 = vpop.f32.mrb[11].mxu1  ;;  %v3900_v55 = vpop.f32.mrb[15].mxu0  ;;  %v755_v58 = vadd.f32 %v754_v62, %v5316_v14 }
 0x360   :  { %v771_v4 = vrot.slane %v716_v0, 6  ;;  %v789_v55 = vrot.slane %v5320_v36, 6  ;;  %v1083_v36 = vld [vmem:[%s7240_s9] sm:$0x7] }
 0x361   :  { %v763_v5 = vadd.f32 %v761_v57, %v5309_v33  ;;  %v781_v59 = vrot.slane %v755_v58, 6  ;;  %v5687_v58 = vld [vmem:[%s7239_s8] sm:$0x7] }
 0x362   :  { %v773_v6 = vadd.f32 %v771_v4, %v5292_v20 }
 0x363   :  { %v3503_v54 = vmul.f32 -1.442695, %v763_v5 }
 0x364   :  { %v3504_v53 = vmul.f32 -1.442695, %v773_v6 }
 0x365   :  { %4580 = vpow2.f32 %v3503_v54 }
 0x366   :  { %4582 = vpow2.f32 %v3504_v53 }
 0x36f   :  { %v4581_v52 = vpop.eup %4580 }
 0x370   :  { %v4583_v61 = vpop.eup %4582  ;;  %v767_v29 = vadd.f32 1.0, %v4581_v52 }
 0x371   :  { %v777_v63 = vadd.f32 1.0, %v4583_v61 }
 0x372   :  { %4584 = vrcp.f32 %v767_v29 }
 0x373   :  { %4586 = vrcp.f32 %v777_v63 }
 0x37c   :  { %v4585_v56 = vpop.eup %4584  ;;  %v5672_v60 = vpop.f32.mrb[16].mxu0 }
 0x37d   :  { %v4587_v57 = vpop.eup %4586  ;;  %v783_v0 = vmul.f32 %v4585_v56, %v781_v59  ;;  %v3919_v3 = vpop.f32.mrb[17].mxu0  ;;  %v830_v59 = vrot.slane %v5687_v58, %v5285_v11  ;;  %v1088_v56 = vrot.slane %v1083_v36, %v5285_v11 }
 0x37e   :  { %v1048_v4 = vpop.f32.mrb[18].mxu0  ;;  %v791_v54 = vmul.f32 %v4587_v57, %v789_v55  ;;  %v786_v52 = vsub.f32 1.0, %v4587_v57  ;;  %v834_v55 = vrot.slane %v5687_v58, %v5283_v10  ;;  %v1092_v57 = vrot.slane %v1083_v36, %v5283_v10 }
 0x37f   :  { %v784_v53 = vadd.f32 %v783_v0, %v5290_v17  ;;  %v3920_v5 = vpop.f32.mrb[19].mxu0  ;;  %v5704_v0 = vadd.f32 %v1088_v56, %v830_v59 }
 0x380   :  { %v5710_v11 = vadd.f32 %v1092_v57, %v834_v55 }
 0x381   :  { %4588 = vtanh.f32 %v784_v53 }
 0x38b   :  { %v4589_v6 = vpop.eup %4588 }
 0x38c   :  { %v787_v29 = vmul.f32 %v4589_v6, %v786_v52 }
 0x38e   :  { %v5675_v61 = vadd.f32 %v791_v54, %v787_v29 }
 0x390   :  { %v1330_v62 = vpack.c.bf16 %v5675_v61, %v5675_v61 }
 0x392   :  { %v5682_v63 = vrot.slane %v1330_v62, 1 }
 0x394   :  { %1367 = vmatmul.mubr.bf16.vlgmr.msra.gmra.mrb[16].mxu1 %v5682_v63  ;;  %3958 = vmatmul.mubr.bf16.vlgmr.msra.gmra.mrb[24].mxu0 %v5682_v63 }
 0x395   :  { %1449 = vmatpush1.bf16.msra.mxu1 %v5325_v28  ;;  %3962 = vmatpush3.bf16.msra.mxu0 %v5330_v32 }
 0x396   :  { %1450 = vmatprep.subr.bf16.mxu1 %v5337_v38  ;;  %3963 = vmatprep.subr.bf16.mxu0 %v7408_v23 }
 0x397   :  { %1480 = vmatprep.mubr.bf16.mxu1 %v7412_v24  ;;  %3977 = vmatprep.mubr.msk.bf16.mxu0 %vm4900_vm0, %v7408_v23 }
 0x399   :  { %1451 = vmatpush1.bf16.msra.mxu1 %v5344_v40  ;;  %3964 = vmatpush3.bf16.msra.mxu0 %v5349_v41 }
 0x39a   :  { %1452 = vmatprep.subr.bf16.mxu1 %v5356_v42  ;;  %3965 = vmatprep.subr.bf16.mxu0 %v7408_v23 }
 0x39c   :  { %v1262_v3 = vpop.f32.mrb[12].mxu1  ;;  %v1303_v4 = vpop.f32.mrb[20].mxu0 }
 0x39d   :  { %v4362_v54 = vadd.f32 %v5704_v0, %v1262_v3  ;;  %v1264_v53 = vpop.f32.mrb[13].mxu1  ;;  %1453 = vmatpush1.bf16.msra.mxu1 %v5366_v45  ;;  %3966 = vmatpush3.bf16.msra.mxu0 %v5371_v46  ;;  %v3939_v10 = vpop.f32.mrb[21].mxu0  ;;  %v5735_v3 = vrot.slane %v1083_v36, %v5278_v8  ;;  %v7434_v36 = vld [vmem:[#allocation29_spill] sm:$0xff] }
 0x39e   :  { %v1266_v5 = vpop.f32.mrb[14].mxu1  ;;  %1454 = vmatprep.subr.bf16.mxu1 %v5378_v7  ;;  %3967 = vmatprep.subr.bf16.mxu0 %v7408_v23  ;;  %v1306_v52 = vpop.f32.mrb[22].mxu0  ;;  %v4364_v59 = vadd.f32 %v5710_v11, %v1264_v53  ;;  %v7431_v53 = vld [vmem:[#allocation27_spill] sm:$0xff] }
 0x39f   :  { %v3553_v6 = vmul.f32 -1.442695, %v4362_v54  ;;  %v1267_v29 = vpop.f32.mrb[15].mxu1  ;;  %v3940_v62 = vpop.f32.mrb[23].mxu0  ;;  %7429 = vst [vmem:[#allocation51_spill] sm:$0xff] %v5735_v3  ;;  %v7430_v54 = vld [vmem:[#allocation26_spill] sm:$0xff]  ;;  %v5745_v52 = vrot.slane %v5687_v58, %v5278_v8 }
 0x3a0   :  { %v3554_v56 = vmul.f32 -1.442695, %v4364_v59  ;;  %v7432_v5 = vld [vmem:[#allocation28_spill] sm:$0xff]  ;;  %v7435_v29 = vld [vmem:[#allocation30_spill] sm:$0xff]  ;;  %v1304_v62 = vadd.f32 %v1303_v4, %v5735_v3  ;;  %v7436_v59 = vld [vmem:[#allocation31_spill] sm:$0xff] }
 0x3a1   :  { %4590 = vpow2.f32 %v3553_v6  ;;  %1455 = vmatpush1.bf16.msra.mxu1 %v5385_v9  ;;  %3968 = vmatpush3.bf16.msra.mxu0 %v5390_v12  ;;  %7433 = vst [vmem:[#allocation26_spill] sm:$0xff] %v5745_v52  ;;  %v1046_v8 = vadd.f32 %v5672_v60, %v5745_v52  ;;  %v7439_v4 = vld [vmem:[#allocation34_spill] sm:$0xff]  ;;  %v7441_v3 = vld [vmem:[#allocation36_spill] sm:$0xff] }
 0x3a2   :  { %1456 = vmatprep.subr.bf16.mxu1 %v5397_v13  ;;  %3969 = vmatprep.subr.bf16.mxu0 %v7408_v23  ;;  %4592 = vpow2.f32 %v3554_v56  ;;  %v7437_v56 = vld [vmem:[#allocation32_spill] sm:$0xff]  ;;  %v7443_v60 = vld [vmem:[#allocation38_spill] sm:$0xff] }
 0x3a5   :  { %1457 = vmatpush1.bf16.msra.mxu1 %v5404_v15  ;;  %3970 = vmatpush3.bf16.msra.mxu0 %v5409_v16 }
 0x3a6   :  { %1458 = vmatprep.subr.bf16.mxu1 %v5416_v18  ;;  %3971 = vmatprep.subr.bf16.mxu0 %v7408_v23 }
 0x3a9   :  { %1459 = vmatpush1.bf16.msra.mxu1 %v5423_v19  ;;  %3972 = vmatpush3.bf16.msra.mxu0 %v5428_v21 }
 0x3aa   :  { %1460 = vmatprep.subr.bf16.mxu1 %v5435_v22  ;;  %3973 = vmatprep.subr.bf16.mxu0 %v7408_v23 }
 0x3ab   :  { %v4591_v55 = vpop.eup %4590 }
 0x3ac   :  { %v1313_v57 = vadd.f32 1.0, %v4591_v55  ;;  %v4593_v10 = vpop.eup %4592  ;;  %v7438_v55 = vld [vmem:[#allocation33_spill] sm:$0xff] }
 0x3ad   :  { %1461 = vmatpush1.bf16.msra.mxu1 %v5442_v25  ;;  %3974 = vmatpush3.bf16.msra.mxu0 %v5447_v26  ;;  %v1320_v6 = vadd.f32 1.0, %v4593_v10  ;;  %v7440_v10 = vld [vmem:[#allocation35_spill] sm:$0xff] }
 0x3ae   :  { %4594 = vrcp.f32 %v1313_v57  ;;  %1462 = vmatprep.subr.bf16.mxu1 %v5454_v31  ;;  %3975 = vmatprep.subr.bf16.mxu0 %v7408_v23 }
 0x3af   :  { %4596 = vrcp.f32 %v1320_v6  ;;  %v7444_v6 = vld [vmem:[#allocation39_spill] sm:$0xff] }
 0x3b1   :  { %1463 = vmatpush1.bf16.msra.mxu1 %v7430_v54  ;;  %3976 = vmatpush3.bf16.msra.mxu0 %v7431_v53 }
 0x3b2   :  { %1530 = vmatprep.subr.bf16.mxu1 %v7432_v5  ;;  %3981 = vmatprep.subr.bf16.mxu0 %v7408_v23 }
 0x3b4   :  { %1481 = vmatmul.mubr.bf16.vlgmr.msra.gmra.mrb[20].mxu1 %v5682_v63  ;;  %3978 = vmatmul.mubr.bf16.vlgmr.msra.gmra.mrb[28].mxu0 %v5682_v63 }
 0x3b5   :  { %1531 = vmatpush1.bf16.msra.mxu1 %v7434_v36  ;;  %3982 = vmatpush3.bf16.msra.mxu0 %v7435_v29 }
 0x3b6   :  { %1532 = vmatprep.subr.bf16.mxu1 %v7436_v59  ;;  %3983 = vmatprep.subr.bf16.mxu0 %v7408_v23  ;;  %v7442_v59 = vld [vmem:[#allocation37_spill] sm:$0xff] }
 0x3b7   :  { %1562 = vmatprep.mubr.bf16.mxu1 %v7412_v24  ;;  %3997 = vmatprep.mubr.msk.bf16.mxu0 %vm4900_vm0, %v7408_v23 }
 0x3b8   :  { %v4595_v63 = vpop.eup %4594 }
 0x3b9   :  { %v1323_v58 = vmul.f32 %v4595_v63, %v1304_v62  ;;  %1533 = vmatpush1.bf16.msra.mxu1 %v7437_v56  ;;  %3984 = vmatpush3.bf16.msra.mxu0 %v7438_v55  ;;  %v7445_v62 = vld [vmem:[#allocation40_spill] sm:$0xff]  ;;  %v4597_v63 = vpop.eup %4596 }
 0x3ba   :  { %1534 = vmatprep.subr.bf16.mxu1 %v7439_v4  ;;  %3985 = vmatprep.subr.bf16.mxu0 %v7408_v23  ;;  %v7446_v4 = vld [vmem:[#allocation41_spill] sm:$0xff] }
 0x3bb   :  { %v1324_v57 = vadd.f32 %v1323_v58, %v1046_v8  ;;  %v7447_v8 = vld [vmem:[#allocation42_spill] sm:$0xff]  ;;  %v7448_v58 = vld [vmem:[#allocation43_spill] sm:$0xff] }
 0x3bd   :  { %4598 = vtanh.f32 %v1324_v57  ;;  %1535 = vmatpush1.bf16.msra.mxu1 %v7440_v10  ;;  %3986 = vmatpush3.bf16.msra.mxu0 %v7441_v3  ;;  %v1326_v57 = vsub.f32 1.0, %v4597_v63  ;;  %v1328_v10 = vmul.f32 0.0, %v4597_v63  ;;  %v7461_v63 = vld [vmem:[#allocation15_spill] sm:$0xff] }
 0x3be   :  { %1536 = vmatprep.subr.bf16.mxu1 %v7442_v59  ;;  %3987 = vmatprep.subr.bf16.mxu0 %v7408_v23 }
 0x3c1   :  { %1537 = vmatpush1.bf16.msra.mxu1 %v7443_v60  ;;  %3988 = vmatpush3.bf16.msra.mxu0 %v7444_v6  ;;  %v7449_v6 = vld [vmem:[#allocation44_spill] sm:$0xff] }
 0x3c2   :  { %1538 = vmatprep.subr.bf16.mxu1 %v7445_v62  ;;  %3989 = vmatprep.subr.bf16.mxu0 %v7408_v23  ;;  %v7450_v62 = vld [vmem:[#allocation45_spill] sm:$0xff] }
 0x3c5   :  { %1539 = vmatpush1.bf16.msra.mxu1 %v7446_v4  ;;  %3990 = vmatpush3.bf16.msra.mxu0 %v7447_v8 }
 0x3c6   :  { %1540 = vmatprep.subr.bf16.mxu1 %v7448_v58  ;;  %3991 = vmatprep.subr.bf16.mxu0 %v7408_v23 }
 0x3c7   :  { %v4599_v59 = vpop.eup %4598 }
 0x3c8   :  { %v1327_v3 = vmul.f32 %v4599_v59, %v1326_v57  ;;  %v7462_v57 = vld [vmem:[#allocation16_spill] sm:$0xff] }
 0x3c9   :  { %1541 = vmatpush1.bf16.msra.mxu1 %v5577_v37  ;;  %3992 = vmatpush3.bf16.msra.mxu0 %v7449_v6 }
 0x3ca   :  { %1542 = vmatprep.subr.bf16.mxu1 %v7450_v62  ;;  %3993 = vmatprep.subr.bf16.mxu0 %v7408_v23  ;;  %v5777_v60 = vadd.f32 %v1328_v10, %v1327_v3  ;;  %v7455_v3 = vld [vmem:[#allocation9_spill] sm:$0xff]  ;;  %v7460_v10 = vld [vmem:[#allocation14_spill] sm:$0xff] }
 0x3cc   :  { %v1529_v59 = vpack.c.bf16 %v5777_v60, %v5777_v60 }
 0x3cd   :  { %1543 = vmatpush1.bf16.msra.mxu1 %v5596_v34  ;;  %3994 = vmatpush3.bf16.msra.mxu0 %v5602_v27 }
 0x3ce   :  { %1544 = vmatprep.subr.bf16.mxu1 %v5608_v2  ;;  %3995 = vmatprep.subr.bf16.mxu0 %v7408_v23 }
 0x3d1   :  { %1545 = vmatpush1.bf16.msra.mxu1 %v5615_v35  ;;  %3996 = vmatpush3.bf16.msra.mxu0 %v5621_v1 }
 0x3d2   :  { %1636 = vmatprep.subr.bf16.mxu1 %v5081_v39  ;;  %4001 = vmatprep.subr.bf16.mxu0 %v7408_v23  ;;  %v7451_v39 = vld [vmem:[#allocation5_spill] sm:$0xff] }
 0x3d4   :  { %1563 = vmatmul.mubr.bf16.vlgmr.msra.gmra.mrb[20].mxu1 %v1529_v59  ;;  %3998 = vmatmul.mubr.bf16.vlgmr.msra.gmra.mrb[32].mxu0 %v1529_v59  ;;  %v7463_v59 = vld [vmem:[#allocation17_spill] sm:$0xff] }
 0x3d5   :  { %1637 = vmatpush1.bf16.msra.mxu1 %v5088_v43  ;;  %4002 = vmatpush3.bf16.msra.mxu0 %v5093_v44  ;;  %v7452_v43 = vld [vmem:[#allocation6_spill] sm:$0xff]  ;;  %v7453_v44 = vld [vmem:[#allocation7_spill] sm:$0xff] }
 0x3d6   :  { %1638 = vmatprep.subr.bf16.mxu1 %v5098_v47  ;;  %4003 = vmatprep.subr.bf16.mxu0 %v7408_v23  ;;  %v7454_v47 = vld [vmem:[#allocation8_spill] sm:$0xff] }
 0x3d7   :  { %1668 = vmatprep.mubr.bf16.mxu1 %v7412_v24  ;;  %4017 = vmatprep.mubr.msk.bf16.mxu0 %vm4900_vm0, %v7408_v23 }
 0x3d9   :  { %1639 = vmatpush1.bf16.msra.mxu1 %v5104_v48  ;;  %4004 = vmatpush3.bf16.msra.mxu0 %v5110_v49  ;;  %v7456_v48 = vld [vmem:[#allocation10_spill] sm:$0xff]  ;;  %v7457_v49 = vld [vmem:[#allocation11_spill] sm:$0xff] }
 0x3da   :  { %1640 = vmatprep.subr.bf16.mxu1 %v5116_v50  ;;  %4005 = vmatprep.subr.bf16.mxu0 %v7408_v23  ;;  %v7458_v50 = vld [vmem:[#allocation12_spill] sm:$0xff] }
 0x3dd   :  { %1641 = vmatpush1.bf16.msra.mxu1 %v5126_v51  ;;  %4006 = vmatpush3.bf16.msra.mxu0 %v7451_v39  ;;  %v7459_v51 = vld [vmem:[#allocation13_spill] sm:$0xff]  ;;  %v7464_v39 = vld [vmem:[#allocation18_spill] sm:$0xff] }
 0x3de   :  { %1642 = vmatprep.subr.bf16.mxu1 %v7452_v43  ;;  %4007 = vmatprep.subr.bf16.mxu0 %v7408_v23  ;;  %v7465_v43 = vld [vmem:[#allocation19_spill] sm:$0xff] }
 0x3e1   :  { %1643 = vmatpush1.bf16.msra.mxu1 %v7453_v44  ;;  %4008 = vmatpush3.bf16.msra.mxu0 %v7454_v47  ;;  %v7466_v44 = vld [vmem:[#allocation20_spill] sm:$0xff]  ;;  %v7467_v47 = vld [vmem:[#allocation21_spill] sm:$0xff] }
 0x3e2   :  { %1644 = vmatprep.subr.bf16.mxu1 %v7455_v3  ;;  %4009 = vmatprep.subr.bf16.mxu0 %v7408_v23 }
 0x3e5   :  { %1645 = vmatpush1.bf16.msra.mxu1 %v7456_v48  ;;  %4010 = vmatpush3.bf16.msra.mxu0 %v7457_v49  ;;  %v7468_v49 = vld [vmem:[#allocation25_spill] sm:$0xff] }
 0x3e6   :  { %1646 = vmatprep.subr.bf16.mxu1 %v7458_v50  ;;  %4011 = vmatprep.subr.bf16.mxu0 %v7408_v23 }
 0x3e9   :  { %1647 = vmatpush1.bf16.msra.mxu1 %v7459_v51  ;;  %4012 = vmatpush3.bf16.msra.mxu0 %v7460_v10 }
 0x3ea   :  { %1648 = vmatprep.subr.bf16.mxu1 %v7461_v63  ;;  %4013 = vmatprep.subr.bf16.mxu0 %v7408_v23 }
 0x3ed   :  { %1649 = vmatpush1.bf16.msra.mxu1 %v7462_v57  ;;  %4014 = vmatpush3.bf16.msra.mxu0 %v7463_v59 }
 0x3ee   :  { %1650 = vmatprep.subr.bf16.mxu1 %v7464_v39  ;;  %4015 = vmatprep.subr.bf16.mxu0 %v7408_v23 }
 0x3f1   :  { %1651 = vmatpush1.bf16.msra.mxu1 %v7465_v43  ;;  %4016 = vmatpush3.bf16.msra.mxu0 %v7466_v44 }
 0x3f2   :  { %1750 = vmatprep.subr.bf16.mxu1 %v7467_v47  ;;  %4021 = vmatprep.subr.bf16.mxu0 %v7408_v23 }
 0x467   :  { %v1368_v3 = vpop.f32.mrb[16].mxu1  ;;  %v1409_v48 = vpop.f32.mrb[24].mxu0 }
 0x468   :  { %v1369_v50 = vadd.f32 %v1368_v3, %v7468_v49  ;;  %v1370_v51 = vpop.f32.mrb[17].mxu1  ;;  %v3959_v10 = vpop.f32.mrb[25].mxu0 }
 0x469   :  { %v1371_v63 = vadd.f32 %v1370_v51, %v5307_v30  ;;  %v1372_v57 = vpop.f32.mrb[18].mxu1  ;;  %v1412_v59 = vpop.f32.mrb[26].mxu0  ;;  %v1410_v51 = vadd.f32 %v1409_v48, %v5316_v14 }
 0x46a   :  { %v1416_v39 = vrot.slane %v1369_v50, 4  ;;  %v1373_v1 = vpop.f32.mrb[19].mxu1  ;;  %v3960_v35 = vpop.f32.mrb[27].mxu0 }
 0x46b   :  { %v1426_v43 = vrot.slane %v1371_v63, 4  ;;  %v1436_v50 = vrot.slane %v1410_v51, 4  ;;  %v1444_v35 = vrot.slane %v5675_v61, 6 }
 0x46c   :  { %v1418_v44 = vadd.f32 %v1416_v39, %v5309_v33 }
 0x46d   :  { %v1428_v47 = vadd.f32 %v1426_v43, %v5292_v20 }
 0x46e   :  { %v3555_v2 = vmul.f32 -1.442695, %v1418_v44 }
 0x46f   :  { %v3556_v27 = vmul.f32 -1.442695, %v1428_v47 }
 0x470   :  { %4600 = vpow2.f32 %v3555_v2 }
 0x471   :  { %4602 = vpow2.f32 %v3556_v27 }
 0x47a   :  { %v4601_v34 = vpop.eup %4600 }
 0x47b   :  { %v4603_v3 = vpop.eup %4602  ;;  %v1422_v49 = vadd.f32 1.0, %v4601_v34 }
 0x47c   :  { %v1432_v10 = vadd.f32 1.0, %v4603_v3 }
 0x47d   :  { %4604 = vrcp.f32 %v1422_v49 }
 0x47e   :  { %4606 = vrcp.f32 %v1432_v10 }
 0x487   :  { %v4605_v1 = vpop.eup %4604  ;;  %v5830_v63 = vpop.f32.mrb[28].mxu0 }
 0x488   :  { %v4607_v57 = vpop.eup %4606  ;;  %v1438_v59 = vmul.f32 %v4605_v1, %v1436_v50  ;;  %v3979_v39 = vpop.f32.mrb[29].mxu0 }
 0x489   :  { %v1526_v43 = vpop.f32.mrb[30].mxu0  ;;  %v1446_v2 = vmul.f32 %v4607_v57, %v1444_v35  ;;  %v1441_v34 = vsub.f32 1.0, %v4607_v57  ;;  %v7481_v39 = vld [vmem:[#allocation49_spill] sm:$0xff] }
 0x48a   :  { %v1439_v27 = vadd.f32 %v1438_v59, %v5290_v17  ;;  %v3980_v44 = vpop.f32.mrb[31].mxu0  ;;  %v7480_v59 = vld [vmem:[#allocation48_spill] sm:$0xff]  ;;  %v5931_v43 = vld [vmem:[%s7234_s3 + $0x8] ss:$12 sps:$4 sm:$0xff]  }
 0x48b   :  { %v5953_v44 = vld [vmem:[%s7234_s3 + $0x20] ss:$12 sps:$4 sm:$0xff]  }
 0x48c   :  { %4608 = vtanh.f32 %v1439_v27  ;;  %v5947_v27 = vld [vmem:[%s7234_s3 + $0x18] ss:$12 sps:$4 sm:$0xff]  }
 0x496   :  { %v4609_v49 = vpop.eup %4608 }
 0x497   :  { %v1442_v47 = vmul.f32 %v4609_v49, %v1441_v34  ;;  %v5959_v34 = vld [vmem:[%s7234_s3 + $0x34] ss:$12 sps:$4 sm:$0xff]   ;;  %v5966_v49 = vld [vmem:[%s7234_s3 + $0x30] ss:$12 sps:$4 sm:$0xff]  }
 0x498   :  { %7483 = vst [vmem:[#allocation27_spill] sm:$0xff] %v5966_v49 }
 0x499   :  { %v5833_v3 = vadd.f32 %v1446_v2, %v1442_v47  ;;  %v5937_v2 = vld [vmem:[%s7234_s3 + $0x1c] ss:$12 sps:$4 sm:$0xff]   ;;  %v5972_v47 = vld [vmem:[%s7234_s3 + $0x38] ss:$12 sps:$4 sm:$0xff]  }
 0x49a   :  { %7484 = vst [vmem:[#allocation28_spill] sm:$0xff] %v5972_v47 }
 0x49b   :  { %v1632_v48 = vpack.c.bf16 %v5833_v3, %v5833_v3 }
 0x49d   :  { %v1634_v61 = vrot.slane %v1632_v48, 2  ;;  %v5978_v48 = vld [vmem:[%s7234_s3 + $0x4c] ss:$12 sps:$4 sm:$0xff]  }
 0x49e   :  { %7485 = vst [vmem:[#allocation29_spill] sm:$0xff] %v5978_v48 }
 0x49f   :  { %1669 = vmatmul.mubr.bf16.vlgmr.msra.gmra.mrb[24].mxu1 %v1634_v61  ;;  %4018 = vmatmul.mubr.bf16.vlgmr.msra.gmra.mrb[36].mxu0 %v1634_v61 }
 0x4a0   :  { %1751 = vmatpush1.bf16.msra.mxu1 %v5325_v28  ;;  %4022 = vmatpush3.bf16.msra.mxu0 %v5330_v32 }
 0x4a1   :  { %1752 = vmatprep.subr.bf16.mxu1 %v5337_v38  ;;  %4023 = vmatprep.subr.bf16.mxu0 %v7408_v23 }
 0x4a2   :  { %1782 = vmatprep.mubr.bf16.mxu1 %v7412_v24  ;;  %4037 = vmatprep.mubr.msk.bf16.mxu0 %vm4900_vm0, %v7408_v23 }
 0x4a4   :  { %1753 = vmatpush1.bf16.msra.mxu1 %v5344_v40  ;;  %4024 = vmatpush3.bf16.msra.mxu0 %v5349_v41 }
 0x4a5   :  { %1754 = vmatprep.subr.bf16.mxu1 %v5356_v42  ;;  %4025 = vmatprep.subr.bf16.mxu0 %v7408_v23 }
 0x4a7   :  { %v1564_v28 = vpop.f32.mrb[20].mxu1  ;;  %v1605_v10 = vpop.f32.mrb[32].mxu0 }
 0x4a8   :  { %v4366_v32 = vadd.f32 %v5704_v0, %v1564_v28  ;;  %v1566_v38 = vpop.f32.mrb[21].mxu1  ;;  %v3999_v51 = vpop.f32.mrb[33].mxu0  ;;  %1755 = vmatpush1.bf16.msra.mxu1 %v5366_v45  ;;  %4026 = vmatpush3.bf16.msra.mxu0 %v5371_v46  ;;  %v5991_v28 = vld [vmem:[%s7234_s3 + $0x50] ss:$12 sps:$4 sm:$0xff]  }
 0x4a9   :  { %v1568_v50 = vpop.f32.mrb[22].mxu1  ;;  %v1608_v1 = vpop.f32.mrb[34].mxu0  ;;  %1756 = vmatprep.subr.bf16.mxu1 %v5378_v7  ;;  %4027 = vmatprep.subr.bf16.mxu0 %v7408_v23  ;;  %v4368_v35 = vadd.f32 %v5710_v11, %v1566_v38  ;;  %7487 = vst [vmem:[#allocation32_spill] sm:$0xff] %v5991_v28  ;;  %v6010_v38 = vld [vmem:[%s7234_s3 + $0x68] ss:$12 sps:$4 sm:$0xff]  }
 0x4aa   :  { %v3557_v40 = vmul.f32 -1.442695, %v4366_v32  ;;  %v1569_v41 = vpop.f32.mrb[23].mxu1  ;;  %v4000_v42 = vpop.f32.mrb[35].mxu0  ;;  %v6004_v32 = vld [vmem:[%s7234_s3 + $0x60] ss:$12 sps:$4 sm:$0xff]  }
 0x4ab   :  { %v3558_v45 = vmul.f32 -1.442695, %v4368_v35  ;;  %7489 = vst [vmem:[#allocation41_spill] sm:$0xff] %v6004_v32  ;;  %7490 = vst [vmem:[#allocation42_spill] sm:$0xff] %v6010_v38  ;;  %v6016_v51 = vld [vmem:[%s7234_s3 + $0x7c] ss:$12 sps:$4 sm:$0xff]  }
 0x4ac   :  { %4610 = vpow2.f32 %v3557_v40  ;;  %1757 = vmatpush1.bf16.msra.mxu1 %v5385_v9  ;;  %4028 = vmatpush3.bf16.msra.mxu0 %v5390_v12  ;;  %7491 = vst [vmem:[#allocation43_spill] sm:$0xff] %v6016_v51  ;;  %v6023_v50 = vld [vmem:[%s7234_s3 + $0x78] ss:$12 sps:$4 sm:$0xff]   ;;  %v6029_v1 = vld [vmem:[%s7234_s3 + $0x80] ss:$12 sps:$4 sm:$0xff]  }
 0x4ad   :  { %1758 = vmatprep.subr.bf16.mxu1 %v5397_v13  ;;  %4029 = vmatprep.subr.bf16.mxu0 %v7408_v23  ;;  %4612 = vpow2.f32 %v3558_v45  ;;  %v7469_v13 = vld [vmem:[#allocation31_spill] sm:$0xff]  ;;  %7492 = vst [vmem:[#allocation44_spill] sm:$0xff] %v6023_v50  ;;  %7493 = vst [vmem:[#allocation45_spill] sm:$0xff] %v6029_v1 }
 0x4ae   :  { %v6035_v40 = vld [vmem:[%s7234_s3 + $0x94] ss:$12 sps:$4 sm:$0xff]   ;;  %v6042_v41 = vld [vmem:[%s7234_s3 + $0x90] ss:$12 sps:$4 sm:$0xff]   ;;  %v6048_v42 = vld [vmem:[%s7234_s3 + $0x98] ss:$12 sps:$4 sm:$0xff]  }
 0x4af   :  { %7494 = vst [vmem:[#allocation5_spill] sm:$0xff] %v6035_v40  ;;  %7495 = vst [vmem:[#allocation6_spill] sm:$0xff] %v6042_v41  ;;  %v6054_v35 = vld [vmem:[%s7234_s3 + $0xac] ss:$12 sps:$4 sm:$0xff]   ;;  %v6061_v45 = vld [vmem:[%s7234_s3 + $0xa8] ss:$12 sps:$4 sm:$0xff]  }
 0x4b0   :  { %1759 = vmatpush1.bf16.msra.mxu1 %v5404_v15  ;;  %4030 = vmatpush3.bf16.msra.mxu0 %v5409_v16  ;;  %v7470_v15 = vld [vmem:[#allocation51_spill] sm:$0xff]  ;;  %7496 = vst [vmem:[#allocation7_spill] sm:$0xff] %v6048_v42  ;;  %7497 = vst [vmem:[#allocation8_spill] sm:$0xff] %v6054_v35 }
 0x4b1   :  { %1760 = vmatprep.subr.bf16.mxu1 %v5416_v18  ;;  %4031 = vmatprep.subr.bf16.mxu0 %v7408_v23  ;;  %v1606_v16 = vadd.f32 %v1605_v10, %v7470_v15  ;;  %v5997_v10 = vld [vmem:[%s7234_s3 + $0x64] ss:$12 sps:$4 sm:$0xff]   ;;  %7498 = vst [vmem:[#allocation9_spill] sm:$0xff] %v6061_v45 }
 0x4b2   :  { %7488 = vst [vmem:[#allocation33_spill] sm:$0xff] %v5997_v10 }
 0x4b4   :  { %1761 = vmatpush1.bf16.msra.mxu1 %v5423_v19  ;;  %4032 = vmatpush3.bf16.msra.mxu0 %v5428_v21  ;;  %v1524_v19 = vadd.f32 %v5830_v63, %v5745_v52 }
 0x4b5   :  { %1762 = vmatprep.subr.bf16.mxu1 %v5435_v22  ;;  %4033 = vmatprep.subr.bf16.mxu0 %v7408_v23  ;;  %v7471_v22 = vld [vmem:[#allocation34_spill] sm:$0xff] }
 0x4b6   :  { %v4611_v46 = vpop.eup %4610 }
 0x4b7   :  { %v1615_v7 = vadd.f32 1.0, %v4611_v46  ;;  %v4613_v9 = vpop.eup %4612  ;;  %v6067_v46 = vld [vmem:[%s7234_s3 + $0xb0] ss:$12 sps:$4 sm:$0xff]  }
 0x4b8   :  { %1763 = vmatpush1.bf16.msra.mxu1 %v5442_v25  ;;  %4034 = vmatpush3.bf16.msra.mxu0 %v5447_v26  ;;  %v1622_v12 = vadd.f32 1.0, %v4613_v9  ;;  %v7472_v26 = vld [vmem:[#allocation35_spill] sm:$0xff]  ;;  %7499 = vst [vmem:[#allocation10_spill] sm:$0xff] %v6067_v46 }
 0x4b9   :  { %4614 = vrcp.f32 %v1615_v7  ;;  %1764 = vmatprep.subr.bf16.mxu1 %v5454_v31  ;;  %4035 = vmatprep.subr.bf16.mxu0 %v7408_v23  ;;  %v7473_v31 = vld [vmem:[#allocation36_spill] sm:$0xff]  ;;  %v6073_v7 = vld [vmem:[%s7237_s6 + $0x4] ss:$12 sps:$4 sm:$0xff]  }
 0x4ba   :  { %4616 = vrcp.f32 %v1622_v12  ;;  %7500 = vst [vmem:[#allocation11_spill] sm:$0xff] %v6073_v7 }
 0x4bc   :  { %1765 = vmatpush1.bf16.msra.mxu1 %v7430_v54  ;;  %4036 = vmatpush3.bf16.msra.mxu0 %v7431_v53  ;;  %v7474_v54 = vld [vmem:[#allocation37_spill] sm:$0xff]  ;;  %v7475_v53 = vld [vmem:[#allocation38_spill] sm:$0xff] }
 0x4bd   :  { %1832 = vmatprep.subr.bf16.mxu1 %v7432_v5  ;;  %4041 = vmatprep.subr.bf16.mxu0 %v7408_v23  ;;  %v7476_v5 = vld [vmem:[#allocation39_spill] sm:$0xff] }
 0x4bf   :  { %1783 = vmatmul.mubr.bf16.vlgmr.msra.gmra.mrb[28].mxu1 %v1634_v61  ;;  %4038 = vmatmul.mubr.bf16.vlgmr.msra.gmra.mrb[40].mxu0 %v1634_v61  ;;  %v5985_v61 = vld [vmem:[%s7234_s3 + $0x48] ss:$12 sps:$4 sm:$0xff]  }
 0x4c0   :  { %1833 = vmatpush1.bf16.msra.mxu1 %v7434_v36  ;;  %4042 = vmatpush3.bf16.msra.mxu0 %v7435_v29  ;;  %v7477_v36 = vld [vmem:[#allocation40_spill] sm:$0xff]  ;;  %7486 = vst [vmem:[#allocation30_spill] sm:$0xff] %v5985_v61 }
 0x4c1   :  { %1834 = vmatprep.subr.bf16.mxu1 %v7469_v13  ;;  %4043 = vmatprep.subr.bf16.mxu0 %v7408_v23  ;;  %v7501_v13 = vld [vmem:[#allocation25_spill] sm:$0xff] }
 0x4c2   :  { %1864 = vmatprep.mubr.bf16.mxu1 %v7412_v24  ;;  %4057 = vmatprep.mubr.msk.bf16.mxu0 %vm4900_vm0, %v7408_v23 }
 0x4c3   :  { %v4615_v18 = vpop.eup %4614 }
 0x4c4   :  { %v1625_v21 = vmul.f32 %v4615_v18, %v1606_v16  ;;  %1835 = vmatpush1.bf16.msra.mxu1 %v7437_v56  ;;  %4044 = vmatpush3.bf16.msra.mxu0 %v7438_v55  ;;  %v4617_v29 = vpop.eup %4616 }
 0x4c5   :  { %1836 = vmatprep.subr.bf16.mxu1 %v7471_v22  ;;  %4045 = vmatprep.subr.bf16.mxu0 %v7408_v23  ;;  %v1628_v56 = vsub.f32 1.0, %v4617_v29  ;;  %v1630_v57 = vmul.f32 %v4617_v29, %v5777_v60  ;;  %v7482_v60 = vld [vmem:[#allocation50_spill] sm:$0xff] }
 0x4c6   :  { %v1626_v25 = vadd.f32 %v1625_v21, %v1524_v19 }
 0x4c8   :  { %4618 = vtanh.f32 %v1626_v25  ;;  %1837 = vmatpush1.bf16.msra.mxu1 %v7472_v26  ;;  %4046 = vmatpush3.bf16.msra.mxu0 %v7473_v31 }
 0x4c9   :  { %1838 = vmatprep.subr.bf16.mxu1 %v7474_v54  ;;  %4047 = vmatprep.subr.bf16.mxu0 %v7408_v23 }
 0x4cc   :  { %1839 = vmatpush1.bf16.msra.mxu1 %v7475_v53  ;;  %4048 = vmatpush3.bf16.msra.mxu0 %v7476_v5 }
 0x4cd   :  { %1840 = vmatprep.subr.bf16.mxu1 %v7477_v36  ;;  %4049 = vmatprep.subr.bf16.mxu0 %v7408_v23 }
 0x4d0   :  { %1841 = vmatpush1.bf16.msra.mxu1 %v7446_v4  ;;  %4050 = vmatpush3.bf16.msra.mxu0 %v7447_v8  ;;  %v7478_v8 = vld [vmem:[#allocation46_spill] sm:$0xff] }
 0x4d1   :  { %1842 = vmatprep.subr.bf16.mxu1 %v7448_v58  ;;  %4051 = vmatprep.subr.bf16.mxu0 %v7408_v23  ;;  %v7479_v58 = vld [vmem:[#allocation47_spill] sm:$0xff] }
 0x4d2   :  { %v4619_v55 = vpop.eup %4618 }
 0x4d3   :  { %v1629_v63 = vmul.f32 %v4619_v55, %v1628_v56 }
 0x4d4   :  { %1843 = vmatpush1.bf16.msra.mxu1 %v5577_v37  ;;  %4052 = vmatpush3.bf16.msra.mxu0 %v7449_v6  ;;  %v5918_v6 = vld [vmem:[%s7234_s3 + $0x4] ss:$12 sps:$4 sm:$0xff]  }
 0x4d5   :  { %1844 = vmatprep.subr.bf16.mxu1 %v7450_v62  ;;  %4053 = vmatprep.subr.bf16.mxu0 %v7408_v23  ;;  %v5905_v4 = vadd.f32 %v1630_v57, %v1629_v63  ;;  %v5925_v62 = vld [vmem:[%s7234_s3] ss:$12 sps:$4 sm:$0xff]  }
 0x4d7   :  { %v1831_v37 = vpack.c.bf16 %v5905_v4, %v5905_v4 }
 0x4d8   :  { %1845 = vmatpush1.bf16.msra.mxu1 %v7478_v8  ;;  %4054 = vmatpush3.bf16.msra.mxu0 %v7479_v58 }
 0x4d9   :  { %1846 = vmatprep.subr.bf16.mxu1 %v7480_v59  ;;  %4055 = vmatprep.subr.bf16.mxu0 %v7408_v23 }
 0x4dc   :  { %1847 = vmatpush1.bf16.msra.mxu1 %v7481_v39  ;;  %4056 = vmatpush3.bf16.msra.mxu0 %v7482_v60  ;;  %v1746_v60 = vrot.slane %v5833_v3, 6 }
 0x4dd   :  { %1938 = vmatprep.subr.bf16.mxu1 %v5918_v6  ;;  %4061 = vmatprep.subr.bf16.mxu0 %v7408_v23 }
 0x4df   :  { %1865 = vmatmul.mubr.bf16.vlgmr.msra.gmra.mrb[28].mxu1 %v1831_v37  ;;  %4058 = vmatmul.mubr.bf16.vlgmr.msra.gmra.mrb[44].mxu0 %v1831_v37 }
 0x4e0   :  { %1939 = vmatpush1.bf16.msra.mxu1 %v5925_v62  ;;  %4062 = vmatpush3.bf16.msra.mxu0 %v5931_v43 }
 0x4e1   :  { %1940 = vmatprep.subr.bf16.mxu1 %v5937_v2  ;;  %4063 = vmatprep.subr.bf16.mxu0 %v7408_v23 }
 0x4e2   :  { %1970 = vmatprep.mubr.bf16.mxu1 %v7412_v24  ;;  %4077 = vmatprep.mubr.msk.bf16.mxu0 %vm4900_vm0, %v7408_v23 }
 0x4e4   :  { %1941 = vmatpush1.bf16.msra.mxu1 %v5947_v27  ;;  %4064 = vmatpush3.bf16.msra.mxu0 %v5953_v44 }
 0x4e5   :  { %1942 = vmatprep.subr.bf16.mxu1 %v5959_v34  ;;  %4065 = vmatprep.subr.bf16.mxu0 %v7408_v23 }
 0x4e8   :  { %1943 = vmatpush1.bf16.msra.mxu1 %v5966_v49  ;;  %4066 = vmatpush3.bf16.msra.mxu0 %v5972_v47 }
 0x4e9   :  { %1944 = vmatprep.subr.bf16.mxu1 %v5978_v48  ;;  %4067 = vmatprep.subr.bf16.mxu0 %v7408_v23 }
 0x4ec   :  { %1945 = vmatpush1.bf16.msra.mxu1 %v5985_v61  ;;  %4068 = vmatpush3.bf16.msra.mxu0 %v5991_v28 }
 0x4ed   :  { %1946 = vmatprep.subr.bf16.mxu1 %v5997_v10  ;;  %4069 = vmatprep.subr.bf16.mxu0 %v7408_v23 }
 0x4f0   :  { %1947 = vmatpush1.bf16.msra.mxu1 %v6004_v32  ;;  %4070 = vmatpush3.bf16.msra.mxu0 %v6010_v38 }
 0x4f1   :  { %1948 = vmatprep.subr.bf16.mxu1 %v6016_v51  ;;  %4071 = vmatprep.subr.bf16.mxu0 %v7408_v23 }
 0x4f4   :  { %1949 = vmatpush1.bf16.msra.mxu1 %v6023_v50  ;;  %4072 = vmatpush3.bf16.msra.mxu0 %v6029_v1 }
 0x4f5   :  { %1950 = vmatprep.subr.bf16.mxu1 %v6035_v40  ;;  %4073 = vmatprep.subr.bf16.mxu0 %v7408_v23 }
 0x4f8   :  { %1951 = vmatpush1.bf16.msra.mxu1 %v6042_v41  ;;  %4074 = vmatpush3.bf16.msra.mxu0 %v6048_v42 }
 0x4f9   :  { %1952 = vmatprep.subr.bf16.mxu1 %v6054_v35  ;;  %4075 = vmatprep.subr.bf16.mxu0 %v7408_v23 }
 0x4fc   :  { %1953 = vmatpush1.bf16.msra.mxu1 %v6061_v45  ;;  %4076 = vmatpush3.bf16.msra.mxu0 %v6067_v46 }
 0x4fd   :  { %2043 = vmatprep.subr.bf16.mxu1 %v6073_v7  ;;  %4081 = vmatprep.subr.bf16.mxu0 %v7408_v23 }
 0x572   :  { %v1670_v9 = vpop.f32.mrb[24].mxu1  ;;  %v1711_v12 = vpop.f32.mrb[36].mxu0 }
 0x573   :  { %v1671_v16 = vadd.f32 %v1670_v9, %v7501_v13  ;;  %v1672_v18 = vpop.f32.mrb[25].mxu1  ;;  %v4019_v19 = vpop.f32.mrb[37].mxu0  ;;  %v1712_v58 = vadd.f32 %v1711_v12, %v5316_v14 }
 0x574   :  { %v1673_v21 = vadd.f32 %v1672_v18, %v5307_v30  ;;  %v1674_v22 = vpop.f32.mrb[26].mxu1  ;;  %v1714_v25 = vpop.f32.mrb[38].mxu0 }
 0x575   :  { %v1718_v26 = vrot.slane %v1671_v16, 2  ;;  %v1675_v31 = vpop.f32.mrb[27].mxu1  ;;  %v4020_v54 = vpop.f32.mrb[39].mxu0  ;;  %v1738_v59 = vrot.slane %v1712_v58, 2  ;;  %v6141_v58 = vld [vmem:[%s7237_s6 + $0x30] ss:$12 sps:$4 sm:$0xff]  }
 0x576   :  { %v1728_v53 = vrot.slane %v1673_v21, 2  ;;  %v6103_v54 = vld [vmem:[%s7237_s6 + $0x8] ss:$12 sps:$4 sm:$0xff]  }
 0x577   :  { %v1720_v5 = vadd.f32 %v1718_v26, %v5309_v33 }
 0x578   :  { %v1730_v36 = vadd.f32 %v1728_v53, %v5292_v20  ;;  %v6109_v53 = vld [vmem:[%s7237_s6 + $0x1c] ss:$12 sps:$4 sm:$0xff]  }
 0x579   :  { %v3559_v29 = vmul.f32 -1.442695, %v1720_v5  ;;  %v6119_v5 = vld [vmem:[%s7237_s6 + $0x18] ss:$12 sps:$4 sm:$0xff]  }
 0x57a   :  { %v3560_v56 = vmul.f32 -1.442695, %v1730_v36  ;;  %v6125_v36 = vld [vmem:[%s7237_s6 + $0x20] ss:$12 sps:$4 sm:$0xff]  }
 0x57b   :  { %4620 = vpow2.f32 %v3559_v29  ;;  %v6131_v29 = vld [vmem:[%s7237_s6 + $0x34] ss:$12 sps:$4 sm:$0xff]  }
 0x57c   :  { %4622 = vpow2.f32 %v3560_v56 }
 0x585   :  { %v4621_v55 = vpop.eup %4620 }
 0x586   :  { %v4623_v63 = vpop.eup %4622  ;;  %v1724_v57 = vadd.f32 1.0, %v4621_v55 }
 0x587   :  { %v1734_v8 = vadd.f32 1.0, %v4623_v63 }
 0x588   :  { %4624 = vrcp.f32 %v1724_v57 }
 0x589   :  { %4626 = vrcp.f32 %v1734_v8 }
 0x592   :  { %v4625_v39 = vpop.eup %4624  ;;  %v6083_v37 = vpop.f32.mrb[40].mxu0 }
 0x593   :  { %v4627_v33 = vpop.eup %4626  ;;  %v1740_v20 = vmul.f32 %v4625_v39, %v1738_v59  ;;  %v4039_v9 = vpop.f32.mrb[41].mxu0  ;;  %v6147_v59 = vld [vmem:[%s7237_s6 + $0x38] ss:$12 sps:$4 sm:$0xff]  }
 0x594   :  { %v1828_v16 = vpop.f32.mrb[42].mxu0  ;;  %v1748_v18 = vmul.f32 %v4627_v33, %v1746_v60  ;;  %v1743_v22 = vsub.f32 1.0, %v4627_v33  ;;  %v6153_v33 = vld [vmem:[%s7237_s6 + $0x4c] ss:$12 sps:$4 sm:$0xff]  }
 0x595   :  { %v1741_v19 = vadd.f32 %v1740_v20, %v5290_v17  ;;  %v4040_v21 = vpop.f32.mrb[43].mxu0  ;;  %v6097_v17 = vld [vmem:[%s7237_s6] ss:$12 sps:$4 sm:$0xff]  }
 0x596   :  { %v6167_v21 = vld [vmem:[%s7237_s6 + $0x50] ss:$12 sps:$4 sm:$0xff]  }
 0x597   :  { %4628 = vtanh.f32 %v1741_v19  ;;  %v6161_v19 = vld [vmem:[%s7237_s6 + $0x48] ss:$12 sps:$4 sm:$0xff]  }
 0x5a1   :  { %v4629_v25 = vpop.eup %4628 }
 0x5a2   :  { %v1744_v26 = vmul.f32 %v4629_v25, %v1743_v22  ;;  %v6173_v22 = vld [vmem:[%s7237_s6 + $0x64] ss:$12 sps:$4 sm:$0xff]  }
 0x5a4   :  { %v6086_v31 = vadd.f32 %v1748_v18, %v1744_v26  ;;  %v6180_v26 = vld [vmem:[%s7237_s6 + $0x60] ss:$12 sps:$4 sm:$0xff]  }
 0x5a6   :  { %v1934_v12 = vpack.c.bf16 %v6086_v31, %v6086_v31 }
 0x5a8   :  { %v6090_v3 = vrot.slane %v1934_v12, 3  ;;  %v6186_v12 = vld [vmem:[%s7237_s6 + $0x68] ss:$12 sps:$4 sm:$0xff]  }
 0x5aa   :  { %1971 = vmatmul.mubr.bf16.vlgmr.msra.gmra.mrb[32].mxu1 %v6090_v3  ;;  %4078 = vmatmul.mubr.bf16.vlgmr.msra.gmra.mrb[48].mxu0 %v6090_v3 }
 0x5ab   :  { %2044 = vmatpush1.bf16.msra.mxu1 %v6097_v17  ;;  %4082 = vmatpush3.bf16.msra.mxu0 %v6103_v54 }
 0x5ac   :  { %2045 = vmatprep.subr.bf16.mxu1 %v6109_v53  ;;  %4083 = vmatprep.subr.bf16.mxu0 %v7408_v23 }
 0x5ad   :  { %2075 = vmatprep.mubr.bf16.mxu1 %v7412_v24  ;;  %4097 = vmatprep.mubr.msk.bf16.mxu0 %vm4900_vm0, %v7408_v23 }
 0x5af   :  { %2046 = vmatpush1.bf16.msra.mxu1 %v6119_v5  ;;  %4084 = vmatpush3.bf16.msra.mxu0 %v6125_v36 }
 0x5b0   :  { %2047 = vmatprep.subr.bf16.mxu1 %v6131_v29  ;;  %4085 = vmatprep.subr.bf16.mxu0 %v7408_v23 }
 0x5b2   :  { %v1866_v56 = vpop.f32.mrb[28].mxu1  ;;  %v6135_v55 = vpop.f32.mrb[44].mxu0 }
 0x5b3   :  { %v4370_v63 = vadd.f32 %v5704_v0, %v1866_v56  ;;  %v1868_v57 = vpop.f32.mrb[29].mxu1  ;;  %v4059_v8 = vpop.f32.mrb[45].mxu0  ;;  %2048 = vmatpush1.bf16.msra.mxu1 %v6141_v58  ;;  %4086 = vmatpush3.bf16.msra.mxu0 %v6147_v59  ;;  %v6192_v56 = vld [vmem:[%s7237_s6 + $0x7c] ss:$12 sps:$4 sm:$0xff]  }
 0x5b4   :  { %v1870_v39 = vpop.f32.mrb[30].mxu1  ;;  %v1910_v60 = vpop.f32.mrb[46].mxu0  ;;  %2049 = vmatprep.subr.bf16.mxu1 %v6153_v33  ;;  %4087 = vmatprep.subr.bf16.mxu0 %v7408_v23  ;;  %v4372_v18 = vadd.f32 %v5710_v11, %v1868_v57  ;;  %v6205_v57 = vld [vmem:[%s7237_s6 + $0x80] ss:$12 sps:$4 sm:$0xff]  }
 0x5b5   :  { %v3561_v20 = vmul.f32 -1.442695, %v4370_v63  ;;  %v1871_v9 = vpop.f32.mrb[31].mxu1  ;;  %v4060_v16 = vpop.f32.mrb[47].mxu0  ;;  %v6199_v63 = vld [vmem:[%s7237_s6 + $0x78] ss:$12 sps:$4 sm:$0xff]  }
 0x5b6   :  { %v3562_v25 = vmul.f32 -1.442695, %v4372_v18  ;;  %v6211_v8 = vld [vmem:[%s7237_s6 + $0x94] ss:$12 sps:$4 sm:$0xff]   ;;  %v6224_v9 = vld [vmem:[%s7237_s6 + $0x98] ss:$12 sps:$4 sm:$0xff]  }
 0x5b7   :  { %4630 = vpow2.f32 %v3561_v20  ;;  %2050 = vmatpush1.bf16.msra.mxu1 %v6161_v19  ;;  %4088 = vmatpush3.bf16.msra.mxu0 %v6167_v21  ;;  %v6218_v20 = vld [vmem:[%s7237_s6 + $0x90] ss:$12 sps:$4 sm:$0xff]   ;;  %v6230_v16 = vld [vmem:[%s7237_s6 + $0xac] ss:$12 sps:$4 sm:$0xff]   ;;  %v6237_v18 = vld [vmem:[%s7237_s6 + $0xa8] ss:$12 sps:$4 sm:$0xff]  }
 0x5b8   :  { %2051 = vmatprep.subr.bf16.mxu1 %v6173_v22  ;;  %4089 = vmatprep.subr.bf16.mxu0 %v7408_v23  ;;  %4632 = vpow2.f32 %v3562_v25  ;;  %7502 = vst [vmem:[#allocation12_spill] sm:$0xff] %v6230_v16  ;;  %7503 = vst [vmem:[#allocation13_spill] sm:$0xff] %v6237_v18  ;;  %v6243_v25 = vld [vmem:[%s7237_s6 + $0xb0] ss:$12 sps:$4 sm:$0xff]  }
 0x5b9   :  { %7504 = vst [vmem:[#allocation14_spill] sm:$0xff] %v6243_v25 }
 0x5bb   :  { %2052 = vmatpush1.bf16.msra.mxu1 %v6180_v26  ;;  %4090 = vmatpush3.bf16.msra.mxu0 %v6186_v12 }
 0x5bc   :  { %2053 = vmatprep.subr.bf16.mxu1 %v6192_v56  ;;  %4091 = vmatprep.subr.bf16.mxu0 %v7408_v23 }
 0x5bf   :  { %2054 = vmatpush1.bf16.msra.mxu1 %v6199_v63  ;;  %4092 = vmatpush3.bf16.msra.mxu0 %v6205_v57 }
 0x5c0   :  { %2055 = vmatprep.subr.bf16.mxu1 %v6211_v8  ;;  %4093 = vmatprep.subr.bf16.mxu0 %v7408_v23 }
 0x5c1   :  { %v4631_v39 = vpop.eup %4630 }
 0x5c2   :  { %v1917_v60 = vadd.f32 1.0, %v4631_v39  ;;  %v4633_v39 = vpop.eup %4632 }
 0x5c3   :  { %2056 = vmatpush1.bf16.msra.mxu1 %v6218_v20  ;;  %4094 = vmatpush3.bf16.msra.mxu0 %v6224_v9 }
 0x5c4   :  { %4634 = vrcp.f32 %v1917_v60  ;;  %2057 = vmatprep.subr.bf16.mxu1 %v6230_v16  ;;  %4095 = vmatprep.subr.bf16.mxu0 %v7408_v23  ;;  %v6249_v60 = vld [vmem:[%s7238_s7 + $0x4] ss:$12 sps:$4 sm:$0xff]   ;;  %v6258_v16 = vld [vmem:[%s7238_s7] ss:$12 sps:$4 sm:$0xff]  }
 0x5c5   :  { %7505 = vst [vmem:[#allocation15_spill] sm:$0xff] %v6249_v60  ;;  %7506 = vst [vmem:[#allocation16_spill] sm:$0xff] %v6258_v16 }
 0x5c7   :  { %2058 = vmatpush1.bf16.msra.mxu1 %v6237_v18  ;;  %4096 = vmatpush3.bf16.msra.mxu0 %v6243_v25  ;;  %v1924_v18 = vadd.f32 1.0, %v4633_v39  ;;  %v6264_v25 = vld [vmem:[%s7238_s7 + $0x8] ss:$12 sps:$4 sm:$0xff]  }
 0x5c8   :  { %2125 = vmatprep.subr.bf16.mxu1 %v6249_v60  ;;  %4101 = vmatprep.subr.bf16.mxu0 %v7408_v23  ;;  %7507 = vst [vmem:[#allocation17_spill] sm:$0xff] %v6264_v25  ;;  %v6270_v60 = vld [vmem:[%s7238_s7 + $0x1c] ss:$12 sps:$4 sm:$0xff]  }
 0x5c9   :  { %7508 = vst [vmem:[#allocation18_spill] sm:$0xff] %v6270_v60  ;;  %4636 = vrcp.f32 %v1924_v18 }
 0x5ca   :  { %2076 = vmatmul.mubr.bf16.vlgmr.msra.gmra.mrb[36].mxu1 %v6090_v3  ;;  %4098 = vmatmul.mubr.bf16.vlgmr.msra.gmra.mrb[52].mxu0 %v6090_v3  ;;  %v1908_v3 = vadd.f32 %v6135_v55, %v7470_v15  ;;  %v6290_v55 = vld [vmem:[%s7238_s7 + $0x20] ss:$12 sps:$4 sm:$0xff]  }
 0x5cb   :  { %2126 = vmatpush1.bf16.msra.mxu1 %v6258_v16  ;;  %4102 = vmatpush3.bf16.msra.mxu0 %v6264_v25  ;;  %v1826_v25 = vadd.f32 %v6083_v37, %v5745_v52  ;;  %7510 = vst [vmem:[#allocation20_spill] sm:$0xff] %v6290_v55  ;;  %v6296_v37 = vld [vmem:[%s7238_s7 + $0x34] ss:$12 sps:$4 sm:$0xff]   ;;  %v6315_v52 = vld [vmem:[%s7238_s7 + $0x4c] ss:$12 sps:$4 sm:$0xff]  }
 0x5cc   :  { %2127 = vmatprep.subr.bf16.mxu1 %v6270_v60  ;;  %4103 = vmatprep.subr.bf16.mxu0 %v7408_v23  ;;  %v6284_v60 = vld [vmem:[%s7238_s7 + $0x18] ss:$12 sps:$4 sm:$0xff]   ;;  %7511 = vst [vmem:[#allocation21_spill] sm:$0xff] %v6296_v37  ;;  %7514 = vst [vmem:[#allocation35_spill] sm:$0xff] %v6315_v52 }
 0x5cd   :  { %2157 = vmatprep.mubr.bf16.mxu1 %v7412_v24  ;;  %4117 = vmatprep.mubr.msk.bf16.mxu0 %vm4900_vm0, %v7408_v23  ;;  %7509 = vst [vmem:[#allocation19_spill] sm:$0xff] %v6284_v60 }
 0x5ce   :  { %v4635_v39 = vpop.eup %4634 }
 0x5cf   :  { %v1927_v16 = vmul.f32 %v4635_v39, %v1908_v3  ;;  %2128 = vmatpush1.bf16.msra.mxu1 %v6284_v60  ;;  %4104 = vmatpush3.bf16.msra.mxu0 %v6290_v55  ;;  %v6303_v3 = vld [vmem:[%s7238_s7 + $0x30] ss:$12 sps:$4 sm:$0xff]   ;;  %v6309_v39 = vld [vmem:[%s7238_s7 + $0x38] ss:$12 sps:$4 sm:$0xff]  }
 0x5d0   :  { %2129 = vmatprep.subr.bf16.mxu1 %v6296_v37  ;;  %4105 = vmatprep.subr.bf16.mxu0 %v7408_v23  ;;  %7512 = vst [vmem:[#allocation31_spill] sm:$0xff] %v6303_v3  ;;  %7513 = vst [vmem:[#allocation34_spill] sm:$0xff] %v6309_v39  ;;  %v6361_v37 = vld [vmem:[%s7238_s7 + $0x78] ss:$12 sps:$4 sm:$0xff]  }
 0x5d1   :  { %v1928_v18 = vadd.f32 %v1927_v16, %v1826_v25  ;;  %v6322_v16 = vld [vmem:[%s7238_s7 + $0x48] ss:$12 sps:$4 sm:$0xff]   ;;  %v6328_v25 = vld [vmem:[%s7238_s7 + $0x50] ss:$12 sps:$4 sm:$0xff]   ;;  %7520 = vst [vmem:[#allocation46_spill] sm:$0xff] %v6361_v37 }
 0x5d2   :  { %7515 = vst [vmem:[#allocation36_spill] sm:$0xff] %v6322_v16  ;;  %7516 = vst [vmem:[#allocation37_spill] sm:$0xff] %v6328_v25 }
 0x5d3   :  { %4638 = vtanh.f32 %v1928_v18  ;;  %2130 = vmatpush1.bf16.msra.mxu1 %v6303_v3  ;;  %4106 = vmatpush3.bf16.msra.mxu0 %v6309_v39  ;;  %v6334_v18 = vld [vmem:[%s7238_s7 + $0x64] ss:$12 sps:$4 sm:$0xff]  }
 0x5d4   :  { %2131 = vmatprep.subr.bf16.mxu1 %v6315_v52  ;;  %4107 = vmatprep.subr.bf16.mxu0 %v7408_v23  ;;  %7517 = vst [vmem:[#allocation38_spill] sm:$0xff] %v6334_v18  ;;  %v4637_v52 = vpop.eup %4636 }
 0x5d5   :  { %v1930_v39 = vsub.f32 1.0, %v4637_v52 }
 0x5d7   :  { %2132 = vmatpush1.bf16.msra.mxu1 %v6322_v16  ;;  %4108 = vmatpush3.bf16.msra.mxu0 %v6328_v25  ;;  %v6341_v16 = vld [vmem:[%s7238_s7 + $0x60] ss:$12 sps:$4 sm:$0xff]   ;;  %v6347_v25 = vld [vmem:[%s7238_s7 + $0x68] ss:$12 sps:$4 sm:$0xff]  }
 0x5d8   :  { %2133 = vmatprep.subr.bf16.mxu1 %v6334_v18  ;;  %4109 = vmatprep.subr.bf16.mxu0 %v7408_v23  ;;  %7518 = vst [vmem:[#allocation39_spill] sm:$0xff] %v6341_v16  ;;  %7519 = vst [vmem:[#allocation40_spill] sm:$0xff] %v6347_v25  ;;  %v6353_v18 = vld [vmem:[%s7238_s7 + $0x7c] ss:$12 sps:$4 sm:$0xff]  }
 0x5db   :  { %2134 = vmatpush1.bf16.msra.mxu1 %v6341_v16  ;;  %4110 = vmatpush3.bf16.msra.mxu0 %v6347_v25  ;;  %v1932_v16 = vmul.f32 %v4637_v52, %v5905_v4  ;;  %v6367_v25 = vld [vmem:[%s7238_s7 + $0x80] ss:$12 sps:$4 sm:$0xff]   ;;  %v6382_v4 = vld [vmem:[%s7238_s7 + $0x90] ss:$12 sps:$4 sm:$0xff]  }
 0x5dc   :  { %2135 = vmatprep.subr.bf16.mxu1 %v6353_v18  ;;  %4111 = vmatprep.subr.bf16.mxu0 %v7408_v23 }
 0x5dd   :  { %v4639_v3 = vpop.eup %4638 }
 0x5de   :  { %v1931_v15 = vmul.f32 %v4639_v3, %v1930_v39  ;;  %v6373_v3 = vld [vmem:[%s7238_s7 + $0x94] ss:$12 sps:$4 sm:$0xff]   ;;  %v6388_v39 = vld [vmem:[%s7238_s7 + $0x98] ss:$12 sps:$4 sm:$0xff]  }
 0x5df   :  { %2136 = vmatpush1.bf16.msra.mxu1 %v6361_v37  ;;  %4112 = vmatpush3.bf16.msra.mxu0 %v6367_v25  ;;  %7521 = vst [vmem:[#allocation47_spill] sm:$0xff] %v6373_v3  ;;  %7522 = vst [vmem:[#allocation48_spill] sm:$0xff] %v6388_v39 }
 0x5e0   :  { %2137 = vmatprep.subr.bf16.mxu1 %v6373_v3  ;;  %4113 = vmatprep.subr.bf16.mxu0 %v7408_v23  ;;  %v6377_v52 = vadd.f32 %v1932_v16, %v1931_v15  ;;  %v6394_v3 = vld [vmem:[%s7238_s7 + $0xac] ss:$12 sps:$4 sm:$0xff]   ;;  %v6401_v15 = vld [vmem:[%s7238_s7 + $0xa8] ss:$12 sps:$4 sm:$0xff]   ;;  %v6407_v16 = vld [vmem:[%s7238_s7 + $0xb0] ss:$12 sps:$4 sm:$0xff]  }
 0x5e1   :  { %7523 = vst [vmem:[#allocation49_spill] sm:$0xff] %v6394_v3  ;;  %7524 = vst [vmem:[#allocation50_spill] sm:$0xff] %v6401_v15 }
 0x5e2   :  { %7525 = vst [vmem:[#allocation52_spill] sm:$0xff] %v6407_v16 }
 0x5e3   :  { %2138 = vmatpush1.bf16.msra.mxu1 %v6382_v4  ;;  %4114 = vmatpush3.bf16.msra.mxu0 %v6388_v39  ;;  %v2124_v39 = vpack.c.bf16 %v6377_v52, %v6377_v52 }
 0x5e4   :  { %2139 = vmatprep.subr.bf16.mxu1 %v6394_v3  ;;  %4115 = vmatprep.subr.bf16.mxu0 %v7408_v23 }
 0x5e7   :  { %2140 = vmatpush1.bf16.msra.mxu1 %v6401_v15  ;;  %4116 = vmatpush3.bf16.msra.mxu0 %v6407_v16 }
 0x5e8   :  { %2228 = vmatprep.subr.bf16.mxu1 %v5918_v6  ;;  %4121 = vmatprep.subr.bf16.mxu0 %v7408_v23 }
 0x5ea   :  { %2158 = vmatmul.mubr.bf16.vlgmr.msra.gmra.mrb[36].mxu1 %v2124_v39  ;;  %4118 = vmatmul.mubr.bf16.vlgmr.msra.gmra.mrb[56].mxu0 %v2124_v39 }
 0x5eb   :  { %2229 = vmatpush1.bf16.msra.mxu1 %v5925_v62  ;;  %4122 = vmatpush3.bf16.msra.mxu0 %v5931_v43 }
 0x5ec   :  { %2230 = vmatprep.subr.bf16.mxu1 %v5937_v2  ;;  %4123 = vmatprep.subr.bf16.mxu0 %v7408_v23 }
 0x5ed   :  { %2260 = vmatprep.mubr.bf16.mxu1 %v7412_v24  ;;  %4137 = vmatprep.mubr.msk.bf16.mxu0 %vm4900_vm0, %v7408_v23 }
 0x5ef   :  { %2231 = vmatpush1.bf16.msra.mxu1 %v5947_v27  ;;  %4124 = vmatpush3.bf16.msra.mxu0 %v5953_v44 }
 0x5f0   :  { %2232 = vmatprep.subr.bf16.mxu1 %v5959_v34  ;;  %4125 = vmatprep.subr.bf16.mxu0 %v7408_v23 }
 0x5f3   :  { %2233 = vmatpush1.bf16.msra.mxu1 %v5966_v49  ;;  %4126 = vmatpush3.bf16.msra.mxu0 %v5972_v47 }
 0x5f4   :  { %2234 = vmatprep.subr.bf16.mxu1 %v5978_v48  ;;  %4127 = vmatprep.subr.bf16.mxu0 %v7408_v23 }
 0x5f7   :  { %2235 = vmatpush1.bf16.msra.mxu1 %v5985_v61  ;;  %4128 = vmatpush3.bf16.msra.mxu0 %v5991_v28  ;;  %v7527_v28 = vld [vmem:[#allocation24_spill] sm:$0xff] }
 0x5f8   :  { %2236 = vmatprep.subr.bf16.mxu1 %v5997_v10  ;;  %4129 = vmatprep.subr.bf16.mxu0 %v7408_v23 }
 0x5fb   :  { %2237 = vmatpush1.bf16.msra.mxu1 %v6004_v32  ;;  %4130 = vmatpush3.bf16.msra.mxu0 %v6010_v38  ;;  %v7526_v38 = vld [vmem:[#allocation22_spill] sm:$0xff] }
 0x5fc   :  { %2238 = vmatprep.subr.bf16.mxu1 %v6016_v51  ;;  %4131 = vmatprep.subr.bf16.mxu0 %v7408_v23 }
 0x5ff   :  { %2239 = vmatpush1.bf16.msra.mxu1 %v6023_v50  ;;  %4132 = vmatpush3.bf16.msra.mxu0 %v6029_v1 }
 0x600   :  { %2240 = vmatprep.subr.bf16.mxu1 %v6035_v40  ;;  %4133 = vmatprep.subr.bf16.mxu0 %v7408_v23 }
 0x603   :  { %2241 = vmatpush1.bf16.msra.mxu1 %v6042_v41  ;;  %4134 = vmatpush3.bf16.msra.mxu0 %v6048_v42 }
 0x604   :  { %2242 = vmatprep.subr.bf16.mxu1 %v6054_v35  ;;  %4135 = vmatprep.subr.bf16.mxu0 %v7408_v23 }
 0x607   :  { %2243 = vmatpush1.bf16.msra.mxu1 %v6061_v45  ;;  %4136 = vmatpush3.bf16.msra.mxu0 %v6067_v46 }
 0x608   :  { %2342 = vmatprep.subr.bf16.mxu1 %v6073_v7  ;;  %4141 = vmatprep.subr.bf16.mxu0 %v7408_v23 }
 0x67d   :  { %v1972_v39 = vpop.f32.mrb[32].mxu1  ;;  %v2013_v40 = vpop.f32.mrb[48].mxu0 }
 0x67e   :  { %v1973_v1 = vadd.f32 %v1972_v39, %v7501_v13  ;;  %v1974_v50 = vpop.f32.mrb[33].mxu1  ;;  %v4079_v41 = vpop.f32.mrb[49].mxu0 }
 0x67f   :  { %v1975_v42 = vadd.f32 %v1974_v50, %v5307_v30  ;;  %v1976_v51 = vpop.f32.mrb[34].mxu1  ;;  %v2016_v35 = vpop.f32.mrb[50].mxu0  ;;  %v2014_v50 = vadd.f32 %v2013_v40, %v5316_v14  ;;  %v2039_v41 = vrot.slane %v6086_v31, 6 }
 0x680   :  { %v2019_v32 = vadd.f32 %v1973_v1, %v7526_v38  ;;  %v1977_v10 = vpop.f32.mrb[35].mxu1  ;;  %v4080_v45 = vpop.f32.mrb[51].mxu0 }
 0x681   :  { %v2026_v46 = vadd.f32 %v1975_v42, %v7527_v28 }
 0x682   :  { %v3563_v61 = vmul.f32 -1.442695, %v2019_v32  ;;  %v7528_v32 = vld [vmem:[#allocation23_spill] sm:$0xff] }
 0x683   :  { %v3564_v7 = vmul.f32 -1.442695, %v2026_v46 }
 0x684   :  { %4640 = vpow2.f32 %v3563_v61 }
 0x685   :  { %4642 = vpow2.f32 %v3564_v7 }
 0x68e   :  { %v4641_v48 = vpop.eup %4640 }
 0x68f   :  { %v4643_v47 = vpop.eup %4642  ;;  %v2023_v49 = vadd.f32 1.0, %v4641_v48 }
 0x690   :  { %v2030_v39 = vadd.f32 1.0, %v4643_v47 }
 0x691   :  { %4644 = vrcp.f32 %v2023_v49 }
 0x692   :  { %4646 = vrcp.f32 %v2030_v39 }
 0x69b   :  { %v4645_v51 = vpop.eup %4644 }
 0x69c   :  { %v4647_v1 = vpop.eup %4646  ;;  %v2033_v10 = vmul.f32 %v4645_v51, %v2014_v50 }
 0x69d   :  { %v6455_v35 = vpop.f32.mrb[52].mxu0  ;;  %v2041_v42 = vmul.f32 %v4647_v1, %v2039_v41  ;;  %v2036_v48 = vsub.f32 1.0, %v4647_v1 }
 0x69e   :  { %v2034_v45 = vadd.f32 %v2033_v10, %v7528_v32  ;;  %v4099_v61 = vpop.f32.mrb[53].mxu0 }
 0x69f   :  { %v2121_v46 = vpop.f32.mrb[54].mxu0 }
 0x6a0   :  { %4648 = vtanh.f32 %v2034_v45  ;;  %v4100_v7 = vpop.f32.mrb[55].mxu0 }
 0x6aa   :  { %v4649_v47 = vpop.eup %4648 }
 0x6ab   :  { %v2037_v49 = vmul.f32 %v4649_v47, %v2036_v48  ;;  %v7529_v47 = vld [vmem:[#allocation12_spill] sm:$0xff] }
 0x6ad   :  { %v6458_v39 = vadd.f32 %v2041_v42, %v2037_v49 }
 0x6af   :  { %v2227_v40 = vpack.c.bf16 %v6458_v39, %v6458_v39 }
 0x6b1   :  { %2261 = vmatmul.mubr.bf16.vlgmr.msra.gmra.mrb[40].mxu1 %v2227_v40  ;;  %4138 = vmatmul.mubr.bf16.vlgmr.msra.gmra.mrb[60].mxu0 %v2227_v40 }
 0x6b2   :  { %2343 = vmatpush1.bf16.msra.mxu1 %v6097_v17  ;;  %4142 = vmatpush3.bf16.msra.mxu0 %v6103_v54 }
 0x6b3   :  { %2344 = vmatprep.subr.bf16.mxu1 %v6109_v53  ;;  %4143 = vmatprep.subr.bf16.mxu0 %v7408_v23 }
 0x6b4   :  { %2374 = vmatprep.mubr.bf16.mxu1 %v7412_v24  ;;  %4157 = vmatprep.mubr.msk.bf16.mxu0 %vm4900_vm0, %v7408_v23 }
 0x6b6   :  { %2345 = vmatpush1.bf16.msra.mxu1 %v6119_v5  ;;  %4144 = vmatpush3.bf16.msra.mxu0 %v6125_v36 }
 0x6b7   :  { %2346 = vmatprep.subr.bf16.mxu1 %v6131_v29  ;;  %4145 = vmatprep.subr.bf16.mxu0 %v7408_v23 }
 0x6ba   :  { %2347 = vmatpush1.bf16.msra.mxu1 %v6141_v58  ;;  %4146 = vmatpush3.bf16.msra.mxu0 %v6147_v59 }
 0x6bb   :  { %2348 = vmatprep.subr.bf16.mxu1 %v6153_v33  ;;  %4147 = vmatprep.subr.bf16.mxu0 %v7408_v23 }
 0x6bd   :  { %v2159_v31 = vpop.f32.mrb[36].mxu1  ;;  %v2200_v50 = vpop.f32.mrb[56].mxu0 }
 0x6be   :  { %v4374_v51 = vadd.f32 %v5704_v0, %v2159_v31  ;;  %v2161_v41 = vpop.f32.mrb[37].mxu1  ;;  %v4119_v1 = vpop.f32.mrb[57].mxu0  ;;  %2349 = vmatpush1.bf16.msra.mxu1 %v6161_v19  ;;  %4148 = vmatpush3.bf16.msra.mxu0 %v6167_v21 }
 0x6bf   :  { %v2163_v10 = vpop.f32.mrb[38].mxu1  ;;  %v2203_v42 = vpop.f32.mrb[58].mxu0  ;;  %2350 = vmatprep.subr.bf16.mxu1 %v6173_v22  ;;  %4149 = vmatprep.subr.bf16.mxu0 %v7408_v23  ;;  %v4376_v7 = vadd.f32 %v5710_v11, %v2161_v41  ;;  %v7531_v41 = vld [vmem:[#allocation14_spill] sm:$0xff]  ;;  %v7532_v1 = vld [vmem:[#allocation15_spill] sm:$0xff] }
 0x6c0   :  { %v3565_v45 = vmul.f32 -1.442695, %v4374_v51  ;;  %v2164_v61 = vpop.f32.mrb[39].mxu1  ;;  %v4120_v46 = vpop.f32.mrb[59].mxu0  ;;  %v7530_v51 = vld [vmem:[#allocation13_spill] sm:$0xff]  ;;  %v7533_v10 = vld [vmem:[#allocation16_spill] sm:$0xff] }
 0x6c1   :  { %v3566_v48 = vmul.f32 -1.442695, %v4376_v7  ;;  %v7534_v42 = vld [vmem:[#allocation17_spill] sm:$0xff]  ;;  %v7535_v61 = vld [vmem:[#allocation18_spill] sm:$0xff]  ;;  %v7537_v7 = vld [vmem:[#allocation51_spill] sm:$0xff] }
 0x6c2   :  { %4650 = vpow2.f32 %v3565_v45  ;;  %2351 = vmatpush1.bf16.msra.mxu1 %v6180_v26  ;;  %4150 = vmatpush3.bf16.msra.mxu0 %v6186_v12 }
 0x6c3   :  { %2352 = vmatprep.subr.bf16.mxu1 %v6192_v56  ;;  %4151 = vmatprep.subr.bf16.mxu0 %v7408_v23  ;;  %4652 = vpow2.f32 %v3566_v48  ;;  %v2201_v48 = vadd.f32 %v2200_v50, %v7537_v7  ;;  %v7544_v50 = vld [vmem:[#allocation38_spill] sm:$0xff] }
 0x6c6   :  { %2353 = vmatpush1.bf16.msra.mxu1 %v6199_v63  ;;  %4152 = vmatpush3.bf16.msra.mxu0 %v6205_v57 }
 0x6c7   :  { %2354 = vmatprep.subr.bf16.mxu1 %v6211_v8  ;;  %4153 = vmatprep.subr.bf16.mxu0 %v7408_v23 }
 0x6ca   :  { %2355 = vmatpush1.bf16.msra.mxu1 %v6218_v20  ;;  %4154 = vmatpush3.bf16.msra.mxu0 %v6224_v9 }
 0x6cb   :  { %2356 = vmatprep.subr.bf16.mxu1 %v7529_v47  ;;  %4155 = vmatprep.subr.bf16.mxu0 %v7408_v23 }
 0x6cc   :  { %v4651_v49 = vpop.eup %4650 }
 0x6cd   :  { %v2210_v31 = vadd.f32 1.0, %v4651_v49  ;;  %v4653_v45 = vpop.eup %4652 }
 0x6ce   :  { %2357 = vmatpush1.bf16.msra.mxu1 %v7530_v51  ;;  %4156 = vmatpush3.bf16.msra.mxu0 %v7531_v41  ;;  %v2217_v46 = vadd.f32 1.0, %v4653_v45  ;;  %v7541_v45 = vld [vmem:[#allocation35_spill] sm:$0xff] }
 0x6cf   :  { %4654 = vrcp.f32 %v2210_v31  ;;  %2424 = vmatprep.subr.bf16.mxu1 %v7532_v1  ;;  %4161 = vmatprep.subr.bf16.mxu0 %v7408_v23  ;;  %v7538_v31 = vld [vmem:[#allocation26_spill] sm:$0xff] }
 0x6d0   :  { %4656 = vrcp.f32 %v2217_v46  ;;  %v7540_v1 = vld [vmem:[#allocation34_spill] sm:$0xff]  ;;  %v7546_v46 = vld [vmem:[#allocation40_spill] sm:$0xff] }
 0x6d1   :  { %2375 = vmatmul.mubr.bf16.vlgmr.msra.gmra.mrb[44].mxu1 %v2227_v40  ;;  %4158 = vmatmul.mubr.bf16.vlgmr.msra.gmra.mrb[64].mxu0 %v2227_v40  ;;  %v7536_v40 = vld [vmem:[#allocation21_spill] sm:$0xff] }
 0x6d2   :  { %2425 = vmatpush1.bf16.msra.mxu1 %v7533_v10  ;;  %4162 = vmatpush3.bf16.msra.mxu0 %v7534_v42  ;;  %v7539_v10 = vld [vmem:[#allocation31_spill] sm:$0xff] }
 0x6d3   :  { %2426 = vmatprep.subr.bf16.mxu1 %v7535_v61  ;;  %4163 = vmatprep.subr.bf16.mxu0 %v7408_v23  ;;  %v2119_v61 = vadd.f32 %v6455_v35, %v7538_v31  ;;  %v7545_v35 = vld [vmem:[#allocation39_spill] sm:$0xff] }
 0x6d4   :  { %2456 = vmatprep.mubr.bf16.mxu1 %v7412_v24  ;;  %4177 = vmatprep.mubr.msk.bf16.mxu0 %vm4900_vm0, %v7408_v23 }
 0x6d6   :  { %2427 = vmatpush1.bf16.msra.mxu1 %v6284_v60  ;;  %4164 = vmatpush3.bf16.msra.mxu0 %v6290_v55  ;;  %v7543_v60 = vld [vmem:[#allocation37_spill] sm:$0xff] }
 0x6d7   :  { %2428 = vmatprep.subr.bf16.mxu1 %v7536_v40  ;;  %4165 = vmatprep.subr.bf16.mxu0 %v7408_v23  ;;  %v7542_v40 = vld [vmem:[#allocation36_spill] sm:$0xff] }
 0x6d9   :  { %v4655_v49 = vpop.eup %4654 }
 0x6da   :  { %v2220_v42 = vmul.f32 %v4655_v49, %v2201_v48  ;;  %2429 = vmatpush1.bf16.msra.mxu1 %v7539_v10  ;;  %4166 = vmatpush3.bf16.msra.mxu0 %v7540_v1  ;;  %v4657_v48 = vpop.eup %4656 }
 0x6db   :  { %2430 = vmatprep.subr.bf16.mxu1 %v7541_v45  ;;  %4167 = vmatprep.subr.bf16.mxu0 %v7408_v23 }
 0x6dc   :  { %v2221_v55 = vadd.f32 %v2220_v42, %v2119_v61  ;;  %v2223_v42 = vsub.f32 1.0, %v4657_v48 }
 0x6de   :  { %4658 = vtanh.f32 %v2221_v55  ;;  %2431 = vmatpush1.bf16.msra.mxu1 %v7542_v40  ;;  %4168 = vmatpush3.bf16.msra.mxu0 %v7543_v60  ;;  %v7547_v55 = vld [vmem:[#allocation47_spill] sm:$0xff] }
 0x6df   :  { %2432 = vmatprep.subr.bf16.mxu1 %v7544_v50  ;;  %4169 = vmatprep.subr.bf16.mxu0 %v7408_v23 }
 0x6e2   :  { %2433 = vmatpush1.bf16.msra.mxu1 %v7545_v35  ;;  %4170 = vmatpush3.bf16.msra.mxu0 %v7546_v46  ;;  %v2225_v35 = vmul.f32 %v4657_v48, %v6377_v52  ;;  %v7548_v46 = vld [vmem:[#allocation48_spill] sm:$0xff] }
 0x6e3   :  { %2434 = vmatprep.subr.bf16.mxu1 %v6353_v18  ;;  %4171 = vmatprep.subr.bf16.mxu0 %v7408_v23  ;;  %v7553_v52 = vld [vmem:[#allocation32_spill] sm:$0xff] }
 0x6e4   :  { %v7558_v48 = vld [vmem:[#allocation44_spill] sm:$0xff] }
 0x6e6   :  { %2435 = vmatpush1.bf16.msra.mxu1 %v6361_v37  ;;  %4172 = vmatpush3.bf16.msra.mxu0 %v6367_v25 }
 0x6e7   :  { %2436 = vmatprep.subr.bf16.mxu1 %v7547_v55  ;;  %4173 = vmatprep.subr.bf16.mxu0 %v7408_v23 }
 0x6e8   :  { %v4659_v61 = vpop.eup %4658 }
 0x6e9   :  { %v2224_v49 = vmul.f32 %v4659_v61, %v2223_v42  ;;  %v7560_v42 = vld [vmem:[#allocation5_spill] sm:$0xff]  ;;  %v7561_v61 = vld [vmem:[#allocation6_spill] sm:$0xff] }
 0x6ea   :  { %2437 = vmatpush1.bf16.msra.mxu1 %v6382_v4  ;;  %4174 = vmatpush3.bf16.msra.mxu0 %v7548_v46 }
 0x6eb   :  { %2438 = vmatprep.subr.bf16.mxu1 %v6394_v3  ;;  %4175 = vmatprep.subr.bf16.mxu0 %v7408_v23  ;;  %v6534_v37 = vadd.f32 %v2225_v35, %v2224_v49  ;;  %v7554_v35 = vld [vmem:[#allocation33_spill] sm:$0xff]  ;;  %v7562_v49 = vld [vmem:[#allocation7_spill] sm:$0xff] }
 0x6ed   :  { %v2423_v55 = vpack.c.bf16 %v6534_v37, %v6534_v37 }
 0x6ee   :  { %2439 = vmatpush1.bf16.msra.mxu1 %v6401_v15  ;;  %4176 = vmatpush3.bf16.msra.mxu0 %v6407_v16 }
 0x6ef   :  { %2530 = vmatprep.subr.bf16.mxu1 %v5918_v6  ;;  %4181 = vmatprep.subr.bf16.mxu0 %v7408_v23  ;;  %v7549_v6 = vld [vmem:[#allocation27_spill] sm:$0xff] }
 0x6f1   :  { %2457 = vmatmul.mubr.bf16.vlgmr.msra.gmra.mrb[44].mxu1 %v2423_v55  ;;  %4178 = vmatmul.mubr.bf16.vlgmr.msra.gmra.mrb[68].mxu0 %v2423_v55  ;;  %v7559_v55 = vld [vmem:[#allocation45_spill] sm:$0xff] }
 0x6f2   :  { %2531 = vmatpush1.bf16.msra.mxu1 %v5925_v62  ;;  %4182 = vmatpush3.bf16.msra.mxu0 %v5931_v43  ;;  %v7550_v62 = vld [vmem:[#allocation28_spill] sm:$0xff]  ;;  %v7551_v43 = vld [vmem:[#allocation29_spill] sm:$0xff] }
 0x6f3   :  { %2532 = vmatprep.subr.bf16.mxu1 %v5937_v2  ;;  %4183 = vmatprep.subr.bf16.mxu0 %v7408_v23  ;;  %v7552_v2 = vld [vmem:[#allocation30_spill] sm:$0xff] }
 0x6f4   :  { %2562 = vmatprep.mubr.bf16.mxu1 %v7412_v24  ;;  %4197 = vmatprep.mubr.msk.bf16.mxu0 %vm4900_vm0, %v7408_v23 }
 0x6f6   :  { %2533 = vmatpush1.bf16.msra.mxu1 %v5947_v27  ;;  %4184 = vmatpush3.bf16.msra.mxu0 %v5953_v44  ;;  %v7555_v27 = vld [vmem:[#allocation41_spill] sm:$0xff]  ;;  %v7556_v44 = vld [vmem:[#allocation42_spill] sm:$0xff] }
 0x6f7   :  { %2534 = vmatprep.subr.bf16.mxu1 %v5959_v34  ;;  %4185 = vmatprep.subr.bf16.mxu0 %v7408_v23  ;;  %v7557_v34 = vld [vmem:[#allocation43_spill] sm:$0xff] }
 0x6fa   :  { %2535 = vmatpush1.bf16.msra.mxu1 %v7549_v6  ;;  %4186 = vmatpush3.bf16.msra.mxu0 %v7550_v62  ;;  %v7563_v6 = vld [vmem:[#allocation8_spill] sm:$0xff]  ;;  %v7564_v62 = vld [vmem:[#allocation9_spill] sm:$0xff] }
 0x6fb   :  { %2536 = vmatprep.subr.bf16.mxu1 %v7551_v43  ;;  %4187 = vmatprep.subr.bf16.mxu0 %v7408_v23  ;;  %v7565_v43 = vld [vmem:[#allocation10_spill] sm:$0xff] }
 0x6fe   :  { %2537 = vmatpush1.bf16.msra.mxu1 %v7552_v2  ;;  %4188 = vmatpush3.bf16.msra.mxu0 %v7553_v52  ;;  %v7566_v2 = vld [vmem:[#allocation11_spill] sm:$0xff] }
 0x6ff   :  { %2538 = vmatprep.subr.bf16.mxu1 %v7554_v35  ;;  %4189 = vmatprep.subr.bf16.mxu0 %v7408_v23 }
 0x702   :  { %2539 = vmatpush1.bf16.msra.mxu1 %v7555_v27  ;;  %4190 = vmatpush3.bf16.msra.mxu0 %v7556_v44 }
 0x703   :  { %2540 = vmatprep.subr.bf16.mxu1 %v7557_v34  ;;  %4191 = vmatprep.subr.bf16.mxu0 %v7408_v23 }
 0x706   :  { %2541 = vmatpush1.bf16.msra.mxu1 %v7558_v48  ;;  %4192 = vmatpush3.bf16.msra.mxu0 %v7559_v55 }
 0x707   :  { %2542 = vmatprep.subr.bf16.mxu1 %v7560_v42  ;;  %4193 = vmatprep.subr.bf16.mxu0 %v7408_v23 }
 0x70a   :  { %2543 = vmatpush1.bf16.msra.mxu1 %v7561_v61  ;;  %4194 = vmatpush3.bf16.msra.mxu0 %v7562_v49 }
 0x70b   :  { %2544 = vmatprep.subr.bf16.mxu1 %v7563_v6  ;;  %4195 = vmatprep.subr.bf16.mxu0 %v7408_v23 }
 0x70e   :  { %2545 = vmatpush1.bf16.msra.mxu1 %v7564_v62  ;;  %4196 = vmatpush3.bf16.msra.mxu0 %v7565_v43 }
 0x70f   :  { %2644 = vmatprep.subr.bf16.mxu1 %v7566_v2  ;;  %4201 = vmatprep.subr.bf16.mxu0 %v7408_v23 }
 0x784   :  { %v2262_v52 = vpop.f32.mrb[40].mxu1  ;;  %v2303_v35 = vpop.f32.mrb[60].mxu0 }
 0x785   :  { %v2263_v27 = vadd.f32 %v2262_v52, %v7501_v13  ;;  %v2264_v44 = vpop.f32.mrb[41].mxu1  ;;  %v4139_v34 = vpop.f32.mrb[61].mxu0 }
 0x786   :  { %v2265_v48 = vadd.f32 %v2264_v44, %v5307_v30  ;;  %v2266_v55 = vpop.f32.mrb[42].mxu1  ;;  %v2306_v42 = vpop.f32.mrb[62].mxu0  ;;  %v2304_v44 = vadd.f32 %v2303_v35, %v5316_v14 }
 0x787   :  { %v2310_v61 = vrot.slane %v2263_v27, 6  ;;  %v2267_v49 = vpop.f32.mrb[43].mxu1  ;;  %v4140_v6 = vpop.f32.mrb[63].mxu0 }
 0x788   :  { %v2320_v62 = vrot.slane %v2265_v48, 6  ;;  %v2330_v27 = vrot.slane %v2304_v44, 6  ;;  %v2338_v48 = vrot.slane %v6458_v39, 6 }
 0x789   :  { %v2312_v43 = vadd.f32 %v2310_v61, %v7526_v38 }
 0x78a   :  { %v2322_v2 = vadd.f32 %v2320_v62, %v7527_v28 }
 0x78b   :  { %v3567_v16 = vmul.f32 -1.442695, %v2312_v43 }
 0x78c   :  { %v3568_v15 = vmul.f32 -1.442695, %v2322_v2 }
 0x78d   :  { %4660 = vpow2.f32 %v3567_v16 }
 0x78e   :  { %4662 = vpow2.f32 %v3568_v15 }
 0x797   :  { %v4661_v3 = vpop.eup %4660 }
 0x798   :  { %v4663_v52 = vpop.eup %4662  ;;  %v2316_v13 = vadd.f32 1.0, %v4661_v3 }
 0x799   :  { %v2326_v34 = vadd.f32 1.0, %v4663_v52 }
 0x79a   :  { %4664 = vrcp.f32 %v2316_v13 }
 0x79b   :  { %4666 = vrcp.f32 %v2326_v34 }
 0x7a4   :  { %v4665_v55 = vpop.eup %4664  ;;  %v6583_v42 = vpop.f32.mrb[64].mxu0 }
 0x7a5   :  { %v4667_v61 = vpop.eup %4666  ;;  %v2332_v49 = vmul.f32 %v4665_v55, %v2330_v27  ;;  %v4159_v6 = vpop.f32.mrb[65].mxu0 }
 0x7a6   :  { %v2420_v62 = vpop.f32.mrb[66].mxu0  ;;  %v2340_v16 = vmul.f32 %v4667_v61, %v2338_v48  ;;  %v2335_v3 = vsub.f32 1.0, %v4667_v61  ;;  %v7574_v61 = vld [vmem:[#allocation39_spill] sm:$0xff]  ;;  %v7576_v6 = vld [vmem:[#allocation46_spill] sm:$0xff] }
 0x7a7   :  { %v2333_v15 = vadd.f32 %v2332_v49, %v7528_v32  ;;  %v4160_v43 = vpop.f32.mrb[67].mxu0  ;;  %v7575_v49 = vld [vmem:[#allocation40_spill] sm:$0xff]  ;;  %v7579_v62 = vld [vmem:[#allocation50_spill] sm:$0xff] }
 0x7a8   :  { %v4806_v43 = vld [vmem:[%s7234_s3 + $0x18] ss:$12 sps:$4 sm:$0xff]  }
 0x7a9   :  { %4668 = vtanh.f32 %v2333_v15  ;;  %v4805_v15 = vld [vmem:[%s7234_s3 + $0x1c] ss:$12 sps:$4 sm:$0xff]  }
 0x7b3   :  { %v4669_v13 = vpop.eup %4668 }
 0x7b4   :  { %v2336_v2 = vmul.f32 %v4669_v13, %v2335_v3  ;;  %v4807_v3 = vld [vmem:[%s7234_s3 + $0x20] ss:$12 sps:$4 sm:$0xff]  }
 0x7b5   :  { %v4808_v13 = vld [vmem:[%s7234_s3 + $0x34] ss:$12 sps:$4 sm:$0xff]  }
 0x7b6   :  { %v6586_v52 = vadd.f32 %v2340_v16, %v2336_v2  ;;  %v4802_v16 = vld [vmem:[%s7234_s3 + $0x4] ss:$12 sps:$4 sm:$0xff]  }
 0x7b7   :  { %v4809_v2 = vld [vmem:[%s7234_s3 + $0x30] ss:$12 sps:$4 sm:$0xff]  }
 0x7b8   :  { %v2526_v35 = vpack.c.bf16 %v6586_v52, %v6586_v52 }
 0x7ba   :  { %v2528_v39 = vrot.slane %v2526_v35, 1  ;;  %v4810_v35 = vld [vmem:[%s7234_s3 + $0x38] ss:$12 sps:$4 sm:$0xff]  }
 0x7bc   :  { %2563 = vmatmul.mubr.bf16.vlgmr.msra.gmra.mrb[48].mxu1 %v2528_v39  ;;  %4198 = vmatmul.mubr.bf16.vlgmr.msra.gmra.mrb[72].mxu0 %v2528_v39 }
 0x7bd   :  { %2645 = vmatpush1.bf16.msra.mxu1 %v6097_v17  ;;  %4202 = vmatpush3.bf16.msra.mxu0 %v6103_v54 }
 0x7be   :  { %2646 = vmatprep.subr.bf16.mxu1 %v6109_v53  ;;  %4203 = vmatprep.subr.bf16.mxu0 %v7408_v23 }
 0x7bf   :  { %2676 = vmatprep.mubr.bf16.mxu1 %v7412_v24  ;;  %4217 = vmatprep.mubr.msk.bf16.mxu0 %vm4900_vm0, %v7408_v23 }
 0x7c1   :  { %2647 = vmatpush1.bf16.msra.mxu1 %v6119_v5  ;;  %4204 = vmatpush3.bf16.msra.mxu0 %v6125_v36 }
 0x7c2   :  { %2648 = vmatprep.subr.bf16.mxu1 %v6131_v29  ;;  %4205 = vmatprep.subr.bf16.mxu0 %v7408_v23 }
 0x7c4   :  { %v2458_v17 = vpop.f32.mrb[44].mxu1  ;;  %v2499_v34 = vpop.f32.mrb[68].mxu0 }
 0x7c5   :  { %v4378_v54 = vadd.f32 %v5704_v0, %v2458_v17  ;;  %v2460_v53 = vpop.f32.mrb[45].mxu1  ;;  %v4179_v44 = vpop.f32.mrb[69].mxu0  ;;  %2649 = vmatpush1.bf16.msra.mxu1 %v6141_v58  ;;  %4206 = vmatpush3.bf16.msra.mxu0 %v6147_v59  ;;  %v4812_v17 = vld [vmem:[%s7234_s3 + $0x48] ss:$12 sps:$4 sm:$0xff]  }
 0x7c6   :  { %v2462_v27 = vpop.f32.mrb[46].mxu1  ;;  %v2502_v55 = vpop.f32.mrb[70].mxu0  ;;  %2650 = vmatprep.subr.bf16.mxu1 %v6153_v33  ;;  %4207 = vmatprep.subr.bf16.mxu0 %v7408_v23  ;;  %v4380_v48 = vadd.f32 %v5710_v11, %v2460_v53  ;;  %v4815_v53 = vld [vmem:[%s7234_s3 + $0x60] ss:$12 sps:$4 sm:$0xff]   ;;  %v4816_v44 = vld [vmem:[%s7234_s3 + $0x68] ss:$12 sps:$4 sm:$0xff]  }
 0x7c7   :  { %v3569_v5 = vmul.f32 -1.442695, %v4378_v54  ;;  %v2463_v36 = vpop.f32.mrb[47].mxu1  ;;  %v4180_v29 = vpop.f32.mrb[71].mxu0  ;;  %v4814_v54 = vld [vmem:[%s7234_s3 + $0x64] ss:$12 sps:$4 sm:$0xff]  }
 0x7c8   :  { %v3570_v58 = vmul.f32 -1.442695, %v4380_v48  ;;  %v4817_v27 = vld [vmem:[%s7234_s3 + $0x7c] ss:$12 sps:$4 sm:$0xff]   ;;  %v4818_v55 = vld [vmem:[%s7234_s3 + $0x78] ss:$12 sps:$4 sm:$0xff]  }
 0x7c9   :  { %4670 = vpow2.f32 %v3569_v5  ;;  %2651 = vmatpush1.bf16.msra.mxu1 %v6161_v19  ;;  %4208 = vmatpush3.bf16.msra.mxu0 %v6167_v21  ;;  %v7567_v21 = vld [vmem:[#allocation15_spill] sm:$0xff]  ;;  %v4819_v5 = vld [vmem:[%s7234_s3 + $0x80] ss:$12 sps:$4 sm:$0xff]  }
 0x7ca   :  { %2652 = vmatprep.subr.bf16.mxu1 %v6173_v22  ;;  %4209 = vmatprep.subr.bf16.mxu0 %v7408_v23  ;;  %4672 = vpow2.f32 %v3570_v58  ;;  %v4820_v36 = vld [vmem:[%s7234_s3 + $0x94] ss:$12 sps:$4 sm:$0xff]   ;;  %v4821_v29 = vld [vmem:[%s7234_s3 + $0x90] ss:$12 sps:$4 sm:$0xff]   ;;  %v4822_v48 = vld [vmem:[%s7234_s3 + $0x98] ss:$12 sps:$4 sm:$0xff]  }
 0x7cb   :  { %v4823_v58 = vld [vmem:[%s7234_s3 + $0xac] ss:$12 sps:$4 sm:$0xff]  }
 0x7cd   :  { %2653 = vmatpush1.bf16.msra.mxu1 %v6180_v26  ;;  %4210 = vmatpush3.bf16.msra.mxu0 %v6186_v12  ;;  %v7568_v26 = vld [vmem:[#allocation16_spill] sm:$0xff]  ;;  %v7569_v12 = vld [vmem:[#allocation17_spill] sm:$0xff] }
 0x7ce   :  { %2654 = vmatprep.subr.bf16.mxu1 %v6192_v56  ;;  %4211 = vmatprep.subr.bf16.mxu0 %v7408_v23  ;;  %v7570_v56 = vld [vmem:[#allocation18_spill] sm:$0xff] }
 0x7d1   :  { %2655 = vmatpush1.bf16.msra.mxu1 %v6199_v63  ;;  %4212 = vmatpush3.bf16.msra.mxu0 %v6205_v57  ;;  %v2500_v63 = vadd.f32 %v2499_v34, %v7537_v7  ;;  %v4813_v34 = vld [vmem:[%s7234_s3 + $0x50] ss:$12 sps:$4 sm:$0xff]  }
 0x7d2   :  { %2656 = vmatprep.subr.bf16.mxu1 %v6211_v8  ;;  %4213 = vmatprep.subr.bf16.mxu0 %v7408_v23  ;;  %v2418_v8 = vadd.f32 %v6583_v42, %v7538_v31 }
 0x7d3   :  { %v4671_v59 = vpop.eup %4670 }
 0x7d4   :  { %v2509_v33 = vadd.f32 1.0, %v4671_v59  ;;  %v4673_v19 = vpop.eup %4672  ;;  %v4824_v59 = vld [vmem:[%s7234_s3 + $0xa8] ss:$12 sps:$4 sm:$0xff]  }
 0x7d5   :  { %2657 = vmatpush1.bf16.msra.mxu1 %v6218_v20  ;;  %4214 = vmatpush3.bf16.msra.mxu0 %v6224_v9  ;;  %v2516_v22 = vadd.f32 1.0, %v4673_v19  ;;  %v7571_v9 = vld [vmem:[#allocation19_spill] sm:$0xff] }
 0x7d6   :  { %4674 = vrcp.f32 %v2509_v33  ;;  %2658 = vmatprep.subr.bf16.mxu1 %v7529_v47  ;;  %4215 = vmatprep.subr.bf16.mxu0 %v7408_v23  ;;  %v7572_v47 = vld [vmem:[#allocation20_spill] sm:$0xff]  ;;  %v6754_v19 = vld [vmem:[%s7237_s6 + $0x4] ss:$12 sps:$4 sm:$0xff]  }
 0x7d7   :  { %4676 = vrcp.f32 %v2516_v22  ;;  %v4825_v33 = vld [vmem:[%s7234_s3 + $0xb0] ss:$12 sps:$4 sm:$0xff]  }
 0x7d9   :  { %2659 = vmatpush1.bf16.msra.mxu1 %v7530_v51  ;;  %4216 = vmatpush3.bf16.msra.mxu0 %v7531_v41  ;;  %v7573_v51 = vld [vmem:[#allocation21_spill] sm:$0xff] }
 0x7da   :  { %2726 = vmatprep.subr.bf16.mxu1 %v7567_v21  ;;  %4221 = vmatprep.subr.bf16.mxu0 %v7408_v23 }
 0x7dc   :  { %2677 = vmatmul.mubr.bf16.vlgmr.msra.gmra.mrb[52].mxu1 %v2528_v39  ;;  %4218 = vmatmul.mubr.bf16.vlgmr.msra.gmra.mrb[76].mxu0 %v2528_v39  ;;  %v4811_v39 = vld [vmem:[%s7234_s3 + $0x4c] ss:$12 sps:$4 sm:$0xff]  }
 0x7dd   :  { %2727 = vmatpush1.bf16.msra.mxu1 %v7568_v26  ;;  %4222 = vmatpush3.bf16.msra.mxu0 %v7569_v12  ;;  %v7581_v26 = vld [vmem:[#allocation25_spill] sm:$0xff] }
 0x7de   :  { %2728 = vmatprep.subr.bf16.mxu1 %v7570_v56  ;;  %4223 = vmatprep.subr.bf16.mxu0 %v7408_v23 }
 0x7df   :  { %2758 = vmatprep.mubr.bf16.mxu1 %v7412_v24  ;;  %4237 = vmatprep.mubr.msk.bf16.mxu0 %vm4900_vm0, %v7408_v23 }
 0x7e0   :  { %v4675_v57 = vpop.eup %4674 }
 0x7e1   :  { %v2519_v20 = vmul.f32 %v4675_v57, %v2500_v63  ;;  %2729 = vmatpush1.bf16.msra.mxu1 %v7571_v9  ;;  %4224 = vmatpush3.bf16.msra.mxu0 %v7572_v47  ;;  %v4677_v42 = vpop.eup %4676 }
 0x7e2   :  { %2730 = vmatprep.subr.bf16.mxu1 %v7573_v51  ;;  %4225 = vmatprep.subr.bf16.mxu0 %v7408_v23 }
 0x7e3   :  { %v2520_v41 = vadd.f32 %v2519_v20, %v2418_v8 }
 0x7e5   :  { %4678 = vtanh.f32 %v2520_v41  ;;  %2731 = vmatpush1.bf16.msra.mxu1 %v7539_v10  ;;  %4226 = vmatpush3.bf16.msra.mxu0 %v7540_v1  ;;  %v2522_v1 = vsub.f32 1.0, %v4677_v42 }
 0x7e6   :  { %2732 = vmatprep.subr.bf16.mxu1 %v7541_v45  ;;  %4227 = vmatprep.subr.bf16.mxu0 %v7408_v23 }
 0x7e9   :  { %2733 = vmatpush1.bf16.msra.mxu1 %v7542_v40  ;;  %4228 = vmatpush3.bf16.msra.mxu0 %v7543_v60  ;;  %v2524_v40 = vmul.f32 %v4677_v42, %v6534_v37  ;;  %v7577_v60 = vld [vmem:[#allocation47_spill] sm:$0xff]  ;;  %v7580_v37 = vld [vmem:[#allocation52_spill] sm:$0xff] }
 0x7ea   :  { %2734 = vmatprep.subr.bf16.mxu1 %v7544_v50  ;;  %4229 = vmatprep.subr.bf16.mxu0 %v7408_v23 }
 0x7ed   :  { %2735 = vmatpush1.bf16.msra.mxu1 %v7574_v61  ;;  %4230 = vmatpush3.bf16.msra.mxu0 %v7575_v49 }
 0x7ee   :  { %2736 = vmatprep.subr.bf16.mxu1 %v6353_v18  ;;  %4231 = vmatprep.subr.bf16.mxu0 %v7408_v23  ;;  %v7578_v18 = vld [vmem:[#allocation49_spill] sm:$0xff] }
 0x7ef   :  { %v4679_v10 = vpop.eup %4678 }
 0x7f0   :  { %v2523_v45 = vmul.f32 %v4679_v10, %v2522_v1 }
 0x7f1   :  { %2737 = vmatpush1.bf16.msra.mxu1 %v7576_v6  ;;  %4232 = vmatpush3.bf16.msra.mxu0 %v6367_v25 }
 0x7f2   :  { %2738 = vmatprep.subr.bf16.mxu1 %v7577_v60  ;;  %4233 = vmatprep.subr.bf16.mxu0 %v7408_v23  ;;  %v6658_v50 = vadd.f32 %v2524_v40, %v2523_v45 }
 0x7f4   :  { %v2725_v25 = vpack.c.bf16 %v6658_v50, %v6658_v50 }
 0x7f5   :  { %2739 = vmatpush1.bf16.msra.mxu1 %v6382_v4  ;;  %4234 = vmatpush3.bf16.msra.mxu0 %v7548_v46  ;;  %v4803_v4 = vld [vmem:[%s7234_s3] ss:$12 sps:$4 sm:$0xff]   ;;  %v4804_v46 = vld [vmem:[%s7234_s3 + $0x8] ss:$12 sps:$4 sm:$0xff]  }
 0x7f6   :  { %2740 = vmatprep.subr.bf16.mxu1 %v7578_v18  ;;  %4235 = vmatprep.subr.bf16.mxu0 %v7408_v23 }
 0x7f9   :  { %2741 = vmatpush1.bf16.msra.mxu1 %v7579_v62  ;;  %4236 = vmatpush3.bf16.msra.mxu0 %v7580_v37  ;;  %v2640_v37 = vrot.slane %v6586_v52, 6 }
 0x7fa   :  { %2832 = vmatprep.subr.bf16.mxu1 %v4802_v16  ;;  %4241 = vmatprep.subr.bf16.mxu0 %v7408_v23 }
 0x7fc   :  { %2759 = vmatmul.mubr.bf16.vlgmr.msra.gmra.mrb[52].mxu1 %v2725_v25  ;;  %4238 = vmatmul.mubr.bf16.vlgmr.msra.gmra.mrb[80].mxu0 %v2725_v25 }
 0x7fd   :  { %2833 = vmatpush1.bf16.msra.mxu1 %v4803_v4  ;;  %4242 = vmatpush3.bf16.msra.mxu0 %v4804_v46 }
 0x7fe   :  { %2834 = vmatprep.subr.bf16.mxu1 %v4805_v15  ;;  %4243 = vmatprep.subr.bf16.mxu0 %v7408_v23 }
 0x7ff   :  { %2864 = vmatprep.mubr.bf16.mxu1 %v7412_v24  ;;  %4257 = vmatprep.mubr.msk.bf16.mxu0 %vm4900_vm0, %v7408_v23 }
 0x801   :  { %2835 = vmatpush1.bf16.msra.mxu1 %v4806_v43  ;;  %4244 = vmatpush3.bf16.msra.mxu0 %v4807_v3 }
 0x802   :  { %2836 = vmatprep.subr.bf16.mxu1 %v4808_v13  ;;  %4245 = vmatprep.subr.bf16.mxu0 %v7408_v23 }
 0x805   :  { %2837 = vmatpush1.bf16.msra.mxu1 %v4809_v2  ;;  %4246 = vmatpush3.bf16.msra.mxu0 %v4810_v35 }
 0x806   :  { %2838 = vmatprep.subr.bf16.mxu1 %v4811_v39  ;;  %4247 = vmatprep.subr.bf16.mxu0 %v7408_v23 }
 0x809   :  { %2839 = vmatpush1.bf16.msra.mxu1 %v4812_v17  ;;  %4248 = vmatpush3.bf16.msra.mxu0 %v4813_v34 }
 0x80a   :  { %2840 = vmatprep.subr.bf16.mxu1 %v4814_v54  ;;  %4249 = vmatprep.subr.bf16.mxu0 %v7408_v23  ;;  %v6778_v54 = vld [vmem:[%s7237_s6] ss:$12 sps:$4 sm:$0xff]  }
 0x80d   :  { %2841 = vmatpush1.bf16.msra.mxu1 %v4815_v53  ;;  %4250 = vmatpush3.bf16.msra.mxu0 %v4816_v44  ;;  %v6784_v53 = vld [vmem:[%s7237_s6 + $0x8] ss:$12 sps:$4 sm:$0xff]  }
 0x80e   :  { %2842 = vmatprep.subr.bf16.mxu1 %v4817_v27  ;;  %4251 = vmatprep.subr.bf16.mxu0 %v7408_v23  ;;  %v6790_v44 = vld [vmem:[%s7237_s6 + $0x1c] ss:$12 sps:$4 sm:$0xff]   ;;  %v6800_v27 = vld [vmem:[%s7237_s6 + $0x18] ss:$12 sps:$4 sm:$0xff]  }
 0x811   :  { %2843 = vmatpush1.bf16.msra.mxu1 %v4818_v55  ;;  %4252 = vmatpush3.bf16.msra.mxu0 %v4819_v5  ;;  %v6806_v55 = vld [vmem:[%s7237_s6 + $0x20] ss:$12 sps:$4 sm:$0xff]  }
 0x812   :  { %2844 = vmatprep.subr.bf16.mxu1 %v4820_v36  ;;  %4253 = vmatprep.subr.bf16.mxu0 %v7408_v23  ;;  %v6812_v5 = vld [vmem:[%s7237_s6 + $0x34] ss:$12 sps:$4 sm:$0xff]  }
 0x815   :  { %2845 = vmatpush1.bf16.msra.mxu1 %v4821_v29  ;;  %4254 = vmatpush3.bf16.msra.mxu0 %v4822_v48 }
 0x816   :  { %2846 = vmatprep.subr.bf16.mxu1 %v4823_v58  ;;  %4255 = vmatprep.subr.bf16.mxu0 %v7408_v23 }
 0x819   :  { %2847 = vmatpush1.bf16.msra.mxu1 %v4824_v59  ;;  %4256 = vmatpush3.bf16.msra.mxu0 %v4825_v33  ;;  %v6822_v33 = vld [vmem:[%s7237_s6 + $0x30] ss:$12 sps:$4 sm:$0xff]  }
 0x81a   :  { %2946 = vmatprep.subr.bf16.mxu1 %v6754_v19  ;;  %4261 = vmatprep.subr.bf16.mxu0 %v7408_v23 }
 0x88f   :  { %v2564_v21 = vpop.f32.mrb[48].mxu1  ;;  %v2605_v22 = vpop.f32.mrb[72].mxu0 }
 0x890   :  { %v2565_v12 = vadd.f32 %v2564_v21, %v7581_v26  ;;  %v2566_v56 = vpop.f32.mrb[49].mxu1  ;;  %v4199_v63 = vpop.f32.mrb[73].mxu0  ;;  %v2606_v60 = vadd.f32 %v2605_v22, %v5316_v14  ;;  %v6828_v21 = vld [vmem:[%s7237_s6 + $0x38] ss:$12 sps:$4 sm:$0xff]  }
 0x891   :  { %v2567_v57 = vadd.f32 %v2566_v56, %v5307_v30  ;;  %v2568_v8 = vpop.f32.mrb[50].mxu1  ;;  %v2608_v20 = vpop.f32.mrb[74].mxu0  ;;  %v6834_v56 = vld [vmem:[%s7237_s6 + $0x4c] ss:$12 sps:$4 sm:$0xff]  }
 0x892   :  { %v2612_v9 = vrot.slane %v2565_v12, 4  ;;  %v2569_v47 = vpop.f32.mrb[51].mxu1  ;;  %v4200_v51 = vpop.f32.mrb[75].mxu0  ;;  %v2632_v18 = vrot.slane %v2606_v60, 4  ;;  %v6899_v60 = vld [vmem:[%s7237_s6 + $0x90] ss:$12 sps:$4 sm:$0xff]  }
 0x893   :  { %v2622_v41 = vrot.slane %v2567_v57, 4  ;;  %v6848_v47 = vld [vmem:[%s7237_s6 + $0x50] ss:$12 sps:$4 sm:$0xff]  }
 0x894   :  { %v2614_v42 = vadd.f32 %v2612_v9, %v7526_v38  ;;  %v6842_v9 = vld [vmem:[%s7237_s6 + $0x48] ss:$12 sps:$4 sm:$0xff]   ;;  %v6854_v51 = vld [vmem:[%s7237_s6 + $0x64] ss:$12 sps:$4 sm:$0xff]  }
 0x895   :  { %v2624_v61 = vadd.f32 %v2622_v41, %v7527_v28 }
 0x896   :  { %v3571_v49 = vmul.f32 -1.442695, %v2614_v42  ;;  %v6861_v42 = vld [vmem:[%s7237_s6 + $0x60] ss:$12 sps:$4 sm:$0xff]  }
 0x897   :  { %v3572_v1 = vmul.f32 -1.442695, %v2624_v61  ;;  %v6867_v61 = vld [vmem:[%s7237_s6 + $0x68] ss:$12 sps:$4 sm:$0xff]  }
 0x898   :  { %4680 = vpow2.f32 %v3571_v49  ;;  %v6873_v49 = vld [vmem:[%s7237_s6 + $0x7c] ss:$12 sps:$4 sm:$0xff]  }
 0x899   :  { %4682 = vpow2.f32 %v3572_v1  ;;  %v6880_v1 = vld [vmem:[%s7237_s6 + $0x78] ss:$12 sps:$4 sm:$0xff]  }
 0x8a2   :  { %v4681_v10 = vpop.eup %4680 }
 0x8a3   :  { %v4683_v45 = vpop.eup %4682  ;;  %v2618_v40 = vadd.f32 1.0, %v4681_v10  ;;  %v6886_v10 = vld [vmem:[%s7237_s6 + $0x80] ss:$12 sps:$4 sm:$0xff]  }
 0x8a4   :  { %v2628_v6 = vadd.f32 1.0, %v4683_v45  ;;  %v6892_v45 = vld [vmem:[%s7237_s6 + $0x94] ss:$12 sps:$4 sm:$0xff]  }
 0x8a5   :  { %4684 = vrcp.f32 %v2618_v40 }
 0x8a6   :  { %4686 = vrcp.f32 %v2628_v6 }
 0x8af   :  { %v4685_v62 = vpop.eup %4684  ;;  %v6764_v25 = vpop.f32.mrb[76].mxu0 }
 0x8b0   :  { %v4687_v16 = vpop.eup %4686  ;;  %v2634_v4 = vmul.f32 %v4685_v62, %v2632_v18  ;;  %v4219_v46 = vpop.f32.mrb[77].mxu0  ;;  %v6905_v18 = vld [vmem:[%s7237_s6 + $0x98] ss:$12 sps:$4 sm:$0xff]  }
 0x8b1   :  { %v2722_v15 = vpop.f32.mrb[78].mxu0  ;;  %v2642_v43 = vmul.f32 %v4687_v16, %v2640_v37  ;;  %v2637_v2 = vsub.f32 1.0, %v4687_v16  ;;  %v6911_v62 = vld [vmem:[%s7237_s6 + $0xac] ss:$12 sps:$4 sm:$0xff]   ;;  %v6918_v37 = vld [vmem:[%s7237_s6 + $0xa8] ss:$12 sps:$4 sm:$0xff]  }
 0x8b2   :  { %v2635_v3 = vadd.f32 %v2634_v4, %v7528_v32  ;;  %v4220_v13 = vpop.f32.mrb[79].mxu0  ;;  %v6924_v16 = vld [vmem:[%s7237_s6 + $0xb0] ss:$12 sps:$4 sm:$0xff]  }
 0x8b3   :  { %v6930_v46 = vld [vmem:[%s7238_s7 + $0x4] ss:$12 sps:$4 sm:$0xff]   ;;  %v6951_v13 = vld [vmem:[%s7238_s7 + $0x1c] ss:$12 sps:$4 sm:$0xff]  }
 0x8b4   :  { %4688 = vtanh.f32 %v2635_v3  ;;  %v6945_v3 = vld [vmem:[%s7238_s7 + $0x8] ss:$12 sps:$4 sm:$0xff]  }
 0x8be   :  { %v4689_v35 = vpop.eup %4688 }
 0x8bf   :  { %v2638_v39 = vmul.f32 %v4689_v35, %v2637_v2 }
 0x8c1   :  { %v6767_v17 = vadd.f32 %v2642_v43, %v2638_v39  ;;  %v6939_v43 = vld [vmem:[%s7238_s7] ss:$12 sps:$4 sm:$0xff]   ;;  %v2720_v39 = vadd.f32 %v6764_v25, %v7538_v31 }
 0x8c2   :  { %v6977_v25 = vld [vmem:[%s7238_s7 + $0x34] ss:$12 sps:$4 sm:$0xff]  }
 0x8c3   :  { %v2828_v34 = vpack.c.bf16 %v6767_v17, %v6767_v17 }
 0x8c5   :  { %v6771_v52 = vrot.slane %v2828_v34, 2 }
 0x8c7   :  { %2865 = vmatmul.mubr.bf16.vlgmr.msra.gmra.mrb[56].mxu1 %v6771_v52  ;;  %4258 = vmatmul.mubr.bf16.vlgmr.msra.gmra.mrb[84].mxu0 %v6771_v52 }
 0x8c8   :  { %2947 = vmatpush1.bf16.msra.mxu1 %v6778_v54  ;;  %4262 = vmatpush3.bf16.msra.mxu0 %v6784_v53 }
 0x8c9   :  { %2948 = vmatprep.subr.bf16.mxu1 %v6790_v44  ;;  %4263 = vmatprep.subr.bf16.mxu0 %v7408_v23 }
 0x8ca   :  { %2978 = vmatprep.mubr.bf16.mxu1 %v7412_v24  ;;  %4277 = vmatprep.mubr.msk.bf16.mxu0 %vm4900_vm0, %v7408_v23 }
 0x8cc   :  { %2949 = vmatpush1.bf16.msra.mxu1 %v6800_v27  ;;  %4264 = vmatpush3.bf16.msra.mxu0 %v6806_v55 }
 0x8cd   :  { %2950 = vmatprep.subr.bf16.mxu1 %v6812_v5  ;;  %4265 = vmatprep.subr.bf16.mxu0 %v7408_v23 }
 0x8cf   :  { %v2760_v36 = vpop.f32.mrb[52].mxu1  ;;  %v6816_v29 = vpop.f32.mrb[80].mxu0 }
 0x8d0   :  { %v4382_v48 = vadd.f32 %v5704_v0, %v2760_v36  ;;  %v2762_v58 = vpop.f32.mrb[53].mxu1  ;;  %v4239_v59 = vpop.f32.mrb[81].mxu0  ;;  %2951 = vmatpush1.bf16.msra.mxu1 %v6822_v33  ;;  %4266 = vmatpush3.bf16.msra.mxu0 %v6828_v21  ;;  %v2802_v2 = vadd.f32 %v6816_v29, %v7537_v7  ;;  %v6971_v36 = vld [vmem:[%s7238_s7 + $0x20] ss:$12 sps:$4 sm:$0xff]  }
 0x8d1   :  { %v2764_v22 = vpop.f32.mrb[54].mxu1  ;;  %v2804_v12 = vpop.f32.mrb[82].mxu0  ;;  %2952 = vmatprep.subr.bf16.mxu1 %v6834_v56  ;;  %4267 = vmatprep.subr.bf16.mxu0 %v7408_v23  ;;  %v4384_v20 = vadd.f32 %v5710_v11, %v2762_v58  ;;  %v6990_v58 = vld [vmem:[%s7238_s7 + $0x38] ss:$12 sps:$4 sm:$0xff]  }
 0x8d2   :  { %v3573_v63 = vmul.f32 -1.442695, %v4382_v48  ;;  %v2765_v57 = vpop.f32.mrb[55].mxu1  ;;  %v4240_v8 = vpop.f32.mrb[83].mxu0  ;;  %v6984_v48 = vld [vmem:[%s7238_s7 + $0x30] ss:$12 sps:$4 sm:$0xff]  }
 0x8d3   :  { %v3574_v41 = vmul.f32 -1.442695, %v4384_v20  ;;  %v6996_v59 = vld [vmem:[%s7238_s7 + $0x4c] ss:$12 sps:$4 sm:$0xff]   ;;  %v7003_v22 = vld [vmem:[%s7238_s7 + $0x48] ss:$12 sps:$4 sm:$0xff]  }
 0x8d4   :  { %4690 = vpow2.f32 %v3573_v63  ;;  %2953 = vmatpush1.bf16.msra.mxu1 %v6842_v9  ;;  %4268 = vmatpush3.bf16.msra.mxu0 %v6848_v47  ;;  %v7009_v12 = vld [vmem:[%s7238_s7 + $0x50] ss:$12 sps:$4 sm:$0xff]   ;;  %v7022_v8 = vld [vmem:[%s7238_s7 + $0x60] ss:$12 sps:$4 sm:$0xff]   ;;  %v7028_v20 = vld [vmem:[%s7238_s7 + $0x68] ss:$12 sps:$4 sm:$0xff]  }
 0x8d5   :  { %2954 = vmatprep.subr.bf16.mxu1 %v6854_v51  ;;  %4269 = vmatprep.subr.bf16.mxu0 %v7408_v23  ;;  %4692 = vpow2.f32 %v3574_v41  ;;  %v7015_v63 = vld [vmem:[%s7238_s7 + $0x64] ss:$12 sps:$4 sm:$0xff]   ;;  %v7034_v41 = vld [vmem:[%s7238_s7 + $0x7c] ss:$12 sps:$4 sm:$0xff]  }
 0x8d8   :  { %2955 = vmatpush1.bf16.msra.mxu1 %v6861_v42  ;;  %4270 = vmatpush3.bf16.msra.mxu0 %v6867_v61 }
 0x8d9   :  { %2956 = vmatprep.subr.bf16.mxu1 %v6873_v49  ;;  %4271 = vmatprep.subr.bf16.mxu0 %v7408_v23 }
 0x8dc   :  { %2957 = vmatpush1.bf16.msra.mxu1 %v6880_v1  ;;  %4272 = vmatpush3.bf16.msra.mxu0 %v6886_v10 }
 0x8dd   :  { %2958 = vmatprep.subr.bf16.mxu1 %v6892_v45  ;;  %4273 = vmatprep.subr.bf16.mxu0 %v7408_v23 }
 0x8de   :  { %v4691_v40 = vpop.eup %4690 }
 0x8df   :  { %v2811_v6 = vadd.f32 1.0, %v4691_v40  ;;  %v4693_v4 = vpop.eup %4692 }
 0x8e0   :  { %2959 = vmatpush1.bf16.msra.mxu1 %v6899_v60  ;;  %4274 = vmatpush3.bf16.msra.mxu0 %v6905_v18  ;;  %v2818_v15 = vadd.f32 1.0, %v4693_v4 }
 0x8e1   :  { %4694 = vrcp.f32 %v2811_v6  ;;  %2960 = vmatprep.subr.bf16.mxu1 %v6911_v62  ;;  %4275 = vmatprep.subr.bf16.mxu0 %v7408_v23 }
 0x8e2   :  { %4696 = vrcp.f32 %v2818_v15 }
 0x8e4   :  { %2961 = vmatpush1.bf16.msra.mxu1 %v6918_v37  ;;  %4276 = vmatpush3.bf16.msra.mxu0 %v6924_v16 }
 0x8e5   :  { %3028 = vmatprep.subr.bf16.mxu1 %v6930_v46  ;;  %4281 = vmatprep.subr.bf16.mxu0 %v7408_v23 }
 0x8e7   :  { %2979 = vmatmul.mubr.bf16.vlgmr.msra.gmra.mrb[60].mxu1 %v6771_v52  ;;  %4278 = vmatmul.mubr.bf16.vlgmr.msra.gmra.mrb[88].mxu0 %v6771_v52  ;;  %v6965_v52 = vld [vmem:[%s7238_s7 + $0x18] ss:$12 sps:$4 sm:$0xff]  }
 0x8e8   :  { %3029 = vmatpush1.bf16.msra.mxu1 %v6939_v43  ;;  %4282 = vmatpush3.bf16.msra.mxu0 %v6945_v3 }
 0x8e9   :  { %3030 = vmatprep.subr.bf16.mxu1 %v6951_v13  ;;  %4283 = vmatprep.subr.bf16.mxu0 %v7408_v23 }
 0x8ea   :  { %3060 = vmatprep.mubr.bf16.mxu1 %v7412_v24  ;;  %4297 = vmatprep.mubr.msk.bf16.mxu0 %vm4900_vm0, %v7408_v23 }
 0x8eb   :  { %v4695_v35 = vpop.eup %4694 }
 0x8ec   :  { %v2821_v34 = vmul.f32 %v4695_v35, %v2802_v2  ;;  %3031 = vmatpush1.bf16.msra.mxu1 %v6965_v52  ;;  %4284 = vmatpush3.bf16.msra.mxu0 %v6971_v36  ;;  %v4697_v57 = vpop.eup %4696  ;;  %v7042_v2 = vld [vmem:[%s7238_s7 + $0x78] ss:$12 sps:$4 sm:$0xff]   ;;  %v7048_v35 = vld [vmem:[%s7238_s7 + $0x80] ss:$12 sps:$4 sm:$0xff]  }
 0x8ed   :  { %3032 = vmatprep.subr.bf16.mxu1 %v6977_v25  ;;  %4285 = vmatprep.subr.bf16.mxu0 %v7408_v23  ;;  %v2824_v40 = vsub.f32 1.0, %v4697_v57  ;;  %v2826_v15 = vmul.f32 %v4697_v57, %v6658_v50  ;;  %v7075_v57 = vld [vmem:[%s7238_s7 + $0xac] ss:$12 sps:$4 sm:$0xff]  }
 0x8ee   :  { %v2822_v29 = vadd.f32 %v2821_v34, %v2720_v39  ;;  %v7054_v39 = vld [vmem:[%s7238_s7 + $0x94] ss:$12 sps:$4 sm:$0xff]   ;;  %v7063_v34 = vld [vmem:[%s7238_s7 + $0x90] ss:$12 sps:$4 sm:$0xff]  }
 0x8f0   :  { %4698 = vtanh.f32 %v2822_v29  ;;  %3033 = vmatpush1.bf16.msra.mxu1 %v6984_v48  ;;  %4286 = vmatpush3.bf16.msra.mxu0 %v6990_v58  ;;  %v7069_v29 = vld [vmem:[%s7238_s7 + $0x98] ss:$12 sps:$4 sm:$0xff]  }
 0x8f1   :  { %3034 = vmatprep.subr.bf16.mxu1 %v6996_v59  ;;  %4287 = vmatprep.subr.bf16.mxu0 %v7408_v23 }
 0x8f4   :  { %3035 = vmatpush1.bf16.msra.mxu1 %v7003_v22  ;;  %4288 = vmatpush3.bf16.msra.mxu0 %v7009_v12 }
 0x8f5   :  { %3036 = vmatprep.subr.bf16.mxu1 %v7015_v63  ;;  %4289 = vmatprep.subr.bf16.mxu0 %v7408_v23 }
 0x8f8   :  { %3037 = vmatpush1.bf16.msra.mxu1 %v7022_v8  ;;  %4290 = vmatpush3.bf16.msra.mxu0 %v7028_v20 }
 0x8f9   :  { %3038 = vmatprep.subr.bf16.mxu1 %v7034_v41  ;;  %4291 = vmatprep.subr.bf16.mxu0 %v7408_v23 }
 0x8fa   :  { %v4699_v6 = vpop.eup %4698 }
 0x8fb   :  { %v2825_v4 = vmul.f32 %v4699_v6, %v2824_v40  ;;  %v7082_v40 = vld [vmem:[%s7238_s7 + $0xa8] ss:$12 sps:$4 sm:$0xff]   ;;  %v7088_v6 = vld [vmem:[%s7238_s7 + $0xb0] ss:$12 sps:$4 sm:$0xff]  }
 0x8fc   :  { %3039 = vmatpush1.bf16.msra.mxu1 %v7042_v2  ;;  %4292 = vmatpush3.bf16.msra.mxu0 %v7048_v35 }
 0x8fd   :  { %3040 = vmatprep.subr.bf16.mxu1 %v7054_v39  ;;  %4293 = vmatprep.subr.bf16.mxu0 %v7408_v23  ;;  %v7058_v50 = vadd.f32 %v2826_v15, %v2825_v4 }
 0x8ff   :  { %v3027_v4 = vpack.c.bf16 %v7058_v50, %v7058_v50 }
 0x900   :  { %3041 = vmatpush1.bf16.msra.mxu1 %v7063_v34  ;;  %4294 = vmatpush3.bf16.msra.mxu0 %v7069_v29 }
 0x901   :  { %3042 = vmatprep.subr.bf16.mxu1 %v7075_v57  ;;  %4295 = vmatprep.subr.bf16.mxu0 %v7408_v23 }
 0x904   :  { %3043 = vmatpush1.bf16.msra.mxu1 %v7082_v40  ;;  %4296 = vmatpush3.bf16.msra.mxu0 %v7088_v6 }
 0x905   :  { %3134 = vmatprep.subr.bf16.mxu1 %v6754_v19  ;;  %4301 = vmatprep.subr.bf16.mxu0 %v7408_v23 }
 0x907   :  { %3061 = vmatmul.mubr.bf16.vlgmr.msra.gmra.mrb[60].mxu1 %v3027_v4  ;;  %4298 = vmatmul.mubr.bf16.vlgmr.msra.gmra.mrb[92].mxu0 %v3027_v4 }
 0x908   :  { %3135 = vmatpush1.bf16.msra.mxu1 %v6778_v54  ;;  %4302 = vmatpush3.bf16.msra.mxu0 %v6784_v53 }
 0x909   :  { %3136 = vmatprep.subr.bf16.mxu1 %v6790_v44  ;;  %4303 = vmatprep.subr.bf16.mxu0 %v7408_v23 }
 0x90a   :  { %3166 = vmatprep.mubr.bf16.mxu1 %v7412_v24  ;;  %4317 = vmatprep.mubr.msk.bf16.mxu0 %vm4900_vm0, %v7408_v23 }
 0x90c   :  { %3137 = vmatpush1.bf16.msra.mxu1 %v6800_v27  ;;  %4304 = vmatpush3.bf16.msra.mxu0 %v6806_v55 }
 0x90d   :  { %3138 = vmatprep.subr.bf16.mxu1 %v6812_v5  ;;  %4305 = vmatprep.subr.bf16.mxu0 %v7408_v23 }
 0x910   :  { %3139 = vmatpush1.bf16.msra.mxu1 %v6822_v33  ;;  %4306 = vmatpush3.bf16.msra.mxu0 %v6828_v21 }
 0x911   :  { %3140 = vmatprep.subr.bf16.mxu1 %v6834_v56  ;;  %4307 = vmatprep.subr.bf16.mxu0 %v7408_v23 }
 0x914   :  { %3141 = vmatpush1.bf16.msra.mxu1 %v6842_v9  ;;  %4308 = vmatpush3.bf16.msra.mxu0 %v6848_v47 }
 0x915   :  { %3142 = vmatprep.subr.bf16.mxu1 %v6854_v51  ;;  %4309 = vmatprep.subr.bf16.mxu0 %v7408_v23 }
 0x918   :  { %3143 = vmatpush1.bf16.msra.mxu1 %v6861_v42  ;;  %4310 = vmatpush3.bf16.msra.mxu0 %v6867_v61 }
 0x919   :  { %3144 = vmatprep.subr.bf16.mxu1 %v6873_v49  ;;  %4311 = vmatprep.subr.bf16.mxu0 %v7408_v23 }
 0x91c   :  { %3145 = vmatpush1.bf16.msra.mxu1 %v6880_v1  ;;  %4312 = vmatpush3.bf16.msra.mxu0 %v6886_v10 }
 0x91d   :  { %3146 = vmatprep.subr.bf16.mxu1 %v6892_v45  ;;  %4313 = vmatprep.subr.bf16.mxu0 %v7408_v23 }
 0x920   :  { %3147 = vmatpush1.bf16.msra.mxu1 %v6899_v60  ;;  %4314 = vmatpush3.bf16.msra.mxu0 %v6905_v18 }
 0x921   :  { %3148 = vmatprep.subr.bf16.mxu1 %v6911_v62  ;;  %4315 = vmatprep.subr.bf16.mxu0 %v7408_v23  ;;  %v2942_v62 = vrot.slane %v6767_v17, 6 }
 0x924   :  { %3149 = vmatpush1.bf16.msra.mxu1 %v6918_v37  ;;  %4316 = vmatpush3.bf16.msra.mxu0 %v6924_v16 }
 0x925   :  { %3216 = vmatprep.subr.bf16.mxu1 %v6930_v46  ;;  %4321 = vmatprep.subr.bf16.mxu0 %v7408_v23 }
 0x99a   :  { %v2866_v19 = vpop.f32.mrb[56].mxu1  ;;  %v2907_v54 = vpop.f32.mrb[84].mxu0 }
 0x99b   :  { %v2867_v53 = vadd.f32 %v2866_v19, %v7581_v26  ;;  %v2868_v44 = vpop.f32.mrb[57].mxu1  ;;  %v4259_v27 = vpop.f32.mrb[85].mxu0 }
 0x99c   :  { %v2869_v55 = vadd.f32 %v2868_v44, %v5307_v30  ;;  %v2870_v5 = vpop.f32.mrb[58].mxu1  ;;  %v2910_v33 = vpop.f32.mrb[86].mxu0  ;;  %v2908_v30 = vadd.f32 %v2907_v54, %v5316_v14 }
 0x99d   :  { %v2914_v21 = vrot.slane %v2867_v53, 2  ;;  %v2871_v56 = vpop.f32.mrb[59].mxu1  ;;  %v4260_v9 = vpop.f32.mrb[87].mxu0 }
 0x99e   :  { %v2924_v47 = vrot.slane %v2869_v55, 2  ;;  %v2934_v60 = vrot.slane %v2908_v30, 2  ;;  %v4563_v56 = vld [vmem:[%s7241_s10 + $0x8] sm:$0xff]   ;;  %v4565_v9 = vld [vmem:[%s7241_s10 + $0x18] sm:$0xff]  }
 0x99f   :  { %v2916_v51 = vadd.f32 %v2914_v21, %v7526_v38  ;;  %v4562_v21 = vld [vmem:[%s7241_s10] sm:$0xff]  }
 0x9a0   :  { %v2926_v42 = vadd.f32 %v2924_v47, %v7527_v28  ;;  %v4566_v47 = vld [vmem:[%s7241_s10 + $0x20] sm:$0xff]  }
 0x9a1   :  { %v3575_v61 = vmul.f32 -1.442695, %v2916_v51  ;;  %v4567_v51 = vld [vmem:[%s7241_s10 + $0x28] sm:$0xff]  }
 0x9a2   :  { %v3576_v49 = vmul.f32 -1.442695, %v2926_v42  ;;  %v4568_v42 = vld [vmem:[%s7241_s10 + $0x30] sm:$0xff]  }
 0x9a3   :  { %4700 = vpow2.f32 %v3575_v61  ;;  %v4569_v61 = vld [vmem:[%s7241_s10 + $0x38] sm:$0xff]  }
 0x9a4   :  { %4702 = vpow2.f32 %v3576_v49 }
 0x9ad   :  { %v4701_v1 = vpop.eup %4700 }
 0x9ae   :  { %v4703_v26 = vpop.eup %4702  ;;  %v2920_v10 = vadd.f32 1.0, %v4701_v1 }
 0x9af   :  { %v2930_v45 = vadd.f32 1.0, %v4703_v26 }
 0x9b0   :  { %4704 = vrcp.f32 %v2920_v10 }
 0x9b1   :  { %4706 = vrcp.f32 %v2930_v45 }
 0x9ba   :  { %v4705_v18 = vpop.eup %4704  ;;  %v7136_v37 = vpop.f32.mrb[88].mxu0 }
 0x9bb   :  { %v4707_v38 = vpop.eup %4706  ;;  %v2936_v28 = vmul.f32 %v4705_v18, %v2934_v60  ;;  %v4279_v16 = vpop.f32.mrb[89].mxu0 }
 0x9bc   :  { %v3024_v46 = vpop.f32.mrb[90].mxu0  ;;  %v2944_v15 = vmul.f32 %v4707_v38, %v2942_v62  ;;  %v2939_v53 = vsub.f32 1.0, %v4707_v38 }
 0x9bd   :  { %v2937_v4 = vadd.f32 %v2936_v28, %v7528_v32  ;;  %v4280_v19 = vpop.f32.mrb[91].mxu0 }
 0x9bf   :  { %4708 = vtanh.f32 %v2937_v4 }
 0x9c9   :  { %v4709_v44 = vpop.eup %4708 }
 0x9ca   :  { %v2940_v27 = vmul.f32 %v4709_v44, %v2939_v53 }
 0x9cc   :  { %v2945_v55 = vadd.f32 %v2944_v15, %v2940_v27 }
 0x9ce   :  { %v3130_v14 = vpack.c.bf16 %v2945_v55, %v2945_v55 }
 0x9d0   :  { %v3132_v54 = vrot.slane %v3130_v14, 3 }
 0x9d2   :  { %3167 = vmatmul.mubr.bf16.vlgmr.msra.gmra.mrb[64].mxu1 %v3132_v54  ;;  %4318 = vmatmul.mubr.bf16.vlgmr.msra.gmra.mrb[96].mxu0 %v3132_v54 }
 0x9d3   :  { %3217 = vmatpush1.bf16.msra.mxu1 %v6939_v43  ;;  %4322 = vmatpush3.bf16.msra.mxu0 %v6945_v3 }
 0x9d4   :  { %3218 = vmatprep.subr.bf16.mxu1 %v6951_v13  ;;  %4323 = vmatprep.subr.bf16.mxu0 %v7408_v23 }
 0x9d5   :  { %3248 = vmatprep.mubr.bf16.mxu1 %v7412_v24  ;;  %4337 = vmatprep.mubr.msk.bf16.mxu0 %vm4900_vm0, %v7408_v23 }
 0x9d7   :  { %3219 = vmatpush1.bf16.msra.mxu1 %v6965_v52  ;;  %4324 = vmatpush3.bf16.msra.mxu0 %v6971_v36 }
 0x9d8   :  { %3220 = vmatprep.subr.bf16.mxu1 %v6977_v25  ;;  %4325 = vmatprep.subr.bf16.mxu0 %v7408_v23 }
 0x9da   :  { %v3062_v32 = vpop.f32.mrb[60].mxu1  ;;  %v3103_v17 = vpop.f32.mrb[92].mxu0 }
 0x9db   :  { %v4386_v43 = vadd.f32 %v5704_v0, %v3062_v32  ;;  %v3064_v3 = vpop.f32.mrb[61].mxu1  ;;  %v4299_v13 = vpop.f32.mrb[93].mxu0  ;;  %3221 = vmatpush1.bf16.msra.mxu1 %v6984_v48  ;;  %4326 = vmatpush3.bf16.msra.mxu0 %v6990_v58 }
 0x9dc   :  { %v3066_v24 = vpop.f32.mrb[62].mxu1  ;;  %v3106_v5 = vpop.f32.mrb[94].mxu0  ;;  %3222 = vmatprep.subr.bf16.mxu1 %v6996_v59  ;;  %4327 = vmatprep.subr.bf16.mxu0 %v7408_v23  ;;  %v4388_v33 = vadd.f32 %v5710_v11, %v3064_v3 }
 0x9dd   :  { %v3577_v52 = vmul.f32 -1.442695, %v4386_v43  ;;  %v3067_v36 = vpop.f32.mrb[63].mxu1  ;;  %v4300_v25 = vpop.f32.mrb[95].mxu0 }
 0x9de   :  { %v3578_v48 = vmul.f32 -1.442695, %v4388_v33 }
 0x9df   :  { %4710 = vpow2.f32 %v3577_v52  ;;  %3223 = vmatpush1.bf16.msra.mxu1 %v7003_v22  ;;  %4328 = vmatpush3.bf16.msra.mxu0 %v7009_v12 }
 0x9e0   :  { %3224 = vmatprep.subr.bf16.mxu1 %v7015_v63  ;;  %4329 = vmatprep.subr.bf16.mxu0 %v7408_v23  ;;  %4712 = vpow2.f32 %v3578_v48  ;;  %v3104_v63 = vadd.f32 %v3103_v17, %v7537_v7 }
 0x9e3   :  { %3225 = vmatpush1.bf16.msra.mxu1 %v7022_v8  ;;  %4330 = vmatpush3.bf16.msra.mxu0 %v7028_v20  ;;  %v3022_v20 = vadd.f32 %v7136_v37, %v7538_v31 }
 0x9e4   :  { %3226 = vmatprep.subr.bf16.mxu1 %v7034_v41  ;;  %4331 = vmatprep.subr.bf16.mxu0 %v7408_v23 }
 0x9e7   :  { %3227 = vmatpush1.bf16.msra.mxu1 %v7042_v2  ;;  %4332 = vmatpush3.bf16.msra.mxu0 %v7048_v35 }
 0x9e8   :  { %3228 = vmatprep.subr.bf16.mxu1 %v7054_v39  ;;  %4333 = vmatprep.subr.bf16.mxu0 %v7408_v23 }
 0x9e9   :  { %v4711_v58 = vpop.eup %4710 }
 0x9ea   :  { %v3113_v59 = vadd.f32 1.0, %v4711_v58  ;;  %v4713_v22 = vpop.eup %4712 }
 0x9eb   :  { %3229 = vmatpush1.bf16.msra.mxu1 %v7063_v34  ;;  %4334 = vmatpush3.bf16.msra.mxu0 %v7069_v29  ;;  %v3120_v12 = vadd.f32 1.0, %v4713_v22 }
 0x9ec   :  { %4714 = vrcp.f32 %v3113_v59  ;;  %3230 = vmatprep.subr.bf16.mxu1 %v7075_v57  ;;  %4335 = vmatprep.subr.bf16.mxu0 %v7408_v23 }
 0x9ed   :  { %4716 = vrcp.f32 %v3120_v12 }
 0x9ef   :  { %3231 = vmatpush1.bf16.msra.mxu1 %v7082_v40  ;;  %4336 = vmatpush3.bf16.msra.mxu0 %v7088_v6 }
 0x9f0   :  { %4341 = vmatprep.subr.bf16.mxu1 %v7408_v23 }
 0x9f6   :  { %v4715_v8 = vpop.eup %4714 }
 0x9f7   :  { %v3123_v41 = vmul.f32 %v4715_v8, %v3104_v63  ;;  %v4717_v35 = vpop.eup %4716 }
 0x9f8   :  { %v3126_v39 = vsub.f32 1.0, %v4717_v35  ;;  %v3128_v57 = vmul.f32 %v4717_v35, %v7058_v50  ;;  %v4564_v50 = vld [vmem:[%s7241_s10 + $0x10] sm:$0xff]  }
 0x9f9   :  { %v3124_v2 = vadd.f32 %v3123_v41, %v3022_v20 }
 0x9fb   :  { %4718 = vtanh.f32 %v3124_v2 }
 0xa05   :  { %v4719_v34 = vpop.eup %4718 }
 0xa06   :  { %v3127_v29 = vmul.f32 %v4719_v34, %v3126_v39 }
 0xa08   :  { %v3129_v40 = vadd.f32 %v3128_v57, %v3127_v29 }
 0xa0a   :  { %v3215_v6 = vpack.c.bf16 %v3129_v40, %v3129_v40 }
 0xa0c   :  { %3249 = vmatmul.mubr.bf16.vlgmr.msra.gmra.mrb[64].mxu1 %v3215_v6  ;;  %4338 = vmatmul.mubr.bf16.vlgmr.msra.gmra.mrb[100].mxu0 %v3215_v6 }
 0xa0d   :  { %4357 = vmatprep.mubr.msk.bf16.mxu1 %vm4900_vm0, %v7408_v23  ;;  %4342 = vmatpush3.bf16.msra.mxu1 %v4562_v21 }
 0xa0e   :  { %4343 = vmatprep.subr.bf16.mxu1 %v7408_v23 }
 0xa11   :  { %4344 = vmatpush3.bf16.msra.mxu1 %v4563_v56 }
 0xa12   :  { %4345 = vmatprep.subr.bf16.mxu1 %v7408_v23 }
 0xa15   :  { %4346 = vmatpush3.bf16.msra.mxu1 %v4564_v50 }
 0xa16   :  { %4347 = vmatprep.subr.bf16.mxu1 %v7408_v23 }
 0xa19   :  { %4348 = vmatpush3.bf16.msra.mxu1 %v4565_v9 }
 0xa1a   :  { %4349 = vmatprep.subr.bf16.mxu1 %v7408_v23 }
 0xa1d   :  { %4350 = vmatpush3.bf16.msra.mxu1 %v4566_v47 }
 0xa1e   :  { %4351 = vmatprep.subr.bf16.mxu1 %v7408_v23 }
 0xa21   :  { %4352 = vmatpush3.bf16.msra.mxu1 %v4567_v51 }
 0xa22   :  { %4353 = vmatprep.subr.bf16.mxu1 %v7408_v23 }
 0xa25   :  { %4354 = vmatpush3.bf16.msra.mxu1 %v4568_v42 }
 0xa26   :  { %4355 = vmatprep.subr.bf16.mxu1 %v7408_v23 }
 0xa29   :  { %4356 = vmatpush3.bf16.msra.mxu1 %v4569_v61 }
 0xaa5   :  { %v3209_v49 = vpop.f32.mrb[96].mxu0 }
 0xaa6   :  { %v4319_v1 = vpop.f32.mrb[97].mxu0  ;;  %v3210_v55 = vadd.f32 %v3209_v49, %v7538_v31 }
 0xaa7   :  { %v3212_v26 = vpop.f32.mrb[98].mxu0 }
 0xaa8   :  { %v4320_v10 = vpop.f32.mrb[99].mxu0 }
 0xadf   :  { %v3250_v45 = vpop.f32.mrb[64].mxu1  ;;  %v3291_v30 = vpop.f32.mrb[100].mxu0 }
 0xae0   :  { %v4390_v60 = vadd.f32 %v5704_v0, %v3250_v45  ;;  %v3252_v18 = vpop.f32.mrb[65].mxu1  ;;  %v4339_v62 = vpop.f32.mrb[101].mxu0  ;;  %v3292_v27 = vadd.f32 %v3291_v30, %v7537_v7  ;;  %v3581_v7 = vld [vmem:[%s7242_s11] ss:$0 sm:$0xff] }
 0xae1   :  { %v3254_v37 = vpop.f32.mrb[66].mxu1  ;;  %v3294_v38 = vpop.f32.mrb[102].mxu0  ;;  %v4392_v15 = vadd.f32 %v5710_v11, %v3252_v18 }
 0xae2   :  { %v3579_v28 = vmul.f32 -1.442695, %v4390_v60  ;;  %v3255_v16 = vpop.f32.mrb[67].mxu1  ;;  %v4340_v46 = vpop.f32.mrb[103].mxu0 }
 0xae3   :  { %v3580_v23 = vmul.f32 -1.442695, %v4392_v15 }
 0xae4   :  { %4720 = vpow2.f32 %v3579_v28 }
 0xae5   :  { %4722 = vpow2.f32 %v3580_v23 }
 0xaee   :  { %v4721_v4 = vpop.eup %4720 }
 0xaef   :  { %v3301_v19 = vadd.f32 1.0, %v4721_v4  ;;  %v4723_v53 = vpop.eup %4722 }
 0xaf0   :  { %v3308_v44 = vadd.f32 1.0, %v4723_v53 }
 0xaf1   :  { %4724 = vrcp.f32 %v3301_v19 }
 0xaf2   :  { %4726 = vrcp.f32 %v3308_v44 }
 0xafb   :  { %v4725_v0 = vpop.eup %4724 }
 0xafc   :  { %v3311_v14 = vmul.f32 %v4725_v0, %v3292_v27  ;;  %v4727_v32 = vpop.eup %4726 }
 0xafd   :  { %v3314_v17 = vsub.f32 1.0, %v4727_v32  ;;  %v3316_v3 = vmul.f32 %v4727_v32, %v3129_v40 }
 0xafe   :  { %v3312_v54 = vadd.f32 %v3311_v14, %v3210_v55 }
 0xb00   :  { %4728 = vtanh.f32 %v3312_v54 }
 0xb0a   :  { %v4729_v11 = vpop.eup %4728 }
 0xb0b   :  { %v3315_v43 = vmul.f32 %v4729_v11, %v3314_v17 }
 0xb0d   :  { %v3317_v13 = vadd.f32 %v3316_v3, %v3315_v43 }
 0xb0f   :  { %v3318_v24 = vmax.f32 %v3317_v13, 0.0 }
 0xb11   :  { %v3319_v5 = vpack.c.bf16 %v3318_v24, %v3318_v24 }
 0xb13   :  { %4358 = vmatmul.mubr.bf16.vlgmr.msra.gmra.mrb[68].mxu1 %v3319_v5 }
 0xbe6   :  { %v3425_v31 = vpop.f32.mrb[68].mxu1 }
 0xbe7   :  { %v3426_v52 = vadd.f32 %v3581_v7, %v3425_v31  ;;  %v4359_v36 = vpop.f32.mrb[69].mxu1 }
 0xbe8   :  { %v3428_v25 = vpop.f32.mrb[70].mxu1 }
 0xbe9   :  { %3431 = vst [vmem:[#allocation2] sm:$0x3] %v3426_v52  ;;  %v4360_v33 = vpop.f32.mrb[71].mxu1 }
 0xbea   :  { %4885 = shalt.err (!%p4882_p4)
}
 0xbeb   :  { %s4886_s11 = scalar_lea.hbm %s7243_s12, 32 }
 0xbec   :  { %p4887_p5 = scmp.ne.s32.totalorder %s7243_s12, %s4886_s11  ;;  %p4890_p6 = scmp.lt.u32.totalorder %s4886_s11, %s7243_s12 }
 0xbee   :  { %p4892_p7 = pnand %p4890_p6, %p4887_p5 }
 0xbf0   :  { %4895 = shalt.err (!%p4892_p7)
}
 0xbf1   :  { %3441 = dma.vmem_to_hbm [thread:$0]  %s3439_s14, 32, %s7243_s12, [#allocation3]  }
 0xbf2   :  { %4896 = dma.done.wait [#allocation3], 32  }
 0xbf3   :  { %4897 = vsyncadd [#allocation3], 4294967264 }
 0xbf4   :  { %3445 = vsyncpa [#allocation3], 1 }

</bundles_post_ra>
